<compile_context>
chip_gen: v5e
topology: v5e:2x2
jax: 0.10.0
libtpu: 0.0.40
codegen_flags: <defaults>
</compile_context>

<pallas_src>
import functools

import jax
import jax.numpy as jnp
from jax.experimental import pallas as pl
from jax.experimental.pallas import tpu as pltpu


_VMEM_LIMIT = 32 * 1024 * 1024   # explicit scoped-VMEM budget, safe on v5e/v6e/v7x


# ----------------------------------------------------------------------------
# Pallas kernels
# ----------------------------------------------------------------------------

def _conv_fused_kernel(*args, has_in, relu, has_res, scaled, post_relu, eps):
    """Channel-major conv matmul with fused bias / InstanceNorm / ReLU /
    (scaled) residual.  One batch element per grid step, full spatial extent
    in the block (required for the InstanceNorm statistics).  Output layout
    [Cout, HW] -> lane-dense stores."""
    it = iter(args)
    a_ref = next(it)              # [K, HW]    bf16  (im2col patches)
    w_ref = next(it)              # [Cout, K]  bf16
    b_ref = next(it)              # [Cout, 1]  f32
    g_ref = beta_ref = res_ref = alpha_ref = None
    if has_in:
        g_ref = next(it)          # [Cout, 1]
        beta_ref = next(it)       # [Cout, 1]
    if has_res:
        res_ref = next(it)        # [Cout, HW] f32
    if scaled:
        alpha_ref = next(it)      # [1, 2]     f32
    o_ref = next(it)              # [Cout, HW] f32

    y = jnp.dot(w_ref[...], a_ref[...],
                preferred_element_type=jnp.float32) + b_ref[...]
    if has_in:
        mean = jnp.mean(y, axis=-1, keepdims=True)
        yc = y - mean
        var = jnp.mean(yc * yc, axis=-1, keepdims=True)
        y = yc * jax.lax.rsqrt(var + eps) * g_ref[...] + beta_ref[...]
    if relu:
        y = jnp.maximum(y, 0.0)
    if has_res:
        r = res_ref[...]
        if scaled:
            y = alpha_ref[:, 0:1] * y + alpha_ref[:, 1:2] * r
        else:
            y = y + r
    if post_relu:
        y = jnp.maximum(y, 0.0)
    o_ref[...] = y


def _conv_tiled_kernel(a_ref, w_ref, b_ref, o_ref, *, relu):
    """Channel-major conv matmul (+bias)(+ReLU), tiled over the spatial/lane
    axis so the pipeline double-buffers and VMEM stays bounded at any H*W."""
    y = jnp.dot(w_ref[...], a_ref[...],
                preferred_element_type=jnp.float32) + b_ref[...]
    if relu:
        y = jnp.maximum(y, 0.0)
    o_ref[...] = y


def _preconv_kernel(x_ref, w_ref, b_ref, o_ref):
    """1x1 conv with a single input channel == VPU broadcast-multiply."""
    o_ref[...] = w_ref[...] * x_ref[...] + b_ref[...]


def _sca_kernel(x1_ref, x2_ref, w1_ref, b1_ref, w2_ref, b2_ref,
                o1_ref, o2_ref):
    """Fused SpatialCrossAttention: conv1x1 -> ReLU -> conv1x1 -> sigmoid ->
    per-channel spatial gating of both inputs, one kernel per batch element."""
    x1 = x1_ref[...]                                    # [C, HW] f32
    x2 = x2_ref[...]
    xc = jnp.concatenate([x1, x2], axis=0).astype(jnp.bfloat16)   # [2C, HW]
    h = jnp.dot(w1_ref[...], xc,
                preferred_element_type=jnp.float32) + b1_ref[...]
    h = jnp.maximum(h, 0.0).astype(jnp.bfloat16)
    attn = jax.nn.sigmoid(
        jnp.dot(w2_ref[...], h,
                preferred_element_type=jnp.float32) + b2_ref[...])  # [2, HW]
    o1_ref[...] = x1 * attn[0:1, :]
    o2_ref[...] = x2 * attn[1:2, :]


def _kpn_kernel(a_ref, kx_ref, w_ref, b_ref, o_ref, *, kk):
    """Fused KPN tail: sa3 1x1 conv on the attention logits followed by the
    per-pixel kxk weighted-neighborhood sum."""
    a = a_ref[...]                                      # [kk, HW] f32
    if kk == 1:
        atw = w_ref[...].astype(jnp.float32) * a + b_ref[...]
    else:
        atw = jnp.dot(w_ref[...], a.astype(jnp.bfloat16),
                      preferred_element_type=jnp.float32) + b_ref[...]
    o_ref[...] = jnp.sum(atw * kx_ref[...], axis=0, keepdims=True)   # [1, HW]


# ----------------------------------------------------------------------------
# Conv glue (im2col in JAX, matmul in Pallas)
# ----------------------------------------------------------------------------

def im2col(x, k, pad, dil=1):
    """x: [B, C, H, W] -> [B, C*k*k, Ho*Wo]; F.unfold ordering (C, kh, kw)."""
    B, C, H, W = x.shape
    if k == 1 and pad == 0:
        return x.reshape(B, C, H * W)
    Ho = H + 2 * pad - dil * (k - 1)
    Wo = W + 2 * pad - dil * (k - 1)
    xp = jnp.pad(x, ((0, 0), (0, 0), (pad, pad), (pad, pad)))
    cols = [xp[:, :, i * dil:i * dil + Ho, j * dil:j * dil + Wo]
            for i in range(k) for j in range(k)]
    patches = jnp.stack(cols, axis=2)                   # [B, C, k*k, Ho, Wo]
    return patches.reshape(B, C * k * k, Ho * Wo)
# TODO(synk): im2col still stages k*k-expanded patches in HBM; an in-kernel
# tap-accumulating grid axis over shifted windows would remove that traffic at
# large resolutions.


def conv_fused(x, conv_p, k, pad, dil=1, *, in_p=None, relu=False,
               residual=None, alphas=None, post_relu=False):
    """Conv2d(k, stride=1, pad) with fused bias / IN / ReLU / residual."""
    B, C, H, W = x.shape
    HW = H * W
    cout = conv_p['w'].shape[0]
    K = C * k * k

    a = im2col(x, k, pad, dil).astype(jnp.bfloat16)           # [B, K, HW]
    w = conv_p['w'].reshape(cout, K).astype(jnp.bfloat16)     # [Cout, K]
    b = conv_p['b'].reshape(cout, 1)

    has_in = in_p is not None
    has_res = residual is not None
    scaled = alphas is not None

    inputs = [a, w, b]
    in_specs = [
        pl.BlockSpec((None, K, HW), lambda i: (i, 0, 0)),
        pl.BlockSpec((cout, K), lambda i: (0, 0)),
        pl.BlockSpec((cout, 1), lambda i: (0, 0)),
    ]
    if has_in:
        inputs += [in_p['g'].reshape(cout, 1), in_p['b'].reshape(cout, 1)]
        in_specs += [pl.BlockSpec((cout, 1), lambda i: (0, 0)),
                     pl.BlockSpec((cout, 1), lambda i: (0, 0))]
    if has_res:
        inputs.append(residual.reshape(B, cout, HW))
        in_specs.append(pl.BlockSpec((None, cout, HW), lambda i: (i, 0, 0)))
    if scaled:
        inputs.append(jnp.stack([alphas[0], alphas[1]])
                      .reshape(1, 2).astype(jnp.float32))
        in_specs.append(pl.BlockSpec((1, 2), lambda i: (0, 0)))

    out = pl.pallas_call(
        functools.partial(_conv_fused_kernel, has_in=has_in, relu=relu,
                          has_res=has_res, scaled=scaled,
                          post_relu=post_relu, eps=1e-5),
        out_shape=jax.ShapeDtypeStruct((B, cout, HW), jnp.float32),
        grid=(B,),
        in_specs=in_specs,
        out_specs=pl.BlockSpec((None, cout, HW), lambda i: (i, 0, 0)),
        compiler_params=pltpu.CompilerParams(
            dimension_semantics=("parallel",),
            vmem_limit_bytes=_VMEM_LIMIT),
    )(*inputs)
    return out.reshape(B, cout, H, W)


def _pick_hw_tile(HW):
    # Lane-dense tile (multiple of 128) dividing HW; kept modest so the
    # double-buffered blocks also fit v7x's 64 MiB VMEM at large images.
    for cand in (512, 256, 128):
        if HW % cand == 0:
            return cand
    return HW


def conv_tiled(x, conv_p, k, pad, dil=1, relu=False):
    """Conv2d(k, stride=1, pad) + bias [+ ReLU], spatially tiled & pipelined."""
    B, C, H, W = x.shape
    HW = H * W
    cout = conv_p['w'].shape[0]
    K = C * k * k
    a = im2col(x, k, pad, dil).astype(jnp.bfloat16)
    w = conv_p['w'].reshape(cout, K).astype(jnp.bfloat16)
    b = conv_p['b'].reshape(cout, 1)
    thw = _pick_hw_tile(HW)
    out = pl.pallas_call(
        functools.partial(_conv_tiled_kernel, relu=relu),
        out_shape=jax.ShapeDtypeStruct((B, cout, HW), jnp.float32),
        grid=(B, HW // thw),
        in_specs=[
            pl.BlockSpec((None, K, thw), lambda i, j: (i, 0, j)),
            pl.BlockSpec((cout, K), lambda i, j: (0, 0)),
            pl.BlockSpec((cout, 1), lambda i, j: (0, 0)),
        ],
        out_specs=pl.BlockSpec((None, cout, thw), lambda i, j: (i, 0, j)),
        compiler_params=pltpu.CompilerParams(
            dimension_semantics=("parallel", "parallel"),
            vmem_limit_bytes=_VMEM_LIMIT),
    )(a, w, b)
    return out.reshape(B, cout, H, W)


def preconv(x, p):
    """Conv2d(1, C, 1): single-input-channel 1x1 conv as a VPU broadcast."""
    B, _, H, W = x.shape
    HW = H * W
    C = p['w'].shape[0]
    out = pl.pallas_call(
        _preconv_kernel,
        out_shape=jax.ShapeDtypeStruct((B, C, HW), jnp.float32),
        grid=(B,),
        in_specs=[
            pl.BlockSpec((None, 1, HW), lambda i: (i, 0, 0)),
            pl.BlockSpec((C, 1), lambda i: (0, 0)),
            pl.BlockSpec((C, 1), lambda i: (0, 0)),
        ],
        out_specs=pl.BlockSpec((None, C, HW), lambda i: (i, 0, 0)),
        compiler_params=pltpu.CompilerParams(
            dimension_semantics=("parallel",),
            vmem_limit_bytes=_VMEM_LIMIT),
    )(x.reshape(B, 1, HW), p['w'].reshape(C, 1), p['b'].reshape(C, 1))
    return out.reshape(B, C, H, W)


# ----------------------------------------------------------------------------
# Module forward functions
# ----------------------------------------------------------------------------

def resblock(x, p):
    h = conv_fused(x, p['conv1'], 3, 1, in_p=p['in1'], relu=True)
    idn = conv_tiled(x, p['proj'], 1, 0) if 'proj' in p else x
    # conv3x3 + IN + residual add + final ReLU, all fused.
    return conv_fused(h, p['conv2'], 3, 1, in_p=p['in2'], relu=False,
                      residual=idn, post_relu=True)


def sample_conv(x, conv_p, in_p):
    # sample_block DOWN/UP with dilation = stride = 1 preserves spatial size;
    # ConvTranspose2d(3,1,1) at stride 1 is a plain 3x3/pad-1 conv with a
    # flipped kernel (weights here are synthetic, so sampled directly).
    return conv_fused(x, conv_p, 3, 1, in_p=in_p, relu=True)


def skip_conv(x, y, p):
    # alpha1 * ReLU(IN(conv1x1(x))) + alpha2 * y   -- fully fused.
    return conv_fused(x, p['conv'], 1, 0, in_p=p['in'], relu=True,
                      residual=y, alphas=(p['alpha1'], p['alpha2']))


def skip_res(x, y, p):
    body = resblock(x, p['res'])
    return p['alpha1'] * body + p['alpha2'] * y


def hunet(x, p):
    x11 = resblock(x, p['layer_down1'])
    xd1 = sample_conv(x11, p['down1_conv'], p['down1_in'])
    xd1 = skip_conv(jnp.concatenate([x, xd1], 1), xd1, p['skip1'])
    x12 = resblock(xd1, p['layer_down2'])
    xd2 = sample_conv(x12, p['down2_conv'], p['down2_in'])
    xd2 = skip_conv(jnp.concatenate([xd1, xd2], 1), xd2, p['skip2'])
    xd2 = skip_conv(jnp.concatenate([x, xd2], 1), xd2, p['skip3'])
    xb = resblock(xd2, p['layer_bottom'])
    xu2 = sample_conv(xb, p['up2_conv'], p['up2_in'])
    xu2 = skip_conv(jnp.concatenate([xb, xu2], 1), xu2, p['skip4'])
    x22 = resblock(xu2, p['layer_up2'])
    x22 = skip_res(jnp.concatenate([x12, x22], 1), x22, p['fus2'])
    xu1 = sample_conv(x22, p['up1_conv'], p['up1_in'])
    xu1 = skip_conv(jnp.concatenate([x22, xu1], 1), xu1, p['skip5'])
    x21 = resblock(xu1, p['layer_up1'])
    x21 = skip_conv(jnp.concatenate([xb, x21], 1), x21, p['skip6'])
    x21 = skip_res(jnp.concatenate([x11, x21], 1), x21, p['fus1'])
    return [xb, x22, x21]


def kpn(x, cfeat, p, k, pad):
    """KPN: spatial-attention conv stack then per-pixel kxk weighted sum.
    channels_in == 1 in FFMEF, so the .repeat() is a no-op and the
    permute/view/permute chain collapses to reshape(B, k*k, HW)."""
    B, _, H, W = x.shape
    HW = H * W
    kk = k * k
    a = conv_tiled(cfeat, p['sa1'], 3, 1, relu=True)        # cond -> cond
    a = conv_tiled(a, p['sa2'], k, pad, relu=True)          # cond -> k*k
    a2 = a.reshape(B, kk, HW)
    kx = im2col(x, k, pad, 1)                               # F.unfold(x, k, pad)
    w3 = p['sa3']['w'].reshape(kk, kk).astype(jnp.bfloat16)
    b3 = p['sa3']['b'].reshape(kk, 1)
    y = pl.pallas_call(
        functools.partial(_kpn_kernel, kk=kk),
        out_shape=jax.ShapeDtypeStruct((B, 1, HW), jnp.float32),
        grid=(B,),
        in_specs=[
            pl.BlockSpec((None, kk, HW), lambda i: (i, 0, 0)),
            pl.BlockSpec((None, kk, HW), lambda i: (i, 0, 0)),
            pl.BlockSpec((kk, kk), lambda i: (0, 0)),
            pl.BlockSpec((kk, 1), lambda i: (0, 0)),
        ],
        out_specs=pl.BlockSpec((None, 1, HW), lambda i: (i, 0, 0)),
        compiler_params=pltpu.CompilerParams(
            dimension_semantics=("parallel",),
            vmem_limit_bytes=_VMEM_LIMIT),
    )(a2, kx, w3, b3)
    return y.reshape(B, 1, H, W)


def sca(x1, x2, p):
    B, C, H, W = x1.shape
    HW = H * W
    w1 = p['conv1']['w'].reshape(C, 2 * C).astype(jnp.bfloat16)
    b1 = p['conv1']['b'].reshape(C, 1)
    w2 = p['conv2']['w'].reshape(2, C).astype(jnp.bfloat16)
    b2 = p['conv2']['b'].reshape(2, 1)
    o1, o2 = pl.pallas_call(
        _sca_kernel,
        out_shape=(jax.ShapeDtypeStruct((B, C, HW), jnp.float32),
                   jax.ShapeDtypeStruct((B, C, HW), jnp.float32)),
        grid=(B,),
        in_specs=[
            pl.BlockSpec((None, C, HW), lambda i: (i, 0, 0)),
            pl.BlockSpec((None, C, HW), lambda i: (i, 0, 0)),
            pl.BlockSpec((C, 2 * C), lambda i: (0, 0)),
            pl.BlockSpec((C, 1), lambda i: (0, 0)),
            pl.BlockSpec((2, C), lambda i: (0, 0)),
            pl.BlockSpec((2, 1), lambda i: (0, 0)),
        ],
        out_specs=(pl.BlockSpec((None, C, HW), lambda i: (i, 0, 0)),
                   pl.BlockSpec((None, C, HW), lambda i: (i, 0, 0))),
        compiler_params=pltpu.CompilerParams(
            dimension_semantics=("parallel",),
            vmem_limit_bytes=_VMEM_LIMIT),
    )(x1.reshape(B, C, HW), x2.reshape(B, C, HW), w1, b1, w2, b2)
    return o1.reshape(B, C, H, W), o2.reshape(B, C, H, W)


def ffmef_forward(params, img0_RGB, img0_Y, img1_RGB, img1_Y):
    del img0_RGB, img1_RGB                      # unused by FFMEF.forward
    B = img0_Y.shape[0]
    # Both exposures share the encoder/KPN weights; run them as one batch of
    # 2B (convs & InstanceNorm are per-sample ops, so results are identical).
    y_both = jnp.concatenate([img0_Y, img1_Y], axis=0)       # [2B, 1, H, W]
    f_both = preconv(y_both, params['preconv'])
    flist = hunet(f_both, params['encode'])
    fl0 = [t[:B] for t in flist]
    fl1 = [t[B:] for t in flist]

    # SFFusion
    f02, f12 = sca(fl0[2], fl1[2], params['sca1'])
    k1 = kpn(y_both, jnp.concatenate([f02, f12], 0), params['kp1'], 1, 0)
    if_1 = k1[:B] + k1[B:]
    f01, f11 = sca(fl0[1], fl1[1], params['sca2'])
    k2 = kpn(y_both, jnp.concatenate([f01, f11], 0), params['kp2'], 3, 1)
    if_2 = k2[:B] + k2[B:]
    f00, f10 = sca(fl0[0], fl1[0], params['sca3'])
    k3 = kpn(y_both, jnp.concatenate([f00, f10], 0), params['kp3'], 5, 2)
    if_3 = k3[:B] + k3[B:]

    return (params['alpha1'] * if_1 + params['alpha2'] * if_2
            + params['alpha3'] * if_3)


# ----------------------------------------------------------------------------
# Deterministic synthetic parameter initialization (xavier-normal style)
# ----------------------------------------------------------------------------

class ParamGen:
    def __init__(self, seed):
        self.key = jax.random.PRNGKey(seed)

    def next(self):
        self.key, sub = jax.random.split(self.key)
        return sub


def conv_params(pg, cin, cout, k):
    fan_in, fan_out = cin * k * k, cout * k * k
    std = (2.0 / (fan_in + fan_out)) ** 0.5
    w = jax.random.normal(pg.next(), (cout, cin, k, k), jnp.float32) * std
    return {'w': w, 'b': jnp.zeros((cout,), jnp.float32)}


def in_params(c):
    return {'g': jnp.ones((c,), jnp.float32), 'b': jnp.zeros((c,), jnp.float32)}


def make_resblock(pg, cin, cout):
    p = {'conv1': conv_params(pg, cin, cout, 3), 'in1': in_params(cout),
         'conv2': conv_params(pg, cout, cout, 3), 'in2': in_params(cout)}
    if cin != cout:
        p['proj'] = conv_params(pg, cin, cout, 1)
    return p


def make_skip_conv(pg, cin, cout):
    return {'conv': conv_params(pg, cin, cout, 1), 'in': in_params(cout),
            'alpha1': jnp.float32(1.0), 'alpha2': jnp.float32(0.5)}


def make_skip_res(pg, cin, cout):
    return {'res': make_resblock(pg, cin, cout),
            'alpha1': jnp.float32(1.0), 'alpha2': jnp.float32(0.5)}


def make_hunet(pg, ch):
    return {
        'layer_down1': make_resblock(pg, ch, ch),
        'down1_conv': conv_params(pg, ch, ch, 3), 'down1_in': in_params(ch),
        'layer_down2': make_resblock(pg, ch, ch),
        'down2_conv': conv_params(pg, ch, ch, 3), 'down2_in': in_params(ch),
        'layer_bottom': make_resblock(pg, ch, ch),
        'up2_conv': conv_params(pg, ch, ch, 3), 'up2_in': in_params(ch),
        'layer_up2': make_resblock(pg, ch, ch),
        'up1_conv': conv_params(pg, ch, ch, 3), 'up1_in': in_params(ch),
        'layer_up1': make_resblock(pg, ch, ch),
        'fus2': make_skip_res(pg, 2 * ch, ch),
        'fus1': make_skip_res(pg, 2 * ch, ch),
        'skip1': make_skip_conv(pg, 2 * ch, ch),
        'skip2': make_skip_conv(pg, 2 * ch, ch),
        'skip3': make_skip_conv(pg, 2 * ch, ch),
        'skip4': make_skip_conv(pg, 2 * ch, ch),
        'skip5': make_skip_conv(pg, 2 * ch, ch),
        'skip6': make_skip_conv(pg, 2 * ch, ch),
    }


def make_kpn(pg, cond, k):
    return {'sa1': conv_params(pg, cond, cond, 3),
            'sa2': conv_params(pg, cond, k * k, k),
            'sa3': conv_params(pg, k * k, k * k, 1)}


def make_sca(pg, ch):
    return {'conv1': conv_params(pg, 2 * ch, ch, 1),
            'conv2': conv_params(pg, ch, 2, 1)}


def make_ffmef(pg, ch):
    return {
        'preconv': conv_params(pg, 1, ch, 1),
        'encode': make_hunet(pg, ch),
        'kp1': make_kpn(pg, ch, 1),
        'kp2': make_kpn(pg, ch, 3),
        'kp3': make_kpn(pg, ch, 5),
        'sca1': make_sca(pg, ch),
        'sca2': make_sca(pg, ch),
        'sca3': make_sca(pg, ch),
        'alpha1': jnp.float32(0.6),
        'alpha2': jnp.float32(0.3),
        'alpha3': jnp.float32(0.1),
    }


# ----------------------------------------------------------------------------

if __name__ == "__main__":
    channels = 8
    B, H, W = 2, 16, 16

    key = jax.random.PRNGKey(0)
    k1, k2, k3, k4 = jax.random.split(key, 4)
    img0_RGB = jax.random.normal(k1, (B, 3, H, W), jnp.float32)
    img0_Y = jax.random.normal(k2, (B, 1, H, W), jnp.float32)
    img1_RGB = jax.random.normal(k3, (B, 3, H, W), jnp.float32)
    img1_Y = jax.random.normal(k4, (B, 1, H, W), jnp.float32)

    params = make_ffmef(ParamGen(42), channels)

    fwd = jax.jit(ffmef_forward)
    out = fwd(params, img0_RGB, img0_Y, img1_RGB, img1_Y)
    out = jax.block_until_ready(out)

    assert out.shape == (B, 1, H, W), out.shape
    assert jnp.all(jnp.isfinite(out))
    print("KERNEL_OK")
</pallas_src>

<mosaic_0001>
module attributes {stable_mosaic.version = 11 : i64} {
  func.func @_preconv_kernel(%arg0: i32, %arg1: memref<1x1x256xf32, #tpu.memory_space<vmem>>, %arg2: memref<8x1xf32, #tpu.memory_space<vmem>>, %arg3: memref<8x1xf32, #tpu.memory_space<vmem>>, %arg4: memref<1x8x256xf32, #tpu.memory_space<vmem>>) attributes {dimension_semantics = [#tpu.dimension_semantics<parallel>], iteration_bounds = array<i64: 4>, scalar_prefetch = 0 : i64, scratch_operands = 0 : i64, tpu.core_type = #tpu.core_type<tc>, window_params = [{transform_indices = @transform_0, window_bounds = array<i64: 1, 1, 256>}, {pipeline_mode = #tpu.pipeline_mode<synchronous>, transform_indices = @transform_1, window_bounds = array<i64: 8, 1>}, {pipeline_mode = #tpu.pipeline_mode<synchronous>, transform_indices = @transform_2, window_bounds = array<i64: 8, 1>}, {transform_indices = @transform_3, window_bounds = array<i64: 1, 8, 256>}]} {
    %c0 = arith.constant 0 : index
    %c0_0 = arith.constant 0 : index
    %0 = vector.load %arg2[%c0, %c0_0] : memref<8x1xf32, #tpu.memory_space<vmem>>, vector<8x1xf32>
    %c0_1 = arith.constant 0 : index
    %c0_2 = arith.constant 0 : index
    %c0_3 = arith.constant 0 : index
    %1 = vector.load %arg1[%c0_1, %c0_2, %c0_3] : memref<1x1x256xf32, #tpu.memory_space<vmem>>, vector<1x1x256xf32>
    %2 = vector.shape_cast %1 : vector<1x1x256xf32> to vector<1x256xf32>
    %3 = vector.broadcast %0 : vector<8x1xf32> to vector<8x256xf32>
    %4 = vector.broadcast %2 : vector<1x256xf32> to vector<8x256xf32>
    %5 = arith.mulf %3, %4 : vector<8x256xf32>
    %c0_4 = arith.constant 0 : index
    %c0_5 = arith.constant 0 : index
    %6 = vector.load %arg3[%c0_4, %c0_5] : memref<8x1xf32, #tpu.memory_space<vmem>>, vector<8x1xf32>
    %7 = vector.broadcast %6 : vector<8x1xf32> to vector<8x256xf32>
    %8 = arith.addf %5, %7 : vector<8x256xf32>
    %c0_6 = arith.constant 0 : index
    %c0_7 = arith.constant 0 : index
    %c0_8 = arith.constant 0 : index
    %9 = vector.load %arg4[%c0_6, %c0_7, %c0_8] : memref<1x8x256xf32, #tpu.memory_space<vmem>>, vector<1x8x256xf32>
    %10 = vector.shape_cast %9 : vector<1x8x256xf32> to vector<8x256xf32>
    %11 = vector.shape_cast %8 : vector<8x256xf32> to vector<1x8x256xf32>
    tpu.vector_store %arg4[%c0_6, %c0_7, %c0_8], %11 {strides = array<i32>} : memref<1x8x256xf32, #tpu.memory_space<vmem>>, vector<1x8x256xf32>,
    return
  }
  func.func @transform_0(%arg0: i32) -> (i32, i32, i32) {
    %c0_i32 = arith.constant 0 : i32
    %c0_i32_0 = arith.constant 0 : i32
    %c0_i32_1 = arith.constant 0 : i32
    return %arg0, %c0_i32, %c0_i32_0 : i32, i32, i32
  }
  func.func @transform_1(%arg0: i32) -> (i32, i32) {
    %c0_i32 = arith.constant 0 : i32
    %c0_i32_0 = arith.constant 0 : i32
    %c0_i32_1 = arith.constant 0 : i32
    return %c0_i32, %c0_i32_0 : i32, i32
  }
  func.func @transform_2(%arg0: i32) -> (i32, i32) {
    %c0_i32 = arith.constant 0 : i32
    %c0_i32_0 = arith.constant 0 : i32
    %c0_i32_1 = arith.constant 0 : i32
    return %c0_i32, %c0_i32_0 : i32, i32
  }
  func.func @transform_3(%arg0: i32) -> (i32, i32, i32) {
    %c0_i32 = arith.constant 0 : i32
    %c0_i32_0 = arith.constant 0 : i32
    %c0_i32_1 = arith.constant 0 : i32
    return %arg0, %c0_i32, %c0_i32_0 : i32, i32, i32
  }
}

module attributes {stable_mosaic.version = 11 : i64} {
  func.func @_conv_fused_kernel(%arg0: i32, %arg1: memref<1x72x256xbf16, #tpu.memory_space<vmem>>, %arg2: memref<8x72xbf16, #tpu.memory_space<vmem>>, %arg3: memref<8x1xf32, #tpu.memory_space<vmem>>, %arg4: memref<8x1xf32, #tpu.memory_space<vmem>>, %arg5: memref<8x1xf32, #tpu.memory_space<vmem>>, %arg6: memref<1x8x256xf32, #tpu.memory_space<vmem>>) attributes {dimension_semantics = [#tpu.dimension_semantics<parallel>], iteration_bounds = array<i64: 4>, scalar_prefetch = 0 : i64, scratch_operands = 0 : i64, tpu.core_type = #tpu.core_type<tc>, window_params = [{transform_indices = @transform_0, window_bounds = array<i64: 1, 72, 256>}, {pipeline_mode = #tpu.pipeline_mode<synchronous>, transform_indices = @transform_1, window_bounds = array<i64: 8, 72>}, {pipeline_mode = #tpu.pipeline_mode<synchronous>, transform_indices = @transform_2, window_bounds = array<i64: 8, 1>}, {pipeline_mode = #tpu.pipeline_mode<synchronous>, transform_indices = @transform_3, window_bounds = array<i64: 8, 1>}, {pipeline_mode = #tpu.pipeline_mode<synchronous>, transform_indices = @transform_4, window_bounds = array<i64: 8, 1>}, {transform_indices = @transform_5, window_bounds = array<i64: 1, 8, 256>}]} {
    %c0 = arith.constant 0 : index
    %c0_0 = arith.constant 0 : index
    %0 = vector.load %arg2[%c0, %c0_0] : memref<8x72xbf16, #tpu.memory_space<vmem>>, vector<8x72xbf16>
    %c0_1 = arith.constant 0 : index
    %c0_2 = arith.constant 0 : index
    %c0_3 = arith.constant 0 : index
    %1 = vector.load %arg1[%c0_1, %c0_2, %c0_3] : memref<1x72x256xbf16, #tpu.memory_space<vmem>>, vector<1x72x256xbf16>
    %2 = vector.shape_cast %1 : vector<1x72x256xbf16> to vector<72x256xbf16>
    %cst = arith.constant dense<0.000000e+00> : vector<8x256xf32>
    %3 = tpu.matmul %0, %2, %cst {dimension_numbers = #tpu.dot_dimension_numbers<[1], [0], [0], [1], [0, 0, 1, 1], [], []>} : vector<8x72xbf16>, vector<72x256xbf16>, vector<8x256xf32> -> vector<8x256xf32>
    %c0_4 = arith.constant 0 : index
    %c0_5 = arith.constant 0 : index
    %4 = vector.load %arg3[%c0_4, %c0_5] : memref<8x1xf32, #tpu.memory_space<vmem>>, vector<8x1xf32>
    %5 = vector.broadcast %4 : vector<8x1xf32> to vector<8x256xf32>
    %6 = arith.addf %3, %5 : vector<8x256xf32>
    %cst_6 = arith.constant dense<0.000000e+00> : vector<8xf32>
    %7 = vector.multi_reduction <add>, %6, %cst_6 [1] : vector<8x256xf32> to vector<8xf32>
    %8 = vector.shape_cast %7 : vector<8xf32> to vector<8x1xf32>
    %cst_7 = arith.constant 2.560000e+02 : f32
    %9 = vector.broadcast %cst_7 : f32 to vector<8x1xf32>
    %10 = arith.divf %8, %9 : vector<8x1xf32>
    %11 = vector.broadcast %10 : vector<8x1xf32> to vector<8x256xf32>
    %12 = arith.subf %6, %11 : vector<8x256xf32>
    %13 = arith.mulf %12, %12 : vector<8x256xf32>
    %cst_8 = arith.constant dense<0.000000e+00> : vector<8xf32>
    %14 = vector.multi_reduction <add>, %13, %cst_8 [1] : vector<8x256xf32> to vector<8xf32>
    %15 = vector.shape_cast %14 : vector<8xf32> to vector<8x1xf32>
    %cst_9 = arith.constant 2.560000e+02 : f32
    %16 = vector.broadcast %cst_9 : f32 to vector<8x1xf32>
    %17 = arith.divf %15, %16 : vector<8x1xf32>
    %cst_10 = arith.constant 9.99999974E-6 : f32
    %18 = vector.broadcast %cst_10 : f32 to vector<8x1xf32>
    %19 = arith.addf %17, %18 : vector<8x1xf32>
    %20 = math.rsqrt %19 : vector<8x1xf32>
    %21 = vector.broadcast %20 : vector<8x1xf32> to vector<8x256xf32>
    %22 = arith.mulf %12, %21 : vector<8x256xf32>
    %c0_11 = arith.constant 0 : index
    %c0_12 = arith.constant 0 : index
    %23 = vector.load %arg4[%c0_11, %c0_12] : memref<8x1xf32, #tpu.memory_space<vmem>>, vector<8x1xf32>
    %24 = vector.broadcast %23 : vector<8x1xf32> to vector<8x256xf32>
    %25 = arith.mulf %22, %24 : vector<8x256xf32>
    %c0_13 = arith.constant 0 : index
    %c0_14 = arith.constant 0 : index
    %26 = vector.load %arg5[%c0_13, %c0_14] : memref<8x1xf32, #tpu.memory_space<vmem>>, vector<8x1xf32>
    %27 = vector.broadcast %26 : vector<8x1xf32> to vector<8x256xf32>
    %28 = arith.addf %25, %27 : vector<8x256xf32>
    %cst_15 = arith.constant 0.000000e+00 : f32
    %29 = vector.broadcast %cst_15 : f32 to vector<8x256xf32>
    %30 = arith.maximumf %28, %29 : vector<8x256xf32>
    %c0_16 = arith.constant 0 : index
    %c0_17 = arith.constant 0 : index
    %c0_18 = arith.constant 0 : index
    %31 = vector.load %arg6[%c0_16, %c0_17, %c0_18] : memref<1x8x256xf32, #tpu.memory_space<vmem>>, vector<1x8x256xf32>
    %32 = vector.shape_cast %31 : vector<1x8x256xf32> to vector<8x256xf32>
    %33 = vector.shape_cast %30 : vector<8x256xf32> to vector<1x8x256xf32>
    tpu.vector_store %arg6[%c0_16, %c0_17, %c0_18], %33 {strides = array<i32>} : memref<1x8x256xf32, #tpu.memory_space<vmem>>, vector<1x8x256xf32>,
    return
  }
  func.func @transform_0(%arg0: i32) -> (i32, i32, i32) {
    %c0_i32 = arith.constant 0 : i32
    %c0_i32_0 = arith.constant 0 : i32
    %c0_i32_1 = arith.constant 0 : i32
    return %arg0, %c0_i32, %c0_i32_0 : i32, i32, i32
  }
  func.func @transform_1(%arg0: i32) -> (i32, i32) {
    %c0_i32 = arith.constant 0 : i32
    %c0_i32_0 = arith.constant 0 : i32
    %c0_i32_1 = arith.constant 0 : i32
    return %c0_i32, %c0_i32_0 : i32, i32
  }
  func.func @transform_2(%arg0: i32) -> (i32, i32) {
    %c0_i32 = arith.constant 0 : i32
    %c0_i32_0 = arith.constant 0 : i32
    %c0_i32_1 = arith.constant 0 : i32
    return %c0_i32, %c0_i32_0 : i32, i32
  }
  func.func @transform_3(%arg0: i32) -> (i32, i32) {
    %c0_i32 = arith.constant 0 : i32
    %c0_i32_0 = arith.constant 0 : i32
    %c0_i32_1 = arith.constant 0 : i32
    return %c0_i32, %c0_i32_0 : i32, i32
  }
  func.func @transform_4(%arg0: i32) -> (i32, i32) {
    %c0_i32 = arith.constant 0 : i32
    %c0_i32_0 = arith.constant 0 : i32
    %c0_i32_1 = arith.constant 0 : i32
    return %c0_i32, %c0_i32_0 : i32, i32
  }
  func.func @transform_5(%arg0: i32) -> (i32, i32, i32) {
    %c0_i32 = arith.constant 0 : i32
    %c0_i32_0 = arith.constant 0 : i32
    %c0_i32_1 = arith.constant 0 : i32
    return %arg0, %c0_i32, %c0_i32_0 : i32, i32, i32
  }
}

module attributes {stable_mosaic.version = 11 : i64} {
  func.func @_conv_fused_kernel(%arg0: i32, %arg1: memref<1x72x256xbf16, #tpu.memory_space<vmem>>, %arg2: memref<8x72xbf16, #tpu.memory_space<vmem>>, %arg3: memref<8x1xf32, #tpu.memory_space<vmem>>, %arg4: memref<8x1xf32, #tpu.memory_space<vmem>>, %arg5: memref<8x1xf32, #tpu.memory_space<vmem>>, %arg6: memref<1x8x256xf32, #tpu.memory_space<vmem>>, %arg7: memref<1x8x256xf32, #tpu.memory_space<vmem>>) attributes {dimension_semantics = [#tpu.dimension_semantics<parallel>], iteration_bounds = array<i64: 4>, scalar_prefetch = 0 : i64, scratch_operands = 0 : i64, tpu.core_type = #tpu.core_type<tc>, window_params = [{transform_indices = @transform_0, window_bounds = array<i64: 1, 72, 256>}, {pipeline_mode = #tpu.pipeline_mode<synchronous>, transform_indices = @transform_1, window_bounds = array<i64: 8, 72>}, {pipeline_mode = #tpu.pipeline_mode<synchronous>, transform_indices = @transform_2, window_bounds = array<i64: 8, 1>}, {pipeline_mode = #tpu.pipeline_mode<synchronous>, transform_indices = @transform_3, window_bounds = array<i64: 8, 1>}, {pipeline_mode = #tpu.pipeline_mode<synchronous>, transform_indices = @transform_4, window_bounds = array<i64: 8, 1>}, {transform_indices = @transform_5, window_bounds = array<i64: 1, 8, 256>}, {transform_indices = @transform_6, window_bounds = array<i64: 1, 8, 256>}]} {
    %c0 = arith.constant 0 : index
    %c0_0 = arith.constant 0 : index
    %0 = vector.load %arg2[%c0, %c0_0] : memref<8x72xbf16, #tpu.memory_space<vmem>>, vector<8x72xbf16>
    %c0_1 = arith.constant 0 : index
    %c0_2 = arith.constant 0 : index
    %c0_3 = arith.constant 0 : index
    %1 = vector.load %arg1[%c0_1, %c0_2, %c0_3] : memref<1x72x256xbf16, #tpu.memory_space<vmem>>, vector<1x72x256xbf16>
    %2 = vector.shape_cast %1 : vector<1x72x256xbf16> to vector<72x256xbf16>
    %cst = arith.constant dense<0.000000e+00> : vector<8x256xf32>
    %3 = tpu.matmul %0, %2, %cst {dimension_numbers = #tpu.dot_dimension_numbers<[1], [0], [0], [1], [0, 0, 1, 1], [], []>} : vector<8x72xbf16>, vector<72x256xbf16>, vector<8x256xf32> -> vector<8x256xf32>
    %c0_4 = arith.constant 0 : index
    %c0_5 = arith.constant 0 : index
    %4 = vector.load %arg3[%c0_4, %c0_5] : memref<8x1xf32, #tpu.memory_space<vmem>>, vector<8x1xf32>
    %5 = vector.broadcast %4 : vector<8x1xf32> to vector<8x256xf32>
    %6 = arith.addf %3, %5 : vector<8x256xf32>
    %cst_6 = arith.constant dense<0.000000e+00> : vector<8xf32>
    %7 = vector.multi_reduction <add>, %6, %cst_6 [1] : vector<8x256xf32> to vector<8xf32>
    %8 = vector.shape_cast %7 : vector<8xf32> to vector<8x1xf32>
    %cst_7 = arith.constant 2.560000e+02 : f32
    %9 = vector.broadcast %cst_7 : f32 to vector<8x1xf32>
    %10 = arith.divf %8, %9 : vector<8x1xf32>
    %11 = vector.broadcast %10 : vector<8x1xf32> to vector<8x256xf32>
    %12 = arith.subf %6, %11 : vector<8x256xf32>
    %13 = arith.mulf %12, %12 : vector<8x256xf32>
    %cst_8 = arith.constant dense<0.000000e+00> : vector<8xf32>
    %14 = vector.multi_reduction <add>, %13, %cst_8 [1] : vector<8x256xf32> to vector<8xf32>
    %15 = vector.shape_cast %14 : vector<8xf32> to vector<8x1xf32>
    %cst_9 = arith.constant 2.560000e+02 : f32
    %16 = vector.broadcast %cst_9 : f32 to vector<8x1xf32>
    %17 = arith.divf %15, %16 : vector<8x1xf32>
    %cst_10 = arith.constant 9.99999974E-6 : f32
    %18 = vector.broadcast %cst_10 : f32 to vector<8x1xf32>
    %19 = arith.addf %17, %18 : vector<8x1xf32>
    %20 = math.rsqrt %19 : vector<8x1xf32>
    %21 = vector.broadcast %20 : vector<8x1xf32> to vector<8x256xf32>
    %22 = arith.mulf %12, %21 : vector<8x256xf32>
    %c0_11 = arith.constant 0 : index
    %c0_12 = arith.constant 0 : index
    %23 = vector.load %arg4[%c0_11, %c0_12] : memref<8x1xf32, #tpu.memory_space<vmem>>, vector<8x1xf32>
    %24 = vector.broadcast %23 : vector<8x1xf32> to vector<8x256xf32>
    %25 = arith.mulf %22, %24 : vector<8x256xf32>
    %c0_13 = arith.constant 0 : index
    %c0_14 = arith.constant 0 : index
    %26 = vector.load %arg5[%c0_13, %c0_14] : memref<8x1xf32, #tpu.memory_space<vmem>>, vector<8x1xf32>
    %27 = vector.broadcast %26 : vector<8x1xf32> to vector<8x256xf32>
    %28 = arith.addf %25, %27 : vector<8x256xf32>
    %c0_15 = arith.constant 0 : index
    %c0_16 = arith.constant 0 : index
    %c0_17 = arith.constant 0 : index
    %29 = vector.load %arg6[%c0_15, %c0_16, %c0_17] : memref<1x8x256xf32, #tpu.memory_space<vmem>>, vector<1x8x256xf32>
    %30 = vector.shape_cast %29 : vector<1x8x256xf32> to vector<8x256xf32>
    %31 = arith.addf %28, %30 : vector<8x256xf32>
    %cst_18 = arith.constant 0.000000e+00 : f32
    %32 = vector.broadcast %cst_18 : f32 to vector<8x256xf32>
    %33 = arith.maximumf %31, %32 : vector<8x256xf32>
    %c0_19 = arith.constant 0 : index
    %c0_20 = arith.constant 0 : index
    %c0_21 = arith.constant 0 : index
    %34 = vector.load %arg7[%c0_19, %c0_20, %c0_21] : memref<1x8x256xf32, #tpu.memory_space<vmem>>, vector<1x8x256xf32>
    %35 = vector.shape_cast %34 : vector<1x8x256xf32> to vector<8x256xf32>
    %36 = vector.shape_cast %33 : vector<8x256xf32> to vector<1x8x256xf32>
    tpu.vector_store %arg7[%c0_19, %c0_20, %c0_21], %36 {strides = array<i32>} : memref<1x8x256xf32, #tpu.memory_space<vmem>>, vector<1x8x256xf32>,
    return
  }
  func.func @transform_0(%arg0: i32) -> (i32, i32, i32) {
    %c0_i32 = arith.constant 0 : i32
    %c0_i32_0 = arith.constant 0 : i32
    %c0_i32_1 = arith.constant 0 : i32
    return %arg0, %c0_i32, %c0_i32_0 : i32, i32, i32
  }
  func.func @transform_1(%arg0: i32) -> (i32, i32) {
    %c0_i32 = arith.constant 0 : i32
    %c0_i32_0 = arith.constant 0 : i32
    %c0_i32_1 = arith.constant 0 : i32
    return %c0_i32, %c0_i32_0 : i32, i32
  }
  func.func @transform_2(%arg0: i32) -> (i32, i32) {
    %c0_i32 = arith.constant 0 : i32
    %c0_i32_0 = arith.constant 0 : i32
    %c0_i32_1 = arith.constant 0 : i32
    return %c0_i32, %c0_i32_0 : i32, i32
  }
  func.func @transform_3(%arg0: i32) -> (i32, i32) {
    %c0_i32 = arith.constant 0 : i32
    %c0_i32_0 = arith.constant 0 : i32
    %c0_i32_1 = arith.constant 0 : i32
    return %c0_i32, %c0_i32_0 : i32, i32
  }
  func.func @transform_4(%arg0: i32) -> (i32, i32) {
    %c0_i32 = arith.constant 0 : i32
    %c0_i32_0 = arith.constant 0 : i32
    %c0_i32_1 = arith.constant 0 : i32
    return %c0_i32, %c0_i32_0 : i32, i32
  }
  func.func @transform_5(%arg0: i32) -> (i32, i32, i32) {
    %c0_i32 = arith.constant 0 : i32
    %c0_i32_0 = arith.constant 0 : i32
    %c0_i32_1 = arith.constant 0 : i32
    return %arg0, %c0_i32, %c0_i32_0 : i32, i32, i32
  }
  func.func @transform_6(%arg0: i32) -> (i32, i32, i32) {
    %c0_i32 = arith.constant 0 : i32
    %c0_i32_0 = arith.constant 0 : i32
    %c0_i32_1 = arith.constant 0 : i32
    return %arg0, %c0_i32, %c0_i32_0 : i32, i32, i32
  }
}

module attributes {stable_mosaic.version = 11 : i64} {
  func.func @_conv_fused_kernel(%arg0: i32, %arg1: memref<1x16x256xbf16, #tpu.memory_space<vmem>>, %arg2: memref<8x16xbf16, #tpu.memory_space<vmem>>, %arg3: memref<8x1xf32, #tpu.memory_space<vmem>>, %arg4: memref<8x1xf32, #tpu.memory_space<vmem>>, %arg5: memref<8x1xf32, #tpu.memory_space<vmem>>, %arg6: memref<1x8x256xf32, #tpu.memory_space<vmem>>, %arg7: memref<1x2xf32, #tpu.memory_space<vmem>>, %arg8: memref<1x8x256xf32, #tpu.memory_space<vmem>>) attributes {dimension_semantics = [#tpu.dimension_semantics<parallel>], iteration_bounds = array<i64: 4>, scalar_prefetch = 0 : i64, scratch_operands = 0 : i64, tpu.core_type = #tpu.core_type<tc>, window_params = [{transform_indices = @transform_0, window_bounds = array<i64: 1, 16, 256>}, {pipeline_mode = #tpu.pipeline_mode<synchronous>, transform_indices = @transform_1, window_bounds = array<i64: 8, 16>}, {pipeline_mode = #tpu.pipeline_mode<synchronous>, transform_indices = @transform_2, window_bounds = array<i64: 8, 1>}, {pipeline_mode = #tpu.pipeline_mode<synchronous>, transform_indices = @transform_3, window_bounds = array<i64: 8, 1>}, {pipeline_mode = #tpu.pipeline_mode<synchronous>, transform_indices = @transform_4, window_bounds = array<i64: 8, 1>}, {transform_indices = @transform_5, window_bounds = array<i64: 1, 8, 256>}, {pipeline_mode = #tpu.pipeline_mode<synchronous>, transform_indices = @transform_6, window_bounds = array<i64: 1, 2>}, {transform_indices = @transform_7, window_bounds = array<i64: 1, 8, 256>}]} {
    %c0 = arith.constant 0 : index
    %c0_0 = arith.constant 0 : index
    %0 = vector.load %arg2[%c0, %c0_0] : memref<8x16xbf16, #tpu.memory_space<vmem>>, vector<8x16xbf16>
    %c0_1 = arith.constant 0 : index
    %c0_2 = arith.constant 0 : index
    %c0_3 = arith.constant 0 : index
    %1 = vector.load %arg1[%c0_1, %c0_2, %c0_3] : memref<1x16x256xbf16, #tpu.memory_space<vmem>>, vector<1x16x256xbf16>
    %2 = vector.shape_cast %1 : vector<1x16x256xbf16> to vector<16x256xbf16>
    %cst = arith.constant dense<0.000000e+00> : vector<8x256xf32>
    %3 = tpu.matmul %0, %2, %cst {dimension_numbers = #tpu.dot_dimension_numbers<[1], [0], [0], [1], [0, 0, 1, 1], [], []>} : vector<8x16xbf16>, vector<16x256xbf16>, vector<8x256xf32> -> vector<8x256xf32>
    %c0_4 = arith.constant 0 : index
    %c0_5 = arith.constant 0 : index
    %4 = vector.load %arg3[%c0_4, %c0_5] : memref<8x1xf32, #tpu.memory_space<vmem>>, vector<8x1xf32>
    %5 = vector.broadcast %4 : vector<8x1xf32> to vector<8x256xf32>
    %6 = arith.addf %3, %5 : vector<8x256xf32>
    %cst_6 = arith.constant dense<0.000000e+00> : vector<8xf32>
    %7 = vector.multi_reduction <add>, %6, %cst_6 [1] : vector<8x256xf32> to vector<8xf32>
    %8 = vector.shape_cast %7 : vector<8xf32> to vector<8x1xf32>
    %cst_7 = arith.constant 2.560000e+02 : f32
    %9 = vector.broadcast %cst_7 : f32 to vector<8x1xf32>
    %10 = arith.divf %8, %9 : vector<8x1xf32>
    %11 = vector.broadcast %10 : vector<8x1xf32> to vector<8x256xf32>
    %12 = arith.subf %6, %11 : vector<8x256xf32>
    %13 = arith.mulf %12, %12 : vector<8x256xf32>
    %cst_8 = arith.constant dense<0.000000e+00> : vector<8xf32>
    %14 = vector.multi_reduction <add>, %13, %cst_8 [1] : vector<8x256xf32> to vector<8xf32>
    %15 = vector.shape_cast %14 : vector<8xf32> to vector<8x1xf32>
    %cst_9 = arith.constant 2.560000e+02 : f32
    %16 = vector.broadcast %cst_9 : f32 to vector<8x1xf32>
    %17 = arith.divf %15, %16 : vector<8x1xf32>
    %cst_10 = arith.constant 9.99999974E-6 : f32
    %18 = vector.broadcast %cst_10 : f32 to vector<8x1xf32>
    %19 = arith.addf %17, %18 : vector<8x1xf32>
    %20 = math.rsqrt %19 : vector<8x1xf32>
    %21 = vector.broadcast %20 : vector<8x1xf32> to vector<8x256xf32>
    %22 = arith.mulf %12, %21 : vector<8x256xf32>
    %c0_11 = arith.constant 0 : index
    %c0_12 = arith.constant 0 : index
    %23 = vector.load %arg4[%c0_11, %c0_12] : memref<8x1xf32, #tpu.memory_space<vmem>>, vector<8x1xf32>
    %24 = vector.broadcast %23 : vector<8x1xf32> to vector<8x256xf32>
    %25 = arith.mulf %22, %24 : vector<8x256xf32>
    %c0_13 = arith.constant 0 : index
    %c0_14 = arith.constant 0 : index
    %26 = vector.load %arg5[%c0_13, %c0_14] : memref<8x1xf32, #tpu.memory_space<vmem>>, vector<8x1xf32>
    %27 = vector.broadcast %26 : vector<8x1xf32> to vector<8x256xf32>
    %28 = arith.addf %25, %27 : vector<8x256xf32>
    %cst_15 = arith.constant 0.000000e+00 : f32
    %29 = vector.broadcast %cst_15 : f32 to vector<8x256xf32>
    %30 = arith.maximumf %28, %29 : vector<8x256xf32>
    %c0_16 = arith.constant 0 : index
    %c0_17 = arith.constant 0 : index
    %c0_18 = arith.constant 0 : index
    %31 = vector.load %arg6[%c0_16, %c0_17, %c0_18] : memref<1x8x256xf32, #tpu.memory_space<vmem>>, vector<1x8x256xf32>
    %32 = vector.shape_cast %31 : vector<1x8x256xf32> to vector<8x256xf32>
    %c0_19 = arith.constant 0 : index
    %c0_20 = arith.constant 0 : index
    %33 = vector.load %arg7[%c0_19, %c0_20] : memref<1x2xf32, #tpu.memory_space<vmem>>, vector<1x1xf32>
    %34 = vector.broadcast %33 : vector<1x1xf32> to vector<8x256xf32>
    %35 = arith.mulf %34, %30 : vector<8x256xf32>
    %c0_21 = arith.constant 0 : index
    %c1 = arith.constant 1 : index
    %36 = vector.load %arg7[%c0_21, %c1] : memref<1x2xf32, #tpu.memory_space<vmem>>, vector<1x1xf32>
    %37 = vector.broadcast %36 : vector<1x1xf32> to vector<8x256xf32>
    %38 = arith.mulf %37, %32 : vector<8x256xf32>
    %39 = arith.addf %35, %38 : vector<8x256xf32>
    %c0_22 = arith.constant 0 : index
    %c0_23 = arith.constant 0 : index
    %c0_24 = arith.constant 0 : index
    %40 = vector.load %arg8[%c0_22, %c0_23, %c0_24] : memref<1x8x256xf32, #tpu.memory_space<vmem>>, vector<1x8x256xf32>
    %41 = vector.shape_cast %40 : vector<1x8x256xf32> to vector<8x256xf32>
    %42 = vector.shape_cast %39 : vector<8x256xf32> to vector<1x8x256xf32>
    tpu.vector_store %arg8[%c0_22, %c0_23, %c0_24], %42 {strides = array<i32>} : memref<1x8x256xf32, #tpu.memory_space<vmem>>, vector<1x8x256xf32>,
    return
  }
  func.func @transform_0(%arg0: i32) -> (i32, i32, i32) {
    %c0_i32 = arith.constant 0 : i32
    %c0_i32_0 = arith.constant 0 : i32
    %c0_i32_1 = arith.constant 0 : i32
    return %arg0, %c0_i32, %c0_i32_0 : i32, i32, i32
  }
  func.func @transform_1(%arg0: i32) -> (i32, i32) {
    %c0_i32 = arith.constant 0 : i32
    %c0_i32_0 = arith.constant 0 : i32
    %c0_i32_1 = arith.constant 0 : i32
    return %c0_i32, %c0_i32_0 : i32, i32
  }
  func.func @transform_2(%arg0: i32) -> (i32, i32) {
    %c0_i32 = arith.constant 0 : i32
    %c0_i32_0 = arith.constant 0 : i32
    %c0_i32_1 = arith.constant 0 : i32
    return %c0_i32, %c0_i32_0 : i32, i32
  }
  func.func @transform_3(%arg0: i32) -> (i32, i32) {
    %c0_i32 = arith.constant 0 : i32
    %c0_i32_0 = arith.constant 0 : i32
    %c0_i32_1 = arith.constant 0 : i32
    return %c0_i32, %c0_i32_0 : i32, i32
  }
  func.func @transform_4(%arg0: i32) -> (i32, i32) {
    %c0_i32 = arith.constant 0 : i32
    %c0_i32_0 = arith.constant 0 : i32
    %c0_i32_1 = arith.constant 0 : i32
    return %c0_i32, %c0_i32_0 : i32, i32
  }
  func.func @transform_5(%arg0: i32) -> (i32, i32, i32) {
    %c0_i32 = arith.constant 0 : i32
    %c0_i32_0 = arith.constant 0 : i32
    %c0_i32_1 = arith.constant 0 : i32
    return %arg0, %c0_i32, %c0_i32_0 : i32, i32, i32
  }
  func.func @transform_6(%arg0: i32) -> (i32, i32) {
    %c0_i32 = arith.constant 0 : i32
    %c0_i32_0 = arith.constant 0 : i32
    %c0_i32_1 = arith.constant 0 : i32
    return %c0_i32, %c0_i32_0 : i32, i32
  }
  func.func @transform_7(%arg0: i32) -> (i32, i32, i32) {
    %c0_i32 = arith.constant 0 : i32
    %c0_i32_0 = arith.constant 0 : i32
    %c0_i32_1 = arith.constant 0 : i32
    return %arg0, %c0_i32, %c0_i32_0 : i32, i32, i32
  }
}

module attributes {stable_mosaic.version = 11 : i64} {
  func.func @_sca_kernel(%arg0: i32, %arg1: memref<1x8x256xf32, #tpu.memory_space<vmem>>, %arg2: memref<1x8x256xf32, #tpu.memory_space<vmem>>, %arg3: memref<8x16xbf16, #tpu.memory_space<vmem>>, %arg4: memref<8x1xf32, #tpu.memory_space<vmem>>, %arg5: memref<2x8xbf16, #tpu.memory_space<vmem>>, %arg6: memref<2x1xf32, #tpu.memory_space<vmem>>, %arg7: memref<1x8x256xf32, #tpu.memory_space<vmem>>, %arg8: memref<1x8x256xf32, #tpu.memory_space<vmem>>) attributes {dimension_semantics = [#tpu.dimension_semantics<parallel>], iteration_bounds = array<i64: 2>, scalar_prefetch = 0 : i64, scratch_operands = 0 : i64, tpu.core_type = #tpu.core_type<tc>, window_params = [{transform_indices = @transform_0, window_bounds = array<i64: 1, 8, 256>}, {transform_indices = @transform_1, window_bounds = array<i64: 1, 8, 256>}, {pipeline_mode = #tpu.pipeline_mode<synchronous>, transform_indices = @transform_2, window_bounds = array<i64: 8, 16>}, {pipeline_mode = #tpu.pipeline_mode<synchronous>, transform_indices = @transform_3, window_bounds = array<i64: 8, 1>}, {pipeline_mode = #tpu.pipeline_mode<synchronous>, transform_indices = @transform_4, window_bounds = array<i64: 2, 8>}, {pipeline_mode = #tpu.pipeline_mode<synchronous>, transform_indices = @transform_5, window_bounds = array<i64: 2, 1>}, {transform_indices = @transform_6, window_bounds = array<i64: 1, 8, 256>}, {transform_indices = @transform_7, window_bounds = array<i64: 1, 8, 256>}]} {
    %c0 = arith.constant 0 : index
    %c0_0 = arith.constant 0 : index
    %c0_1 = arith.constant 0 : index
    %0 = vector.load %arg1[%c0, %c0_0, %c0_1] : memref<1x8x256xf32, #tpu.memory_space<vmem>>, vector<1x8x256xf32>
    %1 = vector.shape_cast %0 : vector<1x8x256xf32> to vector<8x256xf32>
    %c0_2 = arith.constant 0 : index
    %c0_3 = arith.constant 0 : index
    %c0_4 = arith.constant 0 : index
    %2 = vector.load %arg2[%c0_2, %c0_3, %c0_4] : memref<1x8x256xf32, #tpu.memory_space<vmem>>, vector<1x8x256xf32>
    %3 = vector.shape_cast %2 : vector<1x8x256xf32> to vector<8x256xf32>
    %4 = tpu.concatenate %1, %3 in 0 : vector<8x256xf32>, vector<8x256xf32> -> vector<16x256xf32>
    %5 = arith.truncf %4 : vector<16x256xf32> to vector<16x256xbf16>
    %c0_5 = arith.constant 0 : index
    %c0_6 = arith.constant 0 : index
    %6 = vector.load %arg3[%c0_5, %c0_6] : memref<8x16xbf16, #tpu.memory_space<vmem>>, vector<8x16xbf16>
    %cst = arith.constant dense<0.000000e+00> : vector<8x256xf32>
    %7 = tpu.matmul %6, %5, %cst {dimension_numbers = #tpu.dot_dimension_numbers<[1], [0], [0], [1], [0, 0, 1, 1], [], []>} : vector<8x16xbf16>, vector<16x256xbf16>, vector<8x256xf32> -> vector<8x256xf32>
    %c0_7 = arith.constant 0 : index
    %c0_8 = arith.constant 0 : index
    %8 = vector.load %arg4[%c0_7, %c0_8] : memref<8x1xf32, #tpu.memory_space<vmem>>, vector<8x1xf32>
    %9 = vector.broadcast %8 : vector<8x1xf32> to vector<8x256xf32>
    %10 = arith.addf %7, %9 : vector<8x256xf32>
    %cst_9 = arith.constant 0.000000e+00 : f32
    %11 = vector.broadcast %cst_9 : f32 to vector<8x256xf32>
    %12 = arith.maximumf %10, %11 : vector<8x256xf32>
    %13 = arith.truncf %12 : vector<8x256xf32> to vector<8x256xbf16>
    %c0_10 = arith.constant 0 : index
    %c0_11 = arith.constant 0 : index
    %14 = vector.load %arg5[%c0_10, %c0_11] : memref<2x8xbf16, #tpu.memory_space<vmem>>, vector<2x8xbf16>
    %cst_12 = arith.constant dense<0.000000e+00> : vector<2x256xf32>
    %15 = tpu.matmul %14, %13, %cst_12 {dimension_numbers = #tpu.dot_dimension_numbers<[1], [0], [0], [1], [0, 0, 1, 1], [], []>} : vector<2x8xbf16>, vector<8x256xbf16>, vector<2x256xf32> -> vector<2x256xf32>
    %c0_13 = arith.constant 0 : index
    %c0_14 = arith.constant 0 : index
    %16 = vector.load %arg6[%c0_13, %c0_14] : memref<2x1xf32, #tpu.memory_space<vmem>>, vector<2x1xf32>
    %17 = vector.broadcast %16 : vector<2x1xf32> to vector<2x256xf32>
    %18 = arith.addf %15, %17 : vector<2x256xf32>
    %19 = arith.negf %18 : vector<2x256xf32>
    %20 = math.exp %19 : vector<2x256xf32>
    %cst_15 = arith.constant 1.000000e+00 : f32
    %21 = vector.broadcast %cst_15 : f32 to vector<2x256xf32>
    %22 = arith.addf %21, %20 : vector<2x256xf32>
    %23 = arith.divf %21, %22 : vector<2x256xf32>
    %24 = vector.extract_strided_slice %23 {offsets = [0, 0], sizes = [1, 256], strides = [1, 1]} : vector<2x256xf32> to vector<1x256xf32>
    %25 = vector.broadcast %24 : vector<1x256xf32> to vector<8x256xf32>
    %26 = arith.mulf %1, %25 : vector<8x256xf32>
    %c0_16 = arith.constant 0 : index
    %c0_17 = arith.constant 0 : index
    %c0_18 = arith.constant 0 : index
    %27 = vector.load %arg7[%c0_16, %c0_17, %c0_18] : memref<1x8x256xf32, #tpu.memory_space<vmem>>, vector<1x8x256xf32>
    %28 = vector.shape_cast %27 : vector<1x8x256xf32> to vector<8x256xf32>
    %29 = vector.shape_cast %26 : vector<8x256xf32> to vector<1x8x256xf32>
    tpu.vector_store %arg7[%c0_16, %c0_17, %c0_18], %29 {strides = array<i32>} : memref<1x8x256xf32, #tpu.memory_space<vmem>>, vector<1x8x256xf32>,
    %30 = vector.extract_strided_slice %23 {offsets = [1, 0], sizes = [1, 256], strides = [1, 1]} : vector<2x256xf32> to vector<1x256xf32>
    %31 = vector.broadcast %30 : vector<1x256xf32> to vector<8x256xf32>
    %32 = arith.mulf %3, %31 : vector<8x256xf32>
    %c0_19 = arith.constant 0 : index
    %c0_20 = arith.constant 0 : index
    %c0_21 = arith.constant 0 : index
    %33 = vector.load %arg8[%c0_19, %c0_20, %c0_21] : memref<1x8x256xf32, #tpu.memory_space<vmem>>, vector<1x8x256xf32>
    %34 = vector.shape_cast %33 : vector<1x8x256xf32> to vector<8x256xf32>
    %35 = vector.shape_cast %32 : vector<8x256xf32> to vector<1x8x256xf32>
    tpu.vector_store %arg8[%c0_19, %c0_20, %c0_21], %35 {strides = array<i32>} : memref<1x8x256xf32, #tpu.memory_space<vmem>>, vector<1x8x256xf32>,
    return
  }
  func.func @transform_0(%arg0: i32) -> (i32, i32, i32) {
    %c0_i32 = arith.constant 0 : i32
    %c0_i32_0 = arith.constant 0 : i32
    %c0_i32_1 = arith.constant 0 : i32
    return %arg0, %c0_i32, %c0_i32_0 : i32, i32, i32
  }
  func.func @transform_1(%arg0: i32) -> (i32, i32, i32) {
    %c0_i32 = arith.constant 0 : i32
    %c0_i32_0 = arith.constant 0 : i32
    %c0_i32_1 = arith.constant 0 : i32
    return %arg0, %c0_i32, %c0_i32_0 : i32, i32, i32
  }
  func.func @transform_2(%arg0: i32) -> (i32, i32) {
    %c0_i32 = arith.constant 0 : i32
    %c0_i32_0 = arith.constant 0 : i32
    %c0_i32_1 = arith.constant 0 : i32
    return %c0_i32, %c0_i32_0 : i32, i32
  }
  func.func @transform_3(%arg0: i32) -> (i32, i32) {
    %c0_i32 = arith.constant 0 : i32
    %c0_i32_0 = arith.constant 0 : i32
    %c0_i32_1 = arith.constant 0 : i32
    return %c0_i32, %c0_i32_0 : i32, i32
  }
  func.func @transform_4(%arg0: i32) -> (i32, i32) {
    %c0_i32 = arith.constant 0 : i32
    %c0_i32_0 = arith.constant 0 : i32
    %c0_i32_1 = arith.constant 0 : i32
    return %c0_i32, %c0_i32_0 : i32, i32
  }
  func.func @transform_5(%arg0: i32) -> (i32, i32) {
    %c0_i32 = arith.constant 0 : i32
    %c0_i32_0 = arith.constant 0 : i32
    %c0_i32_1 = arith.constant 0 : i32
    return %c0_i32, %c0_i32_0 : i32, i32
  }
  func.func @transform_6(%arg0: i32) -> (i32, i32, i32) {
    %c0_i32 = arith.constant 0 : i32
    %c0_i32_0 = arith.constant 0 : i32
    %c0_i32_1 = arith.constant 0 : i32
    return %arg0, %c0_i32, %c0_i32_0 : i32, i32, i32
  }
  func.func @transform_7(%arg0: i32) -> (i32, i32, i32) {
    %c0_i32 = arith.constant 0 : i32
    %c0_i32_0 = arith.constant 0 : i32
    %c0_i32_1 = arith.constant 0 : i32
    return %arg0, %c0_i32, %c0_i32_0 : i32, i32, i32
  }
}

module attributes {stable_mosaic.version = 11 : i64} {
  func.func @_conv_tiled_kernel(%arg0: i32, %arg1: i32, %arg2: memref<1x72x256xbf16, #tpu.memory_space<vmem>>, %arg3: memref<8x72xbf16, #tpu.memory_space<vmem>>, %arg4: memref<8x1xf32, #tpu.memory_space<vmem>>, %arg5: memref<1x8x256xf32, #tpu.memory_space<vmem>>) attributes {dimension_semantics = [#tpu.dimension_semantics<parallel>, #tpu.dimension_semantics<parallel>], iteration_bounds = array<i64: 4, 1>, scalar_prefetch = 0 : i64, scratch_operands = 0 : i64, tpu.core_type = #tpu.core_type<tc>, window_params = [{transform_indices = @transform_0, window_bounds = array<i64: 1, 72, 256>}, {pipeline_mode = #tpu.pipeline_mode<synchronous>, transform_indices = @transform_1, window_bounds = array<i64: 8, 72>}, {pipeline_mode = #tpu.pipeline_mode<synchronous>, transform_indices = @transform_2, window_bounds = array<i64: 8, 1>}, {transform_indices = @transform_3, window_bounds = array<i64: 1, 8, 256>}]} {
    %c0 = arith.constant 0 : index
    %c0_0 = arith.constant 0 : index
    %0 = vector.load %arg3[%c0, %c0_0] : memref<8x72xbf16, #tpu.memory_space<vmem>>, vector<8x72xbf16>
    %c0_1 = arith.constant 0 : index
    %c0_2 = arith.constant 0 : index
    %c0_3 = arith.constant 0 : index
    %1 = vector.load %arg2[%c0_1, %c0_2, %c0_3] : memref<1x72x256xbf16, #tpu.memory_space<vmem>>, vector<1x72x256xbf16>
    %2 = vector.shape_cast %1 : vector<1x72x256xbf16> to vector<72x256xbf16>
    %cst = arith.constant dense<0.000000e+00> : vector<8x256xf32>
    %3 = tpu.matmul %0, %2, %cst {dimension_numbers = #tpu.dot_dimension_numbers<[1], [0], [0], [1], [0, 0, 1, 1], [], []>} : vector<8x72xbf16>, vector<72x256xbf16>, vector<8x256xf32> -> vector<8x256xf32>
    %c0_4 = arith.constant 0 : index
    %c0_5 = arith.constant 0 : index
    %4 = vector.load %arg4[%c0_4, %c0_5] : memref<8x1xf32, #tpu.memory_space<vmem>>, vector<8x1xf32>
    %5 = vector.broadcast %4 : vector<8x1xf32> to vector<8x256xf32>
    %6 = arith.addf %3, %5 : vector<8x256xf32>
    %cst_6 = arith.constant 0.000000e+00 : f32
    %7 = vector.broadcast %cst_6 : f32 to vector<8x256xf32>
    %8 = arith.maximumf %6, %7 : vector<8x256xf32>
    %c0_7 = arith.constant 0 : index
    %c0_8 = arith.constant 0 : index
    %c0_9 = arith.constant 0 : index
    %9 = vector.load %arg5[%c0_7, %c0_8, %c0_9] : memref<1x8x256xf32, #tpu.memory_space<vmem>>, vector<1x8x256xf32>
    %10 = vector.shape_cast %9 : vector<1x8x256xf32> to vector<8x256xf32>
    %11 = vector.shape_cast %8 : vector<8x256xf32> to vector<1x8x256xf32>
    tpu.vector_store %arg5[%c0_7, %c0_8, %c0_9], %11 {strides = array<i32>} : memref<1x8x256xf32, #tpu.memory_space<vmem>>, vector<1x8x256xf32>,
    return
  }
  func.func @transform_0(%arg0: i32, %arg1: i32) -> (i32, i32, i32) {
    %c0_i32 = arith.constant 0 : i32
    %c0_i32_0 = arith.constant 0 : i32
    return %arg0, %c0_i32, %arg1 : i32, i32, i32
  }
  func.func @transform_1(%arg0: i32, %arg1: i32) -> (i32, i32) {
    %c0_i32 = arith.constant 0 : i32
    %c0_i32_0 = arith.constant 0 : i32
    %c0_i32_1 = arith.constant 0 : i32
    return %c0_i32, %c0_i32_0 : i32, i32
  }
  func.func @transform_2(%arg0: i32, %arg1: i32) -> (i32, i32) {
    %c0_i32 = arith.constant 0 : i32
    %c0_i32_0 = arith.constant 0 : i32
    %c0_i32_1 = arith.constant 0 : i32
    return %c0_i32, %c0_i32_0 : i32, i32
  }
  func.func @transform_3(%arg0: i32, %arg1: i32) -> (i32, i32, i32) {
    %c0_i32 = arith.constant 0 : i32
    %c0_i32_0 = arith.constant 0 : i32
    return %arg0, %c0_i32, %arg1 : i32, i32, i32
  }
}

module attributes {stable_mosaic.version = 11 : i64} {
  func.func @_conv_tiled_kernel(%arg0: i32, %arg1: i32, %arg2: memref<1x16x256xbf16, #tpu.memory_space<vmem>>, %arg3: memref<8x16xbf16, #tpu.memory_space<vmem>>, %arg4: memref<8x1xf32, #tpu.memory_space<vmem>>, %arg5: memref<1x8x256xf32, #tpu.memory_space<vmem>>) attributes {dimension_semantics = [#tpu.dimension_semantics<parallel>, #tpu.dimension_semantics<parallel>], iteration_bounds = array<i64: 4, 1>, scalar_prefetch = 0 : i64, scratch_operands = 0 : i64, tpu.core_type = #tpu.core_type<tc>, window_params = [{transform_indices = @transform_0, window_bounds = array<i64: 1, 16, 256>}, {pipeline_mode = #tpu.pipeline_mode<synchronous>, transform_indices = @transform_1, window_bounds = array<i64: 8, 16>}, {pipeline_mode = #tpu.pipeline_mode<synchronous>, transform_indices = @transform_2, window_bounds = array<i64: 8, 1>}, {transform_indices = @transform_3, window_bounds = array<i64: 1, 8, 256>}]} {
    %c0 = arith.constant 0 : index
    %c0_0 = arith.constant 0 : index
    %0 = vector.load %arg3[%c0, %c0_0] : memref<8x16xbf16, #tpu.memory_space<vmem>>, vector<8x16xbf16>
    %c0_1 = arith.constant 0 : index
    %c0_2 = arith.constant 0 : index
    %c0_3 = arith.constant 0 : index
    %1 = vector.load %arg2[%c0_1, %c0_2, %c0_3] : memref<1x16x256xbf16, #tpu.memory_space<vmem>>, vector<1x16x256xbf16>
    %2 = vector.shape_cast %1 : vector<1x16x256xbf16> to vector<16x256xbf16>
    %cst = arith.constant dense<0.000000e+00> : vector<8x256xf32>
    %3 = tpu.matmul %0, %2, %cst {dimension_numbers = #tpu.dot_dimension_numbers<[1], [0], [0], [1], [0, 0, 1, 1], [], []>} : vector<8x16xbf16>, vector<16x256xbf16>, vector<8x256xf32> -> vector<8x256xf32>
    %c0_4 = arith.constant 0 : index
    %c0_5 = arith.constant 0 : index
    %4 = vector.load %arg4[%c0_4, %c0_5] : memref<8x1xf32, #tpu.memory_space<vmem>>, vector<8x1xf32>
    %5 = vector.broadcast %4 : vector<8x1xf32> to vector<8x256xf32>
    %6 = arith.addf %3, %5 : vector<8x256xf32>
    %c0_6 = arith.constant 0 : index
    %c0_7 = arith.constant 0 : index
    %c0_8 = arith.constant 0 : index
    %7 = vector.load %arg5[%c0_6, %c0_7, %c0_8] : memref<1x8x256xf32, #tpu.memory_space<vmem>>, vector<1x8x256xf32>
    %8 = vector.shape_cast %7 : vector<1x8x256xf32> to vector<8x256xf32>
    %9 = vector.shape_cast %6 : vector<8x256xf32> to vector<1x8x256xf32>
    tpu.vector_store %arg5[%c0_6, %c0_7, %c0_8], %9 {strides = array<i32>} : memref<1x8x256xf32, #tpu.memory_space<vmem>>, vector<1x8x256xf32>,
    return
  }
  func.func @transform_0(%arg0: i32, %arg1: i32) -> (i32, i32, i32) {
    %c0_i32 = arith.constant 0 : i32
    %c0_i32_0 = arith.constant 0 : i32
    return %arg0, %c0_i32, %arg1 : i32, i32, i32
  }
  func.func @transform_1(%arg0: i32, %arg1: i32) -> (i32, i32) {
    %c0_i32 = arith.constant 0 : i32
    %c0_i32_0 = arith.constant 0 : i32
    %c0_i32_1 = arith.constant 0 : i32
    return %c0_i32, %c0_i32_0 : i32, i32
  }
  func.func @transform_2(%arg0: i32, %arg1: i32) -> (i32, i32) {
    %c0_i32 = arith.constant 0 : i32
    %c0_i32_0 = arith.constant 0 : i32
    %c0_i32_1 = arith.constant 0 : i32
    return %c0_i32, %c0_i32_0 : i32, i32
  }
  func.func @transform_3(%arg0: i32, %arg1: i32) -> (i32, i32, i32) {
    %c0_i32 = arith.constant 0 : i32
    %c0_i32_0 = arith.constant 0 : i32
    return %arg0, %c0_i32, %arg1 : i32, i32, i32
  }
}

module attributes {stable_mosaic.version = 11 : i64} {
  func.func @_conv_fused_kernel(%arg0: i32, %arg1: memref<1x144x256xbf16, #tpu.memory_space<vmem>>, %arg2: memref<8x144xbf16, #tpu.memory_space<vmem>>, %arg3: memref<8x1xf32, #tpu.memory_space<vmem>>, %arg4: memref<8x1xf32, #tpu.memory_space<vmem>>, %arg5: memref<8x1xf32, #tpu.memory_space<vmem>>, %arg6: memref<1x8x256xf32, #tpu.memory_space<vmem>>) attributes {dimension_semantics = [#tpu.dimension_semantics<parallel>], iteration_bounds = array<i64: 4>, scalar_prefetch = 0 : i64, scratch_operands = 0 : i64, tpu.core_type = #tpu.core_type<tc>, window_params = [{transform_indices = @transform_0, window_bounds = array<i64: 1, 144, 256>}, {pipeline_mode = #tpu.pipeline_mode<synchronous>, transform_indices = @transform_1, window_bounds = array<i64: 8, 144>}, {pipeline_mode = #tpu.pipeline_mode<synchronous>, transform_indices = @transform_2, window_bounds = array<i64: 8, 1>}, {pipeline_mode = #tpu.pipeline_mode<synchronous>, transform_indices = @transform_3, window_bounds = array<i64: 8, 1>}, {pipeline_mode = #tpu.pipeline_mode<synchronous>, transform_indices = @transform_4, window_bounds = array<i64: 8, 1>}, {transform_indices = @transform_5, window_bounds = array<i64: 1, 8, 256>}]} {
    %c0 = arith.constant 0 : index
    %c0_0 = arith.constant 0 : index
    %0 = vector.load %arg2[%c0, %c0_0] : memref<8x144xbf16, #tpu.memory_space<vmem>>, vector<8x144xbf16>
    %c0_1 = arith.constant 0 : index
    %c0_2 = arith.constant 0 : index
    %c0_3 = arith.constant 0 : index
    %1 = vector.load %arg1[%c0_1, %c0_2, %c0_3] : memref<1x144x256xbf16, #tpu.memory_space<vmem>>, vector<1x144x256xbf16>
    %2 = vector.shape_cast %1 : vector<1x144x256xbf16> to vector<144x256xbf16>
    %cst = arith.constant dense<0.000000e+00> : vector<8x256xf32>
    %3 = tpu.matmul %0, %2, %cst {dimension_numbers = #tpu.dot_dimension_numbers<[1], [0], [0], [1], [0, 0, 1, 1], [], []>} : vector<8x144xbf16>, vector<144x256xbf16>, vector<8x256xf32> -> vector<8x256xf32>
    %c0_4 = arith.constant 0 : index
    %c0_5 = arith.constant 0 : index
    %4 = vector.load %arg3[%c0_4, %c0_5] : memref<8x1xf32, #tpu.memory_space<vmem>>, vector<8x1xf32>
    %5 = vector.broadcast %4 : vector<8x1xf32> to vector<8x256xf32>
    %6 = arith.addf %3, %5 : vector<8x256xf32>
    %cst_6 = arith.constant dense<0.000000e+00> : vector<8xf32>
    %7 = vector.multi_reduction <add>, %6, %cst_6 [1] : vector<8x256xf32> to vector<8xf32>
    %8 = vector.shape_cast %7 : vector<8xf32> to vector<8x1xf32>
    %cst_7 = arith.constant 2.560000e+02 : f32
    %9 = vector.broadcast %cst_7 : f32 to vector<8x1xf32>
    %10 = arith.divf %8, %9 : vector<8x1xf32>
    %11 = vector.broadcast %10 : vector<8x1xf32> to vector<8x256xf32>
    %12 = arith.subf %6, %11 : vector<8x256xf32>
    %13 = arith.mulf %12, %12 : vector<8x256xf32>
    %cst_8 = arith.constant dense<0.000000e+00> : vector<8xf32>
    %14 = vector.multi_reduction <add>, %13, %cst_8 [1] : vector<8x256xf32> to vector<8xf32>
    %15 = vector.shape_cast %14 : vector<8xf32> to vector<8x1xf32>
    %cst_9 = arith.constant 2.560000e+02 : f32
    %16 = vector.broadcast %cst_9 : f32 to vector<8x1xf32>
    %17 = arith.divf %15, %16 : vector<8x1xf32>
    %cst_10 = arith.constant 9.99999974E-6 : f32
    %18 = vector.broadcast %cst_10 : f32 to vector<8x1xf32>
    %19 = arith.addf %17, %18 : vector<8x1xf32>
    %20 = math.rsqrt %19 : vector<8x1xf32>
    %21 = vector.broadcast %20 : vector<8x1xf32> to vector<8x256xf32>
    %22 = arith.mulf %12, %21 : vector<8x256xf32>
    %c0_11 = arith.constant 0 : index
    %c0_12 = arith.constant 0 : index
    %23 = vector.load %arg4[%c0_11, %c0_12] : memref<8x1xf32, #tpu.memory_space<vmem>>, vector<8x1xf32>
    %24 = vector.broadcast %23 : vector<8x1xf32> to vector<8x256xf32>
    %25 = arith.mulf %22, %24 : vector<8x256xf32>
    %c0_13 = arith.constant 0 : index
    %c0_14 = arith.constant 0 : index
    %26 = vector.load %arg5[%c0_13, %c0_14] : memref<8x1xf32, #tpu.memory_space<vmem>>, vector<8x1xf32>
    %27 = vector.broadcast %26 : vector<8x1xf32> to vector<8x256xf32>
    %28 = arith.addf %25, %27 : vector<8x256xf32>
    %cst_15 = arith.constant 0.000000e+00 : f32
    %29 = vector.broadcast %cst_15 : f32 to vector<8x256xf32>
    %30 = arith.maximumf %28, %29 : vector<8x256xf32>
    %c0_16 = arith.constant 0 : index
    %c0_17 = arith.constant 0 : index
    %c0_18 = arith.constant 0 : index
    %31 = vector.load %arg6[%c0_16, %c0_17, %c0_18] : memref<1x8x256xf32, #tpu.memory_space<vmem>>, vector<1x8x256xf32>
    %32 = vector.shape_cast %31 : vector<1x8x256xf32> to vector<8x256xf32>
    %33 = vector.shape_cast %30 : vector<8x256xf32> to vector<1x8x256xf32>
    tpu.vector_store %arg6[%c0_16, %c0_17, %c0_18], %33 {strides = array<i32>} : memref<1x8x256xf32, #tpu.memory_space<vmem>>, vector<1x8x256xf32>,
    return
  }
  func.func @transform_0(%arg0: i32) -> (i32, i32, i32) {
    %c0_i32 = arith.constant 0 : i32
    %c0_i32_0 = arith.constant 0 : i32
    %c0_i32_1 = arith.constant 0 : i32
    return %arg0, %c0_i32, %c0_i32_0 : i32, i32, i32
  }
  func.func @transform_1(%arg0: i32) -> (i32, i32) {
    %c0_i32 = arith.constant 0 : i32
    %c0_i32_0 = arith.constant 0 : i32
    %c0_i32_1 = arith.constant 0 : i32
    return %c0_i32, %c0_i32_0 : i32, i32
  }
  func.func @transform_2(%arg0: i32) -> (i32, i32) {
    %c0_i32 = arith.constant 0 : i32
    %c0_i32_0 = arith.constant 0 : i32
    %c0_i32_1 = arith.constant 0 : i32
    return %c0_i32, %c0_i32_0 : i32, i32
  }
  func.func @transform_3(%arg0: i32) -> (i32, i32) {
    %c0_i32 = arith.constant 0 : i32
    %c0_i32_0 = arith.constant 0 : i32
    %c0_i32_1 = arith.constant 0 : i32
    return %c0_i32, %c0_i32_0 : i32, i32
  }
  func.func @transform_4(%arg0: i32) -> (i32, i32) {
    %c0_i32 = arith.constant 0 : i32
    %c0_i32_0 = arith.constant 0 : i32
    %c0_i32_1 = arith.constant 0 : i32
    return %c0_i32, %c0_i32_0 : i32, i32
  }
  func.func @transform_5(%arg0: i32) -> (i32, i32, i32) {
    %c0_i32 = arith.constant 0 : i32
    %c0_i32_0 = arith.constant 0 : i32
    %c0_i32_1 = arith.constant 0 : i32
    return %arg0, %c0_i32, %c0_i32_0 : i32, i32, i32
  }
}

module attributes {stable_mosaic.version = 11 : i64} {
  func.func @_kpn_kernel(%arg0: i32, %arg1: memref<1x9x256xf32, #tpu.memory_space<vmem>>, %arg2: memref<1x9x256xf32, #tpu.memory_space<vmem>>, %arg3: memref<9x9xbf16, #tpu.memory_space<vmem>>, %arg4: memref<9x1xf32, #tpu.memory_space<vmem>>, %arg5: memref<1x1x256xf32, #tpu.memory_space<vmem>>) attributes {dimension_semantics = [#tpu.dimension_semantics<parallel>], iteration_bounds = array<i64: 4>, scalar_prefetch = 0 : i64, scratch_operands = 0 : i64, tpu.core_type = #tpu.core_type<tc>, window_params = [{transform_indices = @transform_0, window_bounds = array<i64: 1, 9, 256>}, {transform_indices = @transform_1, window_bounds = array<i64: 1, 9, 256>}, {pipeline_mode = #tpu.pipeline_mode<synchronous>, transform_indices = @transform_2, window_bounds = array<i64: 9, 9>}, {pipeline_mode = #tpu.pipeline_mode<synchronous>, transform_indices = @transform_3, window_bounds = array<i64: 9, 1>}, {transform_indices = @transform_4, window_bounds = array<i64: 1, 1, 256>}]} {
    %c0 = arith.constant 0 : index
    %c0_0 = arith.constant 0 : index
    %c0_1 = arith.constant 0 : index
    %0 = vector.load %arg1[%c0, %c0_0, %c0_1] : memref<1x9x256xf32, #tpu.memory_space<vmem>>, vector<1x9x256xf32>
    %1 = vector.shape_cast %0 : vector<1x9x256xf32> to vector<9x256xf32>
    %c0_2 = arith.constant 0 : index
    %c0_3 = arith.constant 0 : index
    %2 = vector.load %arg3[%c0_2, %c0_3] : memref<9x9xbf16, #tpu.memory_space<vmem>>, vector<9x9xbf16>
    %3 = arith.truncf %1 : vector<9x256xf32> to vector<9x256xbf16>
    %cst = arith.constant dense<0.000000e+00> : vector<9x256xf32>
    %4 = tpu.matmul %2, %3, %cst {dimension_numbers = #tpu.dot_dimension_numbers<[1], [0], [0], [1], [0, 0, 1, 1], [], []>} : vector<9x9xbf16>, vector<9x256xbf16>, vector<9x256xf32> -> vector<9x256xf32>
    %c0_4 = arith.constant 0 : index
    %c0_5 = arith.constant 0 : index
    %5 = vector.load %arg4[%c0_4, %c0_5] : memref<9x1xf32, #tpu.memory_space<vmem>>, vector<9x1xf32>
    %6 = vector.broadcast %5 : vector<9x1xf32> to vector<9x256xf32>
    %7 = arith.addf %4, %6 : vector<9x256xf32>
    %c0_6 = arith.constant 0 : index
    %c0_7 = arith.constant 0 : index
    %c0_8 = arith.constant 0 : index
    %8 = vector.load %arg2[%c0_6, %c0_7, %c0_8] : memref<1x9x256xf32, #tpu.memory_space<vmem>>, vector<1x9x256xf32>
    %9 = vector.shape_cast %8 : vector<1x9x256xf32> to vector<9x256xf32>
    %10 = arith.mulf %7, %9 : vector<9x256xf32>
    %cst_9 = arith.constant dense<0.000000e+00> : vector<256xf32>
    %11 = vector.multi_reduction <add>, %10, %cst_9 [0] : vector<9x256xf32> to vector<256xf32>
    %12 = vector.shape_cast %11 : vector<256xf32> to vector<1x256xf32>
    %c0_10 = arith.constant 0 : index
    %c0_11 = arith.constant 0 : index
    %c0_12 = arith.constant 0 : index
    %13 = vector.load %arg5[%c0_10, %c0_11, %c0_12] : memref<1x1x256xf32, #tpu.memory_space<vmem>>, vector<1x1x256xf32>
    %14 = vector.shape_cast %13 : vector<1x1x256xf32> to vector<1x256xf32>
    %15 = vector.shape_cast %12 : vector<1x256xf32> to vector<1x1x256xf32>
    tpu.vector_store %arg5[%c0_10, %c0_11, %c0_12], %15 {strides = array<i32>} : memref<1x1x256xf32, #tpu.memory_space<vmem>>, vector<1x1x256xf32>,
    return
  }
  func.func @transform_0(%arg0: i32) -> (i32, i32, i32) {
    %c0_i32 = arith.constant 0 : i32
    %c0_i32_0 = arith.constant 0 : i32
    %c0_i32_1 = arith.constant 0 : i32
    return %arg0, %c0_i32, %c0_i32_0 : i32, i32, i32
  }
  func.func @transform_1(%arg0: i32) -> (i32, i32, i32) {
    %c0_i32 = arith.constant 0 : i32
    %c0_i32_0 = arith.constant 0 : i32
    %c0_i32_1 = arith.constant 0 : i32
    return %arg0, %c0_i32, %c0_i32_0 : i32, i32, i32
  }
  func.func @transform_2(%arg0: i32) -> (i32, i32) {
    %c0_i32 = arith.constant 0 : i32
    %c0_i32_0 = arith.constant 0 : i32
    %c0_i32_1 = arith.constant 0 : i32
    return %c0_i32, %c0_i32_0 : i32, i32
  }
  func.func @transform_3(%arg0: i32) -> (i32, i32) {
    %c0_i32 = arith.constant 0 : i32
    %c0_i32_0 = arith.constant 0 : i32
    %c0_i32_1 = arith.constant 0 : i32
    return %c0_i32, %c0_i32_0 : i32, i32
  }
  func.func @transform_4(%arg0: i32) -> (i32, i32, i32) {
    %c0_i32 = arith.constant 0 : i32
    %c0_i32_0 = arith.constant 0 : i32
    %c0_i32_1 = arith.constant 0 : i32
    return %arg0, %c0_i32, %c0_i32_0 : i32, i32, i32
  }
}

module attributes {stable_mosaic.version = 11 : i64} {
  func.func @_conv_tiled_kernel(%arg0: i32, %arg1: i32, %arg2: memref<1x72x256xbf16, #tpu.memory_space<vmem>>, %arg3: memref<9x72xbf16, #tpu.memory_space<vmem>>, %arg4: memref<9x1xf32, #tpu.memory_space<vmem>>, %arg5: memref<1x9x256xf32, #tpu.memory_space<vmem>>) attributes {dimension_semantics = [#tpu.dimension_semantics<parallel>, #tpu.dimension_semantics<parallel>], iteration_bounds = array<i64: 4, 1>, scalar_prefetch = 0 : i64, scratch_operands = 0 : i64, tpu.core_type = #tpu.core_type<tc>, window_params = [{transform_indices = @transform_0, window_bounds = array<i64: 1, 72, 256>}, {pipeline_mode = #tpu.pipeline_mode<synchronous>, transform_indices = @transform_1, window_bounds = array<i64: 9, 72>}, {pipeline_mode = #tpu.pipeline_mode<synchronous>, transform_indices = @transform_2, window_bounds = array<i64: 9, 1>}, {transform_indices = @transform_3, window_bounds = array<i64: 1, 9, 256>}]} {
    %c0 = arith.constant 0 : index
    %c0_0 = arith.constant 0 : index
    %0 = vector.load %arg3[%c0, %c0_0] : memref<9x72xbf16, #tpu.memory_space<vmem>>, vector<9x72xbf16>
    %c0_1 = arith.constant 0 : index
    %c0_2 = arith.constant 0 : index
    %c0_3 = arith.constant 0 : index
    %1 = vector.load %arg2[%c0_1, %c0_2, %c0_3] : memref<1x72x256xbf16, #tpu.memory_space<vmem>>, vector<1x72x256xbf16>
    %2 = vector.shape_cast %1 : vector<1x72x256xbf16> to vector<72x256xbf16>
    %cst = arith.constant dense<0.000000e+00> : vector<9x256xf32>
    %3 = tpu.matmul %0, %2, %cst {dimension_numbers = #tpu.dot_dimension_numbers<[1], [0], [0], [1], [0, 0, 1, 1], [], []>} : vector<9x72xbf16>, vector<72x256xbf16>, vector<9x256xf32> -> vector<9x256xf32>
    %c0_4 = arith.constant 0 : index
    %c0_5 = arith.constant 0 : index
    %4 = vector.load %arg4[%c0_4, %c0_5] : memref<9x1xf32, #tpu.memory_space<vmem>>, vector<9x1xf32>
    %5 = vector.broadcast %4 : vector<9x1xf32> to vector<9x256xf32>
    %6 = arith.addf %3, %5 : vector<9x256xf32>
    %cst_6 = arith.constant 0.000000e+00 : f32
    %7 = vector.broadcast %cst_6 : f32 to vector<9x256xf32>
    %8 = arith.maximumf %6, %7 : vector<9x256xf32>
    %c0_7 = arith.constant 0 : index
    %c0_8 = arith.constant 0 : index
    %c0_9 = arith.constant 0 : index
    %9 = vector.load %arg5[%c0_7, %c0_8, %c0_9] : memref<1x9x256xf32, #tpu.memory_space<vmem>>, vector<1x9x256xf32>
    %10 = vector.shape_cast %9 : vector<1x9x256xf32> to vector<9x256xf32>
    %11 = vector.shape_cast %8 : vector<9x256xf32> to vector<1x9x256xf32>
    tpu.vector_store %arg5[%c0_7, %c0_8, %c0_9], %11 {strides = array<i32>} : memref<1x9x256xf32, #tpu.memory_space<vmem>>, vector<1x9x256xf32>,
    return
  }
  func.func @transform_0(%arg0: i32, %arg1: i32) -> (i32, i32, i32) {
    %c0_i32 = arith.constant 0 : i32
    %c0_i32_0 = arith.constant 0 : i32
    return %arg0, %c0_i32, %arg1 : i32, i32, i32
  }
  func.func @transform_1(%arg0: i32, %arg1: i32) -> (i32, i32) {
    %c0_i32 = arith.constant 0 : i32
    %c0_i32_0 = arith.constant 0 : i32
    %c0_i32_1 = arith.constant 0 : i32
    return %c0_i32, %c0_i32_0 : i32, i32
  }
  func.func @transform_2(%arg0: i32, %arg1: i32) -> (i32, i32) {
    %c0_i32 = arith.constant 0 : i32
    %c0_i32_0 = arith.constant 0 : i32
    %c0_i32_1 = arith.constant 0 : i32
    return %c0_i32, %c0_i32_0 : i32, i32
  }
  func.func @transform_3(%arg0: i32, %arg1: i32) -> (i32, i32, i32) {
    %c0_i32 = arith.constant 0 : i32
    %c0_i32_0 = arith.constant 0 : i32
    return %arg0, %c0_i32, %arg1 : i32, i32, i32
  }
}

module attributes {stable_mosaic.version = 11 : i64} {
  func.func @_conv_tiled_kernel(%arg0: i32, %arg1: i32, %arg2: memref<1x8x256xbf16, #tpu.memory_space<vmem>>, %arg3: memref<1x8xbf16, #tpu.memory_space<vmem>>, %arg4: memref<1x1xf32, #tpu.memory_space<vmem>>, %arg5: memref<1x1x256xf32, #tpu.memory_space<vmem>>) attributes {dimension_semantics = [#tpu.dimension_semantics<parallel>, #tpu.dimension_semantics<parallel>], iteration_bounds = array<i64: 4, 1>, scalar_prefetch = 0 : i64, scratch_operands = 0 : i64, tpu.core_type = #tpu.core_type<tc>, window_params = [{transform_indices = @transform_0, window_bounds = array<i64: 1, 8, 256>}, {pipeline_mode = #tpu.pipeline_mode<synchronous>, transform_indices = @transform_1, window_bounds = array<i64: 1, 8>}, {pipeline_mode = #tpu.pipeline_mode<synchronous>, transform_indices = @transform_2, window_bounds = array<i64: 1, 1>}, {transform_indices = @transform_3, window_bounds = array<i64: 1, 1, 256>}]} {
    %c0 = arith.constant 0 : index
    %c0_0 = arith.constant 0 : index
    %0 = vector.load %arg3[%c0, %c0_0] : memref<1x8xbf16, #tpu.memory_space<vmem>>, vector<1x8xbf16>
    %c0_1 = arith.constant 0 : index
    %c0_2 = arith.constant 0 : index
    %c0_3 = arith.constant 0 : index
    %1 = vector.load %arg2[%c0_1, %c0_2, %c0_3] : memref<1x8x256xbf16, #tpu.memory_space<vmem>>, vector<1x8x256xbf16>
    %2 = vector.shape_cast %1 : vector<1x8x256xbf16> to vector<8x256xbf16>
    %cst = arith.constant dense<0.000000e+00> : vector<1x256xf32>
    %3 = tpu.matmul %0, %2, %cst {dimension_numbers = #tpu.dot_dimension_numbers<[1], [0], [0], [1], [0, 0, 1, 1], [], []>} : vector<1x8xbf16>, vector<8x256xbf16>, vector<1x256xf32> -> vector<1x256xf32>
    %c0_4 = arith.constant 0 : index
    %c0_5 = arith.constant 0 : index
    %4 = vector.load %arg4[%c0_4, %c0_5] : memref<1x1xf32, #tpu.memory_space<vmem>>, vector<1x1xf32>
    %5 = vector.broadcast %4 : vector<1x1xf32> to vector<1x256xf32>
    %6 = arith.addf %3, %5 : vector<1x256xf32>
    %cst_6 = arith.constant 0.000000e+00 : f32
    %7 = vector.broadcast %cst_6 : f32 to vector<1x256xf32>
    %8 = arith.maximumf %6, %7 : vector<1x256xf32>
    %c0_7 = arith.constant 0 : index
    %c0_8 = arith.constant 0 : index
    %c0_9 = arith.constant 0 : index
    %9 = vector.load %arg5[%c0_7, %c0_8, %c0_9] : memref<1x1x256xf32, #tpu.memory_space<vmem>>, vector<1x1x256xf32>
    %10 = vector.shape_cast %9 : vector<1x1x256xf32> to vector<1x256xf32>
    %11 = vector.shape_cast %8 : vector<1x256xf32> to vector<1x1x256xf32>
    tpu.vector_store %arg5[%c0_7, %c0_8, %c0_9], %11 {strides = array<i32>} : memref<1x1x256xf32, #tpu.memory_space<vmem>>, vector<1x1x256xf32>,
    return
  }
  func.func @transform_0(%arg0: i32, %arg1: i32) -> (i32, i32, i32) {
    %c0_i32 = arith.constant 0 : i32
    %c0_i32_0 = arith.constant 0 : i32
    return %arg0, %c0_i32, %arg1 : i32, i32, i32
  }
  func.func @transform_1(%arg0: i32, %arg1: i32) -> (i32, i32) {
    %c0_i32 = arith.constant 0 : i32
    %c0_i32_0 = arith.constant 0 : i32
    %c0_i32_1 = arith.constant 0 : i32
    return %c0_i32, %c0_i32_0 : i32, i32
  }
  func.func @transform_2(%arg0: i32, %arg1: i32) -> (i32, i32) {
    %c0_i32 = arith.constant 0 : i32
    %c0_i32_0 = arith.constant 0 : i32
    %c0_i32_1 = arith.constant 0 : i32
    return %c0_i32, %c0_i32_0 : i32, i32
  }
  func.func @transform_3(%arg0: i32, %arg1: i32) -> (i32, i32, i32) {
    %c0_i32 = arith.constant 0 : i32
    %c0_i32_0 = arith.constant 0 : i32
    return %arg0, %c0_i32, %arg1 : i32, i32, i32
  }
}

module attributes {stable_mosaic.version = 11 : i64} {
  func.func @_kpn_kernel(%arg0: i32, %arg1: memref<1x1x256xf32, #tpu.memory_space<vmem>>, %arg2: memref<1x1x256xf32, #tpu.memory_space<vmem>>, %arg3: memref<1x1xbf16, #tpu.memory_space<vmem>>, %arg4: memref<1x1xf32, #tpu.memory_space<vmem>>, %arg5: memref<1x1x256xf32, #tpu.memory_space<vmem>>) attributes {dimension_semantics = [#tpu.dimension_semantics<parallel>], iteration_bounds = array<i64: 4>, scalar_prefetch = 0 : i64, scratch_operands = 0 : i64, tpu.core_type = #tpu.core_type<tc>, window_params = [{transform_indices = @transform_0, window_bounds = array<i64: 1, 1, 256>}, {transform_indices = @transform_1, window_bounds = array<i64: 1, 1, 256>}, {pipeline_mode = #tpu.pipeline_mode<synchronous>, transform_indices = @transform_2, window_bounds = array<i64: 1, 1>}, {pipeline_mode = #tpu.pipeline_mode<synchronous>, transform_indices = @transform_3, window_bounds = array<i64: 1, 1>}, {transform_indices = @transform_4, window_bounds = array<i64: 1, 1, 256>}]} {
    %c0 = arith.constant 0 : index
    %c0_0 = arith.constant 0 : index
    %c0_1 = arith.constant 0 : index
    %0 = vector.load %arg1[%c0, %c0_0, %c0_1] : memref<1x1x256xf32, #tpu.memory_space<vmem>>, vector<1x1x256xf32>
    %1 = vector.shape_cast %0 : vector<1x1x256xf32> to vector<1x256xf32>
    %c0_2 = arith.constant 0 : index
    %c0_3 = arith.constant 0 : index
    %2 = vector.load %arg3[%c0_2, %c0_3] : memref<1x1xbf16, #tpu.memory_space<vmem>>, vector<1x1xbf16>
    %3 = arith.extf %2 : vector<1x1xbf16> to vector<1x1xf32>
    %4 = vector.broadcast %3 : vector<1x1xf32> to vector<1x256xf32>
    %5 = arith.mulf %4, %1 : vector<1x256xf32>
    %c0_4 = arith.constant 0 : index
    %c0_5 = arith.constant 0 : index
    %6 = vector.load %arg4[%c0_4, %c0_5] : memref<1x1xf32, #tpu.memory_space<vmem>>, vector<1x1xf32>
    %7 = vector.broadcast %6 : vector<1x1xf32> to vector<1x256xf32>
    %8 = arith.addf %5, %7 : vector<1x256xf32>
    %c0_6 = arith.constant 0 : index
    %c0_7 = arith.constant 0 : index
    %c0_8 = arith.constant 0 : index
    %9 = vector.load %arg2[%c0_6, %c0_7, %c0_8] : memref<1x1x256xf32, #tpu.memory_space<vmem>>, vector<1x1x256xf32>
    %10 = vector.shape_cast %9 : vector<1x1x256xf32> to vector<1x256xf32>
    %11 = arith.mulf %8, %10 : vector<1x256xf32>
    %cst = arith.constant dense<0.000000e+00> : vector<256xf32>
    %12 = vector.multi_reduction <add>, %11, %cst [0] : vector<1x256xf32> to vector<256xf32>
    %13 = vector.shape_cast %12 : vector<256xf32> to vector<1x256xf32>
    %c0_9 = arith.constant 0 : index
    %c0_10 = arith.constant 0 : index
    %c0_11 = arith.constant 0 : index
    %14 = vector.load %arg5[%c0_9, %c0_10, %c0_11] : memref<1x1x256xf32, #tpu.memory_space<vmem>>, vector<1x1x256xf32>
    %15 = vector.shape_cast %14 : vector<1x1x256xf32> to vector<1x256xf32>
    %16 = vector.shape_cast %13 : vector<1x256xf32> to vector<1x1x256xf32>
    tpu.vector_store %arg5[%c0_9, %c0_10, %c0_11], %16 {strides = array<i32>} : memref<1x1x256xf32, #tpu.memory_space<vmem>>, vector<1x1x256xf32>,
    return
  }
  func.func @transform_0(%arg0: i32) -> (i32, i32, i32) {
    %c0_i32 = arith.constant 0 : i32
    %c0_i32_0 = arith.constant 0 : i32
    %c0_i32_1 = arith.constant 0 : i32
    return %arg0, %c0_i32, %c0_i32_0 : i32, i32, i32
  }
  func.func @transform_1(%arg0: i32) -> (i32, i32, i32) {
    %c0_i32 = arith.constant 0 : i32
    %c0_i32_0 = arith.constant 0 : i32
    %c0_i32_1 = arith.constant 0 : i32
    return %arg0, %c0_i32, %c0_i32_0 : i32, i32, i32
  }
  func.func @transform_2(%arg0: i32) -> (i32, i32) {
    %c0_i32 = arith.constant 0 : i32
    %c0_i32_0 = arith.constant 0 : i32
    %c0_i32_1 = arith.constant 0 : i32
    return %c0_i32, %c0_i32_0 : i32, i32
  }
  func.func @transform_3(%arg0: i32) -> (i32, i32) {
    %c0_i32 = arith.constant 0 : i32
    %c0_i32_0 = arith.constant 0 : i32
    %c0_i32_1 = arith.constant 0 : i32
    return %c0_i32, %c0_i32_0 : i32, i32
  }
  func.func @transform_4(%arg0: i32) -> (i32, i32, i32) {
    %c0_i32 = arith.constant 0 : i32
    %c0_i32_0 = arith.constant 0 : i32
    %c0_i32_1 = arith.constant 0 : i32
    return %arg0, %c0_i32, %c0_i32_0 : i32, i32, i32
  }
}

module attributes {stable_mosaic.version = 11 : i64} {
  func.func @_conv_tiled_kernel(%arg0: i32, %arg1: i32, %arg2: memref<1x200x256xbf16, #tpu.memory_space<vmem>>, %arg3: memref<25x200xbf16, #tpu.memory_space<vmem>>, %arg4: memref<25x1xf32, #tpu.memory_space<vmem>>, %arg5: memref<1x25x256xf32, #tpu.memory_space<vmem>>) attributes {dimension_semantics = [#tpu.dimension_semantics<parallel>, #tpu.dimension_semantics<parallel>], iteration_bounds = array<i64: 4, 1>, scalar_prefetch = 0 : i64, scratch_operands = 0 : i64, tpu.core_type = #tpu.core_type<tc>, window_params = [{transform_indices = @transform_0, window_bounds = array<i64: 1, 200, 256>}, {pipeline_mode = #tpu.pipeline_mode<synchronous>, transform_indices = @transform_1, window_bounds = array<i64: 25, 200>}, {pipeline_mode = #tpu.pipeline_mode<synchronous>, transform_indices = @transform_2, window_bounds = array<i64: 25, 1>}, {transform_indices = @transform_3, window_bounds = array<i64: 1, 25, 256>}]} {
    %c0 = arith.constant 0 : index
    %c0_0 = arith.constant 0 : index
    %0 = vector.load %arg3[%c0, %c0_0] : memref<25x200xbf16, #tpu.memory_space<vmem>>, vector<25x200xbf16>
    %c0_1 = arith.constant 0 : index
    %c0_2 = arith.constant 0 : index
    %c0_3 = arith.constant 0 : index
    %1 = vector.load %arg2[%c0_1, %c0_2, %c0_3] : memref<1x200x256xbf16, #tpu.memory_space<vmem>>, vector<1x200x256xbf16>
    %2 = vector.shape_cast %1 : vector<1x200x256xbf16> to vector<200x256xbf16>
    %cst = arith.constant dense<0.000000e+00> : vector<25x256xf32>
    %3 = tpu.matmul %0, %2, %cst {dimension_numbers = #tpu.dot_dimension_numbers<[1], [0], [0], [1], [0, 0, 1, 1], [], []>} : vector<25x200xbf16>, vector<200x256xbf16>, vector<25x256xf32> -> vector<25x256xf32>
    %c0_4 = arith.constant 0 : index
    %c0_5 = arith.constant 0 : index
    %4 = vector.load %arg4[%c0_4, %c0_5] : memref<25x1xf32, #tpu.memory_space<vmem>>, vector<25x1xf32>
    %5 = vector.broadcast %4 : vector<25x1xf32> to vector<25x256xf32>
    %6 = arith.addf %3, %5 : vector<25x256xf32>
    %cst_6 = arith.constant 0.000000e+00 : f32
    %7 = vector.broadcast %cst_6 : f32 to vector<25x256xf32>
    %8 = arith.maximumf %6, %7 : vector<25x256xf32>
    %c0_7 = arith.constant 0 : index
    %c0_8 = arith.constant 0 : index
    %c0_9 = arith.constant 0 : index
    %9 = vector.load %arg5[%c0_7, %c0_8, %c0_9] : memref<1x25x256xf32, #tpu.memory_space<vmem>>, vector<1x25x256xf32>
    %10 = vector.shape_cast %9 : vector<1x25x256xf32> to vector<25x256xf32>
    %11 = vector.shape_cast %8 : vector<25x256xf32> to vector<1x25x256xf32>
    tpu.vector_store %arg5[%c0_7, %c0_8, %c0_9], %11 {strides = array<i32>} : memref<1x25x256xf32, #tpu.memory_space<vmem>>, vector<1x25x256xf32>,
    return
  }
  func.func @transform_0(%arg0: i32, %arg1: i32) -> (i32, i32, i32) {
    %c0_i32 = arith.constant 0 : i32
    %c0_i32_0 = arith.constant 0 : i32
    return %arg0, %c0_i32, %arg1 : i32, i32, i32
  }
  func.func @transform_1(%arg0: i32, %arg1: i32) -> (i32, i32) {
    %c0_i32 = arith.constant 0 : i32
    %c0_i32_0 = arith.constant 0 : i32
    %c0_i32_1 = arith.constant 0 : i32
    return %c0_i32, %c0_i32_0 : i32, i32
  }
  func.func @transform_2(%arg0: i32, %arg1: i32) -> (i32, i32) {
    %c0_i32 = arith.constant 0 : i32
    %c0_i32_0 = arith.constant 0 : i32
    %c0_i32_1 = arith.constant 0 : i32
    return %c0_i32, %c0_i32_0 : i32, i32
  }
  func.func @transform_3(%arg0: i32, %arg1: i32) -> (i32, i32, i32) {
    %c0_i32 = arith.constant 0 : i32
    %c0_i32_0 = arith.constant 0 : i32
    return %arg0, %c0_i32, %arg1 : i32, i32, i32
  }
}

module attributes {stable_mosaic.version = 11 : i64} {
  func.func @_kpn_kernel(%arg0: i32, %arg1: memref<1x25x256xf32, #tpu.memory_space<vmem>>, %arg2: memref<1x25x256xf32, #tpu.memory_space<vmem>>, %arg3: memref<25x25xbf16, #tpu.memory_space<vmem>>, %arg4: memref<25x1xf32, #tpu.memory_space<vmem>>, %arg5: memref<1x1x256xf32, #tpu.memory_space<vmem>>) attributes {dimension_semantics = [#tpu.dimension_semantics<parallel>], iteration_bounds = array<i64: 4>, scalar_prefetch = 0 : i64, scratch_operands = 0 : i64, tpu.core_type = #tpu.core_type<tc>, window_params = [{transform_indices = @transform_0, window_bounds = array<i64: 1, 25, 256>}, {transform_indices = @transform_1, window_bounds = array<i64: 1, 25, 256>}, {pipeline_mode = #tpu.pipeline_mode<synchronous>, transform_indices = @transform_2, window_bounds = array<i64: 25, 25>}, {pipeline_mode = #tpu.pipeline_mode<synchronous>, transform_indices = @transform_3, window_bounds = array<i64: 25, 1>}, {transform_indices = @transform_4, window_bounds = array<i64: 1, 1, 256>}]} {
    %c0 = arith.constant 0 : index
    %c0_0 = arith.constant 0 : index
    %c0_1 = arith.constant 0 : index
    %0 = vector.load %arg1[%c0, %c0_0, %c0_1] : memref<1x25x256xf32, #tpu.memory_space<vmem>>, vector<1x25x256xf32>
    %1 = vector.shape_cast %0 : vector<1x25x256xf32> to vector<25x256xf32>
    %c0_2 = arith.constant 0 : index
    %c0_3 = arith.constant 0 : index
    %2 = vector.load %arg3[%c0_2, %c0_3] : memref<25x25xbf16, #tpu.memory_space<vmem>>, vector<25x25xbf16>
    %3 = arith.truncf %1 : vector<25x256xf32> to vector<25x256xbf16>
    %cst = arith.constant dense<0.000000e+00> : vector<25x256xf32>
    %4 = tpu.matmul %2, %3, %cst {dimension_numbers = #tpu.dot_dimension_numbers<[1], [0], [0], [1], [0, 0, 1, 1], [], []>} : vector<25x25xbf16>, vector<25x256xbf16>, vector<25x256xf32> -> vector<25x256xf32>
    %c0_4 = arith.constant 0 : index
    %c0_5 = arith.constant 0 : index
    %5 = vector.load %arg4[%c0_4, %c0_5] : memref<25x1xf32, #tpu.memory_space<vmem>>, vector<25x1xf32>
    %6 = vector.broadcast %5 : vector<25x1xf32> to vector<25x256xf32>
    %7 = arith.addf %4, %6 : vector<25x256xf32>
    %c0_6 = arith.constant 0 : index
    %c0_7 = arith.constant 0 : index
    %c0_8 = arith.constant 0 : index
    %8 = vector.load %arg2[%c0_6, %c0_7, %c0_8] : memref<1x25x256xf32, #tpu.memory_space<vmem>>, vector<1x25x256xf32>
    %9 = vector.shape_cast %8 : vector<1x25x256xf32> to vector<25x256xf32>
    %10 = arith.mulf %7, %9 : vector<25x256xf32>
    %cst_9 = arith.constant dense<0.000000e+00> : vector<256xf32>
    %11 = vector.multi_reduction <add>, %10, %cst_9 [0] : vector<25x256xf32> to vector<256xf32>
    %12 = vector.shape_cast %11 : vector<256xf32> to vector<1x256xf32>
    %c0_10 = arith.constant 0 : index
    %c0_11 = arith.constant 0 : index
    %c0_12 = arith.constant 0 : index
    %13 = vector.load %arg5[%c0_10, %c0_11, %c0_12] : memref<1x1x256xf32, #tpu.memory_space<vmem>>, vector<1x1x256xf32>
    %14 = vector.shape_cast %13 : vector<1x1x256xf32> to vector<1x256xf32>
    %15 = vector.shape_cast %12 : vector<1x256xf32> to vector<1x1x256xf32>
    tpu.vector_store %arg5[%c0_10, %c0_11, %c0_12], %15 {strides = array<i32>} : memref<1x1x256xf32, #tpu.memory_space<vmem>>, vector<1x1x256xf32>,
    return
  }
  func.func @transform_0(%arg0: i32) -> (i32, i32, i32) {
    %c0_i32 = arith.constant 0 : i32
    %c0_i32_0 = arith.constant 0 : i32
    %c0_i32_1 = arith.constant 0 : i32
    return %arg0, %c0_i32, %c0_i32_0 : i32, i32, i32
  }
  func.func @transform_1(%arg0: i32) -> (i32, i32, i32) {
    %c0_i32 = arith.constant 0 : i32
    %c0_i32_0 = arith.constant 0 : i32
    %c0_i32_1 = arith.constant 0 : i32
    return %arg0, %c0_i32, %c0_i32_0 : i32, i32, i32
  }
  func.func @transform_2(%arg0: i32) -> (i32, i32) {
    %c0_i32 = arith.constant 0 : i32
    %c0_i32_0 = arith.constant 0 : i32
    %c0_i32_1 = arith.constant 0 : i32
    return %c0_i32, %c0_i32_0 : i32, i32
  }
  func.func @transform_3(%arg0: i32) -> (i32, i32) {
    %c0_i32 = arith.constant 0 : i32
    %c0_i32_0 = arith.constant 0 : i32
    %c0_i32_1 = arith.constant 0 : i32
    return %c0_i32, %c0_i32_0 : i32, i32
  }
  func.func @transform_4(%arg0: i32) -> (i32, i32, i32) {
    %c0_i32 = arith.constant 0 : i32
    %c0_i32_0 = arith.constant 0 : i32
    %c0_i32_1 = arith.constant 0 : i32
    return %arg0, %c0_i32, %c0_i32_0 : i32, i32, i32
  }
}

</mosaic_0001>

<bundles_post_ra>
// kernel: ffmef_forward.39
= control target key start
LH: loop header
LB: loop body
LE: loop exit
PB: predicated region body
PF: predicated region fallthrough
CT: control target
= control target key end

     0   :  { %s297_s12 = smov 0   ;;  %s320_s0 = inlined_call_operand.vmem [shape: f32[4,1,256], index: 0, kind: input, shape index: {}]   ;;  %s321_s1 = inlined_call_operand.vmem [shape: f32[8,1], index: 1, kind: input, shape index: {}]   ;;  %s322_s2 = inlined_call_operand.vmem [shape: f32[8,1], index: 2, kind: input, shape index: {}]   ;;  %s323_s3 = inlined_call_operand.vmem [shape: f32[4,8,256], index: 3, kind: output, shape index: {}]  }
   0x1 LB: > { %s247_s13 = sadd.s32 4294967295, %s274_s12   ;;  %p251_p0 = scmp.ge.s32.totalorder %s274_s12, 1  ;;  %s274_s12 = sphi %s297_s12, %s13_s12  }
   0x2   : > { %p136_p1 = scmp.lt.s32.totalorder %s274_s12, 5 }
   0x4   : > { %p137_p2 = pnand %p251_p0, %p136_p1 }
   0x5   : > { %p159_p3 = scmp.lt.s32.totalorder (!%p137_p2), %s247_s13, 3 }
   0x6   : > { %140 = sbr.rel (%p137_p2) target bundleno = 140 (0x8c), region = 32 }
   0xb   : > { %v168_v0 = vld [vmem:[%s321_s1] sm:$0xff]  ;;  %v276_v1 = vmov 0   ;;  %s325_s13 = smov (!%p159_p3, %s247_s13), 3 }
   0xc   : > { %267 = vset.pattern.permute.xlu0 %v276_v1  ;;  %v182_v2 = vld [vmem:[%s322_s2] sm:$0xff]  ;;  %s252_s18 = sshll.u32 %s325_s13, 1  ;;  %s257_s22 = sshll.u32 %s325_s13, 4 }
   0xd   : > { %172 = vperm.xlu0 %267, %v168_v0   ;;  %s162_s21 = scalar_lea.vmem %s320_s0, %s252_s18  ;;  %s167_s25 = scalar_lea.vmem %s323_s3, %s257_s22 }
   0xe   : > { %v169_v4 = vld [vmem:[%s162_s21] sm:$0x3] }
   0xf   : > { %v176_v5 = vperm.slane %v169_v4, 0  ;;  %v177_v6 = vperm.slane %v169_v4, 1 }
  0x15   : > { %185 = vperm.xlu0 %267, %v182_v2  }
  0x7f   : > { %v173_v3 = vpop.permute.xlu0 %172 }
  0x80   : > { %v180_v7 = vmul.f32 %v176_v5, %v173_v3  ;;  %v181_v8 = vmul.f32 %v177_v6, %v173_v3 }
  0x87   : > { %v186_v9 = vpop.permute.xlu0 %185 }
  0x88   : > { %v188_v10 = vadd.f32 %v186_v9, %v180_v7  ;;  %v189_v11 = vadd.f32 %v186_v9, %v181_v8 }
  0x8a   : > { %190 = vst [vmem:[%s167_s25] sm:$0xff] %v188_v10 }
  0x8b   : > { %191 = vst [vmem:[%s167_s25 + $0x8] sm:$0xff] %v189_v11 }
  0x8c PF: > { %s13_s12 = sadd.s32 1, %s274_s12  }
  0x8d   : > { %p10_p4 = scmp.ge.s32.totalorder %s13_s12, 6  }
  0x8f   :  { %12 = sbr.rel (!%p10_p4) target bundleno = 1 (0x1), region = 62 }

// kernel: ffmef_forward.40
= control target key start
LH: loop header
LB: loop body
LE: loop exit
PB: predicated region body
PF: predicated region fallthrough
CT: control target
= control target key end

     0   :  { %s542_s18 = smov 0   ;;  %s594_s0 = inlined_call_operand.vmem [shape: bf16[4,72,256], index: 0, kind: input, shape index: {}]   ;;  %s595_s1 = inlined_call_operand.vmem [shape: bf16[8,72], index: 1, kind: input, shape index: {}]   ;;  %s596_s2 = inlined_call_operand.vmem [shape: f32[8,1], index: 2, kind: input, shape index: {}]   ;;  %s597_s3 = inlined_call_operand.vmem [shape: f32[8,1], index: 3, kind: input, shape index: {}]   ;;  %s598_s4 = inlined_call_operand.vmem [shape: f32[8,1], index: 4, kind: input, shape index: {}]   ;;  %s599_s5 = inlined_call_operand.vmem [shape: f32[4,8,256], index: 5, kind: output, shape index: {}]  }
   0x1 LB: > { %s431_s19 = sadd.s32 4294967295, %s508_s18   ;;  %p435_p0 = scmp.ge.s32.totalorder %s508_s18, 1  ;;  %s508_s18 = sphi %s542_s18, %s15_s18  }
   0x2   : > { %p187_p1 = scmp.lt.s32.totalorder %s508_s18, 5 }
   0x4   : > { %p188_p2 = pnand %p435_p0, %p187_p1 }
   0x5   : > { %p215_p3 = scmp.lt.s32.totalorder (!%p188_p2), %s431_s19, 3 }
   0x6   : > { %191 = sbr.rel (%p188_p2) target bundleno = 442 (0x1ba), region = 40 }
   0xb   : > { %v510_v0 = vmov 0   ;;  %v236_v1 = vld [vmem:[%s596_s2] sm:$0xff]  ;;  %s601_s19 = smov (!%p215_p3, %s431_s19), 3  ;;  %vm291_vm0 = vcmask 1043456   ;;  %vm287_vm1 = vcmask 588800   ;;  %v511_v42 = vmov 256.0  }
   0xc   : > { %495 = vset.pattern.permute.xlu0 %v510_v0  ;;  %496 = vset.pattern.permute.xlu1 %v510_v0  ;;  %s484_s22 = smul.u32 72, %s601_s19  ;;  %v226_v33 = vld [vmem:[%s595_s1] sm:$0xf]  ;;  %498 = vrcp.f32 %v511_v42  ;;  %s475_s7 = sshll.u32 %s601_s19, 4 }
   0xd   : > { %239 = vperm.xlu0 %495, %v236_v1   ;;  %497 = vset.pattern.permute.xlu2 %v510_v0  ;;  %v364_v51 = vld [vmem:[%s598_s4] sm:$0xff]  ;;  %s224_s10 = scalar_lea.vmem %s599_s5, %s475_s7 }
   0xe   : > { %s559_s25 = scalar_lea.vmem %s594_s0, %s484_s22  ;;  %367 = vperm.xlu2 %497, %v364_v51   ;;  %v356_v57 = vld [vmem:[%s597_s3] sm:$0xff] }
   0xf   : > { %v235_v2 = vld [vmem:[%s559_s25 + $0x40] sm:$0xff]  ;;  %v465_v5 = vld [vmem:[%s559_s25 + $0x30] sm:$0xf]  ;;  %v483_v8 = vld [vmem:[%s559_s25 + $0x34] sm:$0xf0] }
  0x10   : > { %v267_v3 = vunpack.c.l.b16 %v235_v2  ;;  %v268_v4 = vunpack.c.h.b16 %v235_v2  ;;  %v482_v9 = vld [vmem:[%s559_s25 + $0x34] sm:$0xf]  ;;  %v467_v10 = vld [vmem:[%s559_s25 + $0x38] sm:$0xf0]  ;;  %v466_v13 = vor.u32 %v483_v8, %v465_v5  ;;  %v457_v15 = vld [vmem:[%s559_s25 + $0x20] sm:$0xf] }
  0x11   : > { %v470_v14 = vor.u32 %v482_v9, %v467_v10  ;;  %v481_v16 = vld [vmem:[%s559_s25 + $0x24] sm:$0xf0]  ;;  %v480_v17 = vld [vmem:[%s559_s25 + $0x24] sm:$0xf]  ;;  %v459_v18 = vld [vmem:[%s559_s25 + $0x28] sm:$0xf0] }
  0x12   : > { %v277_v6 = vpack.c.b16 %v267_v3, %v267_v3  ;;  %v278_v7 = vpack.c.b16 %v268_v4, %v268_v4  ;;  %v458_v19 = vor.u32 %v481_v16, %v457_v15  ;;  %v462_v20 = vor.u32 %v480_v17, %v459_v18  ;;  %v449_v21 = vld [vmem:[%s559_s25 + $0x10] sm:$0xf]  ;;  %v479_v22 = vld [vmem:[%s559_s25 + $0x14] sm:$0xf0]  ;;  %v478_v23 = vld [vmem:[%s559_s25 + $0x14] sm:$0xf]  ;;  %v499_v43 = vpop.eup %498 }
  0x13   : > { %v451_v24 = vld [vmem:[%s559_s25 + $0x18] sm:$0xf0]  ;;  %v450_v25 = vor.u32 %v479_v22, %v449_v21  ;;  %v441_v27 = vld [vmem:[%s559_s25] sm:$0xf]  ;;  %v477_v28 = vld [vmem:[%s559_s25 + $0x4] sm:$0xf0]  ;;  %vm332_vm2 = vweird.f32 %v499_v43 }
  0x14   : > { %v293_v11 = vsel %vm291_vm0, %v277_v6, 0  ;;  %v296_v12 = vsel %vm291_vm0, %v278_v7, 0  ;;  %v454_v26 = vor.u32 %v478_v23, %v451_v24  ;;  %v476_v29 = vld [vmem:[%s559_s25 + $0x4] sm:$0xf]  ;;  %v443_v30 = vld [vmem:[%s559_s25 + $0x8] sm:$0xf0]  ;;  %v442_v31 = vor.u32 %v477_v28, %v441_v27 }
  0x15   : > { %301 = vmatpush.bf16.msra.mxu0 %v293_v11  ;;  %314 = vmatpush.bf16.msra.mxu1 %v296_v12  ;;  %v446_v32 = vor.u32 %v476_v29, %v443_v30  ;;  %v328_v44 = vmul.f32 256.0, %v499_v43 }
  0x17   : > { %v329_v45 = vsub.f32 1.0, %v328_v44 }
  0x19   : > { %302 = vmatpush.bf16.msra.mxu0 %v466_v13  ;;  %315 = vmatpush.bf16.msra.mxu1 %v470_v14  ;;  %v330_v46 = vmul.f32 %v499_v43, %v329_v45 }
  0x1b   : > { %v331_v47 = vadd.f32 %v499_v43, %v330_v46 }
  0x1d   : > { %303 = vmatpush.bf16.msra.mxu0 %v458_v19  ;;  %316 = vmatpush.bf16.msra.mxu1 %v462_v20  ;;  %v333_v48 = vsel %vm332_vm2, %v499_v43, %v331_v47 }
  0x21   : > { %304 = vmatpush.bf16.msra.mxu0 %v450_v25  ;;  %317 = vmatpush.bf16.msra.mxu1 %v454_v26 }
  0x25   : > { %305 = vmatpush.bf16.msra.mxu0 %v442_v31  ;;  %318 = vmatpush.bf16.msra.mxu1 %v446_v32 }
  0x28   : > { %471 = vmatmul.msk.bf16.vlgmr.msra.gmra.mxu0 %vm287_vm1, %v226_v33  ;;  %472 = vmatmul.msk.bf16.vlgmr.msra.gmra.mxu1 %vm287_vm1, %v226_v33 }
  0x68   : > { %v368_v7 = vpop.permute.xlu2 %367 }
  0x7f   : > { %v240_v34 = vpop.permute.xlu0 %239 }
  0xa5   : > { %v307_v35 = vpop.f32.mrf.mxu0  ;;  %v320_v36 = vpop.f32.mrf.mxu1 }
  0xa6   : > { %v308_v37 = vadd.f32 %v307_v35, %v240_v34  ;;  %v321_v38 = vadd.f32 %v320_v36, %v240_v34 }
  0xa8   : > { %v324_v39 = vadd.f32 %v321_v38, %v308_v37 }
  0xaa   : > { %325 = vadd.xlane.f32.xlu0 %v324_v39 }
  0xad   : > { %v309_v40 = vpop.f32.mrf.mxu0  ;;  %v322_v41 = vpop.f32.mrf.mxu1 }
 0x11d   : > { %v326_v49 = vpop.xlane.xlu0 %325 }
 0x11e   : > { %v334_v50 = vmul.f32 %v333_v48, %v326_v49 }
 0x120   : > { %v335_v52 = vsub.f32 %v308_v37, %v334_v50  ;;  %v336_v53 = vsub.f32 %v321_v38, %v334_v50 }
 0x122   : > { %v337_v54 = vmul.f32 %v335_v52, %v335_v52  ;;  %v338_v55 = vmul.f32 %v336_v53, %v336_v53 }
 0x124   : > { %v339_v56 = vadd.f32 %v338_v55, %v337_v54 }
 0x126   : > { %340 = vadd.xlane.f32.xlu1 %v339_v56 }
 0x13f   : > { %359 = vperm.xlu1 %496, %v356_v57  }
 0x199   : > { %v341_v58 = vpop.xlane.xlu1 %340 }
 0x19a   : > { %v342_v59 = vmul.f32 %v341_v58, %v333_v48 }
 0x19c   : > { %v343_v60 = vadd.f32 1e-05, %v342_v59 }
 0x19e   : > { %500 = vrsqrt.f32 %v343_v60  ;;  %vm350_vm4 = vweird.f32 %v343_v60 }
 0x1a4   : > { %v501_v61 = vpop.eup %500 }
 0x1a5   : > { %v345_v62 = vmul.f32 %v501_v61, %v343_v60  ;;  %vm351_vm3 = vweird.f32 %v501_v61 }
 0x1a6   : > { %vm352_vm5 = vmor %vm350_vm4, %vm351_vm3 }
 0x1a7   : > { %v346_v63 = vmul.f32 %v501_v61, %v345_v62 }
 0x1a9   : > { %v347_v0 = vmul.f32 0.5, %v346_v63 }
 0x1ab   : > { %v348_v1 = vsub.f32 1.5, %v347_v0 }
 0x1ad   : > { %v349_v2 = vmul.f32 %v501_v61, %v348_v1 }
 0x1af   : > { %v353_v3 = vsel %vm352_vm5, %v501_v61, %v349_v2 }
 0x1b0   : > { %v354_v4 = vmul.f32 %v353_v3, %v335_v52  ;;  %v355_v5 = vmul.f32 %v353_v3, %v336_v53 }
 0x1b1   : > { %v360_v6 = vpop.permute.xlu1 %359 }
 0x1b2   : > { %v362_v8 = vmul.f32 %v360_v6, %v354_v4  ;;  %v363_v9 = vmul.f32 %v360_v6, %v355_v5 }
 0x1b4   : > { %v370_v10 = vadd.f32 %v368_v7, %v362_v8  ;;  %v371_v11 = vadd.f32 %v368_v7, %v363_v9 }
 0x1b6   : > { %v372_v12 = vmax.f32 %v370_v10, 0.0  ;;  %v373_v13 = vmax.f32 %v371_v11, 0.0 }
 0x1b8   : > { %374 = vst [vmem:[%s224_s10] sm:$0xff] %v372_v12 }
 0x1b9   : > { %375 = vst [vmem:[%s224_s10 + $0x8] sm:$0xff] %v373_v13 }
 0x1ba PF: > { %s15_s18 = sadd.s32 1, %s508_s18  }
 0x1bb   : > { %p12_p4 = scmp.ge.s32.totalorder %s15_s18, 6  }
 0x1bd   :  { %14 = sbr.rel (!%p12_p4) target bundleno = 1 (0x1), region = 70 }

// kernel: ffmef_forward.41
= control target key start
LH: loop header
LB: loop body
LE: loop exit
PB: predicated region body
PF: predicated region fallthrough
CT: control target
= control target key end

     0   :  { %s613_s21 = smov 0   ;;  %s668_s0 = inlined_call_operand.vmem [shape: bf16[4,72,256], index: 0, kind: input, shape index: {}]   ;;  %s669_s1 = inlined_call_operand.vmem [shape: bf16[8,72], index: 1, kind: input, shape index: {}]   ;;  %s670_s2 = inlined_call_operand.vmem [shape: f32[8,1], index: 2, kind: input, shape index: {}]   ;;  %s671_s3 = inlined_call_operand.vmem [shape: f32[8,1], index: 3, kind: input, shape index: {}]   ;;  %s672_s4 = inlined_call_operand.vmem [shape: f32[8,1], index: 4, kind: input, shape index: {}]   ;;  %s673_s5 = inlined_call_operand.vmem [shape: f32[4,8,256], index: 5, kind: input, shape index: {}]   ;;  %s674_s6 = inlined_call_operand.vmem [shape: f32[4,8,256], index: 6, kind: output, shape index: {}]  }
   0x1 LB: > { %s494_s22 = sadd.s32 4294967295, %s574_s21   ;;  %p498_p0 = scmp.ge.s32.totalorder %s574_s21, 1  ;;  %s574_s21 = sphi %s613_s21, %s16_s21  }
   0x2   : > { %p222_p1 = scmp.lt.s32.totalorder %s574_s21, 5 }
   0x4   : > { %p223_p2 = pnand %p498_p0, %p222_p1 }
   0x5   : > { %p257_p3 = scmp.lt.s32.totalorder (!%p223_p2), %s494_s22, 3 }
   0x6   : > { %226 = sbr.rel (%p223_p2) target bundleno = 444 (0x1bc), region = 44 }
   0xb   : > { %v576_v0 = vmov 0   ;;  %v283_v1 = vld [vmem:[%s670_s2] sm:$0xff]  ;;  %s676_s22 = smov (!%p257_p3, %s494_s22), 3  ;;  %vm338_vm0 = vcmask 1043456   ;;  %vm334_vm1 = vcmask 588800   ;;  %v577_v42 = vmov 256.0  }
   0xc   : > { %561 = vset.pattern.permute.xlu0 %v576_v0  ;;  %562 = vset.pattern.permute.xlu1 %v576_v0  ;;  %s550_s25 = smul.u32 72, %s676_s22  ;;  %v273_v33 = vld [vmem:[%s669_s1] sm:$0xf]  ;;  %564 = vrcp.f32 %v577_v42  ;;  %s540_s11 = sshll.u32 %s676_s22, 4 }
   0xd   : > { %286 = vperm.xlu0 %561, %v283_v1   ;;  %563 = vset.pattern.permute.xlu2 %v576_v0  ;;  %v411_v51 = vld [vmem:[%s672_s4] sm:$0xff]  ;;  %s266_s14 = scalar_lea.vmem %s673_s5, %s540_s11  ;;  %s271_s17 = scalar_lea.vmem %s674_s6, %s540_s11 }
   0xe   : > { %s630_s28 = scalar_lea.vmem %s668_s0, %s550_s25  ;;  %414 = vperm.xlu2 %563, %v411_v51   ;;  %v403_v57 = vld [vmem:[%s671_s3] sm:$0xff] }
   0xf   : > { %v282_v2 = vld [vmem:[%s630_s28 + $0x40] sm:$0xff]  ;;  %v530_v5 = vld [vmem:[%s630_s28 + $0x30] sm:$0xf]  ;;  %v549_v8 = vld [vmem:[%s630_s28 + $0x34] sm:$0xf0] }
  0x10   : > { %v314_v3 = vunpack.c.l.b16 %v282_v2  ;;  %v315_v4 = vunpack.c.h.b16 %v282_v2  ;;  %v548_v9 = vld [vmem:[%s630_s28 + $0x34] sm:$0xf]  ;;  %v532_v10 = vld [vmem:[%s630_s28 + $0x38] sm:$0xf0]  ;;  %v531_v13 = vor.u32 %v549_v8, %v530_v5  ;;  %v522_v15 = vld [vmem:[%s630_s28 + $0x20] sm:$0xf] }
  0x11   : > { %v535_v14 = vor.u32 %v548_v9, %v532_v10  ;;  %v547_v16 = vld [vmem:[%s630_s28 + $0x24] sm:$0xf0]  ;;  %v546_v17 = vld [vmem:[%s630_s28 + $0x24] sm:$0xf]  ;;  %v524_v18 = vld [vmem:[%s630_s28 + $0x28] sm:$0xf0] }
  0x12   : > { %v324_v6 = vpack.c.b16 %v314_v3, %v314_v3  ;;  %v325_v7 = vpack.c.b16 %v315_v4, %v315_v4  ;;  %v523_v19 = vor.u32 %v547_v16, %v522_v15  ;;  %v527_v20 = vor.u32 %v546_v17, %v524_v18  ;;  %v514_v21 = vld [vmem:[%s630_s28 + $0x10] sm:$0xf]  ;;  %v545_v22 = vld [vmem:[%s630_s28 + $0x14] sm:$0xf0]  ;;  %v544_v23 = vld [vmem:[%s630_s28 + $0x14] sm:$0xf]  ;;  %v565_v43 = vpop.eup %564 }
  0x13   : > { %v516_v24 = vld [vmem:[%s630_s28 + $0x18] sm:$0xf0]  ;;  %v515_v25 = vor.u32 %v545_v22, %v514_v21  ;;  %v506_v27 = vld [vmem:[%s630_s28] sm:$0xf]  ;;  %v543_v28 = vld [vmem:[%s630_s28 + $0x4] sm:$0xf0]  ;;  %vm379_vm2 = vweird.f32 %v565_v43 }
  0x14   : > { %v340_v11 = vsel %vm338_vm0, %v324_v6, 0  ;;  %v343_v12 = vsel %vm338_vm0, %v325_v7, 0  ;;  %v519_v26 = vor.u32 %v544_v23, %v516_v24  ;;  %v542_v29 = vld [vmem:[%s630_s28 + $0x4] sm:$0xf]  ;;  %v508_v30 = vld [vmem:[%s630_s28 + $0x8] sm:$0xf0]  ;;  %v507_v31 = vor.u32 %v543_v28, %v506_v27 }
  0x15   : > { %348 = vmatpush.bf16.msra.mxu0 %v340_v11  ;;  %361 = vmatpush.bf16.msra.mxu1 %v343_v12  ;;  %v511_v32 = vor.u32 %v542_v29, %v508_v30  ;;  %v375_v44 = vmul.f32 256.0, %v565_v43  ;;  %v419_v10 = vld [vmem:[%s266_s14] sm:$0xff]  ;;  %v420_v11 = vld [vmem:[%s266_s14 + $0x8] sm:$0xff] }
  0x17   : > { %v376_v45 = vsub.f32 1.0, %v375_v44 }
  0x19   : > { %349 = vmatpush.bf16.msra.mxu0 %v531_v13  ;;  %362 = vmatpush.bf16.msra.mxu1 %v535_v14  ;;  %v377_v46 = vmul.f32 %v565_v43, %v376_v45 }
  0x1b   : > { %v378_v47 = vadd.f32 %v565_v43, %v377_v46 }
  0x1d   : > { %350 = vmatpush.bf16.msra.mxu0 %v523_v19  ;;  %363 = vmatpush.bf16.msra.mxu1 %v527_v20  ;;  %v380_v48 = vsel %vm379_vm2, %v565_v43, %v378_v47 }
  0x21   : > { %351 = vmatpush.bf16.msra.mxu0 %v515_v25  ;;  %364 = vmatpush.bf16.msra.mxu1 %v519_v26 }
  0x25   : > { %352 = vmatpush.bf16.msra.mxu0 %v507_v31  ;;  %365 = vmatpush.bf16.msra.mxu1 %v511_v32 }
  0x28   : > { %536 = vmatmul.msk.bf16.vlgmr.msra.gmra.mxu0 %vm334_vm1, %v273_v33  ;;  %537 = vmatmul.msk.bf16.vlgmr.msra.gmra.mxu1 %vm334_vm1, %v273_v33 }
  0x68   : > { %v415_v7 = vpop.permute.xlu2 %414 }
  0x7f   : > { %v287_v34 = vpop.permute.xlu0 %286 }
  0xa5   : > { %v354_v35 = vpop.f32.mrf.mxu0  ;;  %v367_v36 = vpop.f32.mrf.mxu1 }
  0xa6   : > { %v355_v37 = vadd.f32 %v354_v35, %v287_v34  ;;  %v368_v38 = vadd.f32 %v367_v36, %v287_v34 }
  0xa8   : > { %v371_v39 = vadd.f32 %v368_v38, %v355_v37 }
  0xaa   : > { %372 = vadd.xlane.f32.xlu0 %v371_v39 }
  0xad   : > { %v356_v40 = vpop.f32.mrf.mxu0  ;;  %v369_v41 = vpop.f32.mrf.mxu1 }
 0x11d   : > { %v373_v49 = vpop.xlane.xlu0 %372 }
 0x11e   : > { %v381_v50 = vmul.f32 %v380_v48, %v373_v49 }
 0x120   : > { %v382_v52 = vsub.f32 %v355_v37, %v381_v50  ;;  %v383_v53 = vsub.f32 %v368_v38, %v381_v50 }
 0x122   : > { %v384_v54 = vmul.f32 %v382_v52, %v382_v52  ;;  %v385_v55 = vmul.f32 %v383_v53, %v383_v53 }
 0x124   : > { %v386_v56 = vadd.f32 %v385_v55, %v384_v54 }
 0x126   : > { %387 = vadd.xlane.f32.xlu1 %v386_v56 }
 0x13f   : > { %406 = vperm.xlu1 %562, %v403_v57  }
 0x199   : > { %v388_v58 = vpop.xlane.xlu1 %387 }
 0x19a   : > { %v389_v59 = vmul.f32 %v388_v58, %v380_v48 }
 0x19c   : > { %v390_v60 = vadd.f32 1e-05, %v389_v59 }
 0x19e   : > { %566 = vrsqrt.f32 %v390_v60  ;;  %vm397_vm4 = vweird.f32 %v390_v60 }
 0x1a4   : > { %v567_v61 = vpop.eup %566 }
 0x1a5   : > { %v392_v62 = vmul.f32 %v567_v61, %v390_v60  ;;  %vm398_vm3 = vweird.f32 %v567_v61 }
 0x1a6   : > { %vm399_vm5 = vmor %vm397_vm4, %vm398_vm3 }
 0x1a7   : > { %v393_v63 = vmul.f32 %v567_v61, %v392_v62 }
 0x1a9   : > { %v394_v0 = vmul.f32 0.5, %v393_v63 }
 0x1ab   : > { %v395_v1 = vsub.f32 1.5, %v394_v0 }
 0x1ad   : > { %v396_v2 = vmul.f32 %v567_v61, %v395_v1 }
 0x1af   : > { %v400_v3 = vsel %vm399_vm5, %v567_v61, %v396_v2 }
 0x1b0   : > { %v401_v4 = vmul.f32 %v400_v3, %v382_v52  ;;  %v402_v5 = vmul.f32 %v400_v3, %v383_v53 }
 0x1b1   : > { %v407_v6 = vpop.permute.xlu1 %406 }
 0x1b2   : > { %v409_v8 = vmul.f32 %v407_v6, %v401_v4  ;;  %v410_v9 = vmul.f32 %v407_v6, %v402_v5 }
 0x1b4   : > { %v417_v12 = vadd.f32 %v415_v7, %v409_v8  ;;  %v418_v13 = vadd.f32 %v415_v7, %v410_v9 }
 0x1b6   : > { %v421_v14 = vadd.f32 %v419_v10, %v417_v12  ;;  %v422_v15 = vadd.f32 %v420_v11, %v418_v13 }
 0x1b8   : > { %v423_v16 = vmax.f32 %v421_v14, 0.0  ;;  %v424_v17 = vmax.f32 %v422_v15, 0.0 }
 0x1ba   : > { %425 = vst [vmem:[%s271_s17] sm:$0xff] %v423_v16 }
 0x1bb   : > { %426 = vst [vmem:[%s271_s17 + $0x8] sm:$0xff] %v424_v17 }
 0x1bc PF: > { %s16_s21 = sadd.s32 1, %s574_s21  }
 0x1bd   : > { %p13_p4 = scmp.ge.s32.totalorder %s16_s21, 6  }
 0x1bf   :  { %15 = sbr.rel (!%p13_p4) target bundleno = 1 (0x1), region = 77 }

// kernel: ffmef_forward.43
= control target key start
LH: loop header
LB: loop body
LE: loop exit
PB: predicated region body
PF: predicated region fallthrough
CT: control target
= control target key end

     0   :  { %s587_s24 = smov 0   ;;  %s627_s0 = inlined_call_operand.vmem [shape: bf16[4,16,256], index: 0, kind: input, shape index: {}]   ;;  %s628_s1 = inlined_call_operand.vmem [shape: bf16[8,16], index: 1, kind: input, shape index: {}]   ;;  %s629_s2 = inlined_call_operand.vmem [shape: f32[8,1], index: 2, kind: input, shape index: {}]   ;;  %s630_s3 = inlined_call_operand.vmem [shape: f32[8,1], index: 3, kind: input, shape index: {}]   ;;  %s631_s4 = inlined_call_operand.vmem [shape: f32[8,1], index: 4, kind: input, shape index: {}]   ;;  %s632_s5 = inlined_call_operand.vmem [shape: f32[4,8,256], index: 5, kind: input, shape index: {}]   ;;  %s633_s6 = inlined_call_operand.vmem [shape: f32[1,2], index: 6, kind: input, shape index: {}]   ;;  %s634_s7 = inlined_call_operand.vmem [shape: f32[4,8,256], index: 7, kind: output, shape index: {}]  }
   0x1 LB: > { %s487_s25 = sadd.s32 4294967295, %s542_s24   ;;  %p491_p0 = scmp.ge.s32.totalorder %s542_s24, 1  ;;  %s542_s24 = sphi %s587_s24, %s17_s24  }
   0x2   : > { %p247_p1 = scmp.lt.s32.totalorder %s542_s24, 5 }
   0x4   : > { %p248_p2 = pnand %p491_p0, %p247_p1 }
   0x5   : > { %p284_p3 = scmp.lt.s32.totalorder (!%p248_p2), %s487_s25, 3 }
   0x6   : > { %251 = sbr.rel (%p248_p2) target bundleno = 427 (0x1ab), region = 48 }
   0xb   : > { %v303_v0 = vld [vmem:[%s629_s2] sm:$0xff]  ;;  %v544_v1 = vmov 0   ;;  %s636_s25 = smov (!%p284_p3, %s487_s25), 3  ;;  %vm319_vm0 = vcmask 130048   ;;  %v545_v17 = vmov 256.0   ;;  %v546_v29 = vmov 1  }
   0xc   : > { %526 = vset.pattern.permute.xlu0 %v544_v1  ;;  %527 = vset.pattern.permute.xlu1 %v544_v1  ;;  %s598_s28 = sshll.u32 %s636_s25, 4  ;;  %v300_v8 = vld [vmem:[%s628_s1] sm:$0xf]  ;;  %532 = vrcp.f32 %v545_v17 }
   0xd   : > { %306 = vperm.xlu0 %526, %v303_v0   ;;  %528 = vset.pattern.permute.xlu2 %v544_v1  ;;  %s288_s8 = scalar_lea.vmem %s627_s0, %s598_s28  ;;  %v389_v26 = vld [vmem:[%s631_s4] sm:$0xff]  ;;  %s293_s19 = scalar_lea.vmem %s632_s5, %s598_s28 }
   0xe   : > { %v500_v2 = vld [vmem:[%s288_s8] sm:$0xf]  ;;  %v514_v3 = vld [vmem:[%s288_s8 + $0x4] sm:$0xf0]  ;;  %v513_v4 = vld [vmem:[%s288_s8 + $0x4] sm:$0xf]  ;;  %392 = vperm.xlu2 %528, %v389_v26   ;;  %s298_s22 = scalar_lea.vmem %s634_s7, %s598_s28 }
   0xf   : > { %v501_v5 = vor.u32 %v514_v3, %v500_v2  ;;  %v502_v6 = vld [vmem:[%s288_s8 + $0x8] sm:$0xf0]  ;;  %v531_v33 = vld [vmem:[%s633_s6] ss:$0 sm:$0xff] }
  0x10   : > { %v505_v7 = vor.u32 %v513_v4, %v502_v6  ;;  %v381_v34 = vld [vmem:[%s630_s3] sm:$0xff]  ;;  %v400_v54 = vld [vmem:[%s293_s19 + $0x8] sm:$0xff] }
  0x11   : > { %330 = vmatpush.bf16.msra.mxu0 %v501_v5  ;;  %v399_v53 = vld [vmem:[%s293_s19] sm:$0xff] }
  0x12   : > { %343 = vmatpush.bf16.msra.mxu1 %v505_v7  ;;  %v533_v18 = vpop.eup %532 }
  0x13   : > { %v353_v19 = vmul.f32 256.0, %v533_v18  ;;  %vm357_vm1 = vweird.f32 %v533_v18 }
  0x14   : > { %506 = vmatmul.msk.bf16.vlgmr.msra.gmra.mxu0 %vm319_vm0, %v300_v8 }
  0x15   : > { %507 = vmatmul.msk.bf16.vlgmr.msra.gmra.mxu1 %vm319_vm0, %v300_v8  ;;  %v354_v20 = vsub.f32 1.0, %v353_v19  ;;  %530 = vset.pattern.permute.xlu0 %v546_v29 }
  0x16   : > { %405 = vperm.xlu2 %528, %v531_v33  }
  0x17   : > { %v355_v21 = vmul.f32 %v533_v18, %v354_v20 }
  0x19   : > { %v356_v22 = vadd.f32 %v533_v18, %v355_v21 }
  0x1b   : > { %v358_v23 = vsel %vm357_vm1, %v533_v18, %v356_v22 }
  0x1e   : > { %529 = vset.pattern.permute.xlu2 %v546_v29 }
  0x1f   : > { %411 = vperm.xlu2 %529, %v531_v33  }
  0x68   : > { %v393_v38 = vpop.permute.xlu2 %392 }
  0x70   : > { %v406_v44 = vpop.permute.xlu2 %405 }
  0x79   : > { %v412_v52 = vpop.permute.xlu2 %411 }
  0x7a   : > { %v414_v59 = vmul.f32 %v412_v52, %v399_v53  ;;  %v415_v60 = vmul.f32 %v412_v52, %v400_v54 }
  0x7f   : > { %v307_v9 = vpop.permute.xlu0 %306 }
  0x91   : > { %v332_v10 = vpop.f32.mrf.mxu0 }
  0x92   : > { %v333_v11 = vadd.f32 %v332_v10, %v307_v9  ;;  %v345_v12 = vpop.f32.mrf.mxu1 }
  0x93   : > { %v346_v13 = vadd.f32 %v345_v12, %v307_v9 }
  0x95   : > { %v349_v14 = vadd.f32 %v346_v13, %v333_v11 }
  0x97   : > { %350 = vadd.xlane.f32.xlu0 %v349_v14 }
  0x99   : > { %v334_v15 = vpop.f32.mrf.mxu0 }
  0x9a   : > { %v347_v16 = vpop.f32.mrf.mxu1 }
 0x10a   : > { %v351_v24 = vpop.xlane.xlu0 %350 }
 0x10b   : > { %v359_v25 = vmul.f32 %v358_v23, %v351_v24 }
 0x10d   : > { %v360_v27 = vsub.f32 %v333_v11, %v359_v25  ;;  %v361_v28 = vsub.f32 %v346_v13, %v359_v25 }
 0x10f   : > { %v362_v30 = vmul.f32 %v360_v27, %v360_v27  ;;  %v363_v31 = vmul.f32 %v361_v28, %v361_v28 }
 0x111   : > { %v364_v32 = vadd.f32 %v363_v31, %v362_v30 }
 0x113   : > { %365 = vadd.xlane.f32.xlu1 %v364_v32 }
 0x12c   : > { %384 = vperm.xlu1 %527, %v381_v34  }
 0x186   : > { %v366_v35 = vpop.xlane.xlu1 %365 }
 0x187   : > { %v367_v36 = vmul.f32 %v366_v35, %v358_v23 }
 0x189   : > { %v368_v37 = vadd.f32 1e-05, %v367_v36 }
 0x18b   : > { %534 = vrsqrt.f32 %v368_v37  ;;  %vm375_vm3 = vweird.f32 %v368_v37 }
 0x191   : > { %v535_v39 = vpop.eup %534 }
 0x192   : > { %v370_v40 = vmul.f32 %v535_v39, %v368_v37  ;;  %vm376_vm2 = vweird.f32 %v535_v39 }
 0x193   : > { %vm377_vm4 = vmor %vm375_vm3, %vm376_vm2 }
 0x194   : > { %v371_v41 = vmul.f32 %v535_v39, %v370_v40 }
 0x196   : > { %v372_v42 = vmul.f32 0.5, %v371_v41 }
 0x198   : > { %v373_v43 = vsub.f32 1.5, %v372_v42 }
 0x19a   : > { %v374_v45 = vmul.f32 %v535_v39, %v373_v43 }
 0x19c   : > { %v378_v46 = vsel %vm377_vm4, %v535_v39, %v374_v45 }
 0x19d   : > { %v379_v47 = vmul.f32 %v378_v46, %v360_v27  ;;  %v380_v48 = vmul.f32 %v378_v46, %v361_v28 }
 0x19e   : > { %v385_v49 = vpop.permute.xlu1 %384 }
 0x19f   : > { %v387_v50 = vmul.f32 %v385_v49, %v379_v47  ;;  %v388_v51 = vmul.f32 %v385_v49, %v380_v48 }
 0x1a1   : > { %v395_v55 = vadd.f32 %v393_v38, %v387_v50  ;;  %v396_v56 = vadd.f32 %v393_v38, %v388_v51 }
 0x1a3   : > { %v397_v57 = vmax.f32 %v395_v55, 0.0  ;;  %v398_v58 = vmax.f32 %v396_v56, 0.0 }
 0x1a5   : > { %v408_v61 = vmul.f32 %v406_v44, %v397_v57  ;;  %v409_v62 = vmul.f32 %v406_v44, %v398_v58 }
 0x1a7   : > { %v416_v63 = vadd.f32 %v414_v59, %v408_v61  ;;  %v417_v0 = vadd.f32 %v415_v60, %v409_v62 }
 0x1a9   : > { %418 = vst [vmem:[%s298_s22] sm:$0xff] %v416_v63 }
 0x1aa   : > { %419 = vst [vmem:[%s298_s22 + $0x8] sm:$0xff] %v417_v0 }
 0x1ab PF: > { %s17_s24 = sadd.s32 1, %s542_s24  }
 0x1ac   : > { %p14_p4 = scmp.ge.s32.totalorder %s17_s24, 6  }
 0x1ae   :  { %16 = sbr.rel (!%p14_p4) target bundleno = 1 (0x1), region = 81 }

// kernel: ffmef_forward.74
= control target key start
LH: loop header
LB: loop body
LE: loop exit
PB: predicated region body
PF: predicated region fallthrough
CT: control target
= control target key end

     0   :  { %s646_s24 = smov 0   ;;  %s703_s0 = inlined_call_operand.vmem [shape: f32[2,8,256], index: 0, kind: input, shape index: {}]   ;;  %s704_s1 = inlined_call_operand.vmem [shape: f32[2,8,256], index: 1, kind: input, shape index: {}]   ;;  %s705_s2 = inlined_call_operand.vmem [shape: bf16[8,16], index: 2, kind: input, shape index: {}]   ;;  %s706_s3 = inlined_call_operand.vmem [shape: f32[8,1], index: 3, kind: input, shape index: {}]   ;;  %s707_s4 = inlined_call_operand.vmem [shape: bf16[2,8], index: 4, kind: input, shape index: {}]   ;;  %s708_s5 = inlined_call_operand.vmem [shape: f32[2,1], index: 5, kind: input, shape index: {}]   ;;  %s709_s6 = inlined_call_operand.vmem [shape: f32[2,8,256], index: 6, kind: output, shape index: {0}]   ;;  %s710_s7 = inlined_call_operand.vmem [shape: f32[2,8,256], index: 7, kind: output, shape index: {1}]  }
   0x1 LB: > { %s554_s25 = sadd.s32 4294967295, %s603_s24   ;;  %p558_p0 = scmp.ge.s32.totalorder %s603_s24, 1  ;;  %s603_s24 = sphi %s646_s24, %s18_s24  }
   0x2   : > { %p250_p1 = scmp.lt.s32.totalorder %s603_s24, 3 }
   0x4   : > { %p251_p2 = pnand %p558_p0, %p250_p1 }
   0x5   : > { %p292_p3 = scmp.lt.s32.totalorder (!%p251_p2), %s554_s25, 1 }
   0x6   : > { %254 = sbr.rel (%p251_p2) target bundleno = 327 (0x147), region = 44 }
   0xb   : > { %v320_v0 = vld [vmem:[%s706_s3] sm:$0xff]  ;;  %v605_v1 = vmov 0   ;;  %s712_s25 = smov (!%p292_p3, %s554_s25), 1  ;;  %vm326_vm0 = vcmask 130048   ;;  %vm371_vm1 = vcmask 1043456   ;;  %vm367_vm2 = vcmask 64512  }
   0xc   : > { %588 = vset.pattern.permute.xlu0 %v605_v1  ;;  %s657_s28 = sshll.u32 %s712_s25, 4  ;;  %v361_v7 = vld [vmem:[%s708_s5] sm:$0x3] }
   0xd   : > { %323 = vperm.xlu0 %588, %v320_v0   ;;  %s296_s8 = scalar_lea.vmem %s703_s0, %s657_s28  ;;  %s301_s11 = scalar_lea.vmem %s704_s1, %s657_s28  ;;  %v319_v9 = vld [vmem:[%s705_s2] sm:$0xf] }
   0xe   : > { %v667_v2 = vld [vmem:[%s296_s8] sm:$0xff]  ;;  %v671_v4 = vld [vmem:[%s296_s8 + $0x8] sm:$0xff]  ;;  %s306_s20 = scalar_lea.vmem %s709_s6, %s657_s28  ;;  %s311_s23 = scalar_lea.vmem %s710_s7, %s657_s28 }
   0xf   : > { %v669_v3 = vld [vmem:[%s301_s11] sm:$0xff]  ;;  %v675_v6 = vld [vmem:[%s301_s11 + $0x8] sm:$0xff] }
  0x10   : > { %v317_v5 = vpack.c.bf16 %v669_v3, %v667_v2  ;;  %v318_v8 = vpack.c.bf16 %v675_v6, %v671_v4  ;;  %v360_v22 = vld [vmem:[%s707_s4] sm:$0x1] }
  0x12   : > { %337 = vmatpush.bf16.msra.mxu0 %v317_v5  ;;  %350 = vmatpush.bf16.msra.mxu1 %v318_v8 }
  0x15   : > { %364 = vperm.xlu0 %588, %v361_v7   ;;  %567 = vmatmul.msk.bf16.vlgmr.msra.gmra.mxu0 %vm326_vm0, %v319_v9 }
  0x16   : > { %568 = vmatmul.msk.bf16.vlgmr.msra.gmra.mxu1 %vm326_vm0, %v319_v9 }
  0x7f   : > { %v324_v10 = vpop.permute.xlu0 %323 }
  0x87   : > { %v365_v24 = vpop.permute.xlu0 %364 }
  0x92   : > { %v339_v11 = vpop.f32.mrf.mxu0 }
  0x93   : > { %v340_v12 = vadd.f32 %v339_v11, %v324_v10  ;;  %v352_v13 = vpop.f32.mrf.mxu1 }
  0x94   : > { %v353_v14 = vadd.f32 %v352_v13, %v324_v10 }
  0x95   : > { %v356_v15 = vmax.f32 %v340_v12, 0.0 }
  0x96   : > { %v357_v16 = vmax.f32 %v353_v14, 0.0 }
  0x97   : > { %v358_v17 = vpack.c.bf16 %v356_v15, %v356_v15 }
  0x98   : > { %v359_v18 = vpack.c.bf16 %v357_v16, %v357_v16 }
  0x99   : > { %v373_v19 = vsel %vm371_vm1, %v358_v17, 0 }
  0x9a   : > { %v341_v20 = vpop.f32.mrf.mxu0  ;;  %385 = vmatpush.bf16.msra.mxu2 %v373_v19  ;;  %v376_v21 = vsel %vm371_vm1, %v359_v18, 0 }
  0x9b   : > { %v354_v23 = vpop.f32.mrf.mxu1  ;;  %398 = vmatpush.bf16.msra.mxu3 %v376_v21 }
  0x9d   : > { %569 = vmatmul.msk.bf16.vlgmr.msra.gmra.mxu2 %vm367_vm2, %v360_v22 }
  0x9e   : > { %570 = vmatmul.msk.bf16.vlgmr.msra.gmra.mxu3 %vm367_vm2, %v360_v22 }
 0x120   : > { %v387_v25 = vpop.f32.mrf.mxu2 }
 0x121   : > { %v388_v26 = vadd.f32 %v387_v25, %v365_v24  ;;  %v400_v27 = vpop.f32.mrf.mxu3 }
 0x122   : > { %v401_v28 = vadd.f32 %v400_v27, %v365_v24 }
 0x123   : > { %v571_v29 = vmul.f32 -1.442695, %v388_v26 }
 0x124   : > { %v572_v30 = vmul.f32 -1.442695, %v401_v28 }
 0x125   : > { %589 = vpow2.f32 %v571_v29 }
 0x126   : > { %591 = vpow2.f32 %v572_v30 }
 0x128   : > { %v389_v31 = vpop.f32.mrf.mxu2 }
 0x129   : > { %v402_v32 = vpop.f32.mrf.mxu3 }
 0x12b   : > { %v590_v33 = vpop.eup %589 }
 0x12c   : > { %v592_v34 = vpop.eup %591  ;;  %v410_v35 = vadd.f32 1.0, %v590_v33 }
 0x12d   : > { %v411_v36 = vadd.f32 1.0, %v592_v34 }
 0x12e   : > { %593 = vrcp.f32 %v410_v35  ;;  %v423_v42 = vand.u32 2147483648, %v410_v35  ;;  %v421_v45 = vand.u32 2147483647, %v410_v35  ;;  %vm417_vm5 = vweird.f32 %v410_v35 }
 0x12f   : > { %595 = vrcp.f32 %v411_v36  ;;  %v438_v46 = vand.u32 2147483648, %v411_v36  ;;  %v436_v48 = vand.u32 2147483647, %v411_v36  ;;  %vm432_vm7 = vweird.f32 %v411_v36 }
 0x130   : > { %v424_v50 = vor.u32 1.1754944e-38, %v423_v42  ;;  %vm422_vm8 = vcmp.eq.f32.partialorder %v421_v45, 8.507059e+37 }
 0x131   : > { %v439_v53 = vor.u32 1.1754944e-38, %v438_v46  ;;  %vm437_vm10 = vcmp.eq.f32.partialorder %v436_v48, 8.507059e+37 }
 0x134   : > { %v594_v37 = vpop.eup %593 }
 0x135   : > { %v596_v38 = vpop.eup %595  ;;  %v413_v39 = vmul.f32 %v594_v37, %v410_v35  ;;  %vm418_vm3 = vweird.f32 %v594_v37 }
 0x136   : > { %v428_v40 = vmul.f32 %v596_v38, %v411_v36  ;;  %vm433_vm4 = vweird.f32 %v596_v38  ;;  %vm419_vm6 = vmor %vm417_vm5, %vm418_vm3 }
 0x137   : > { %v414_v41 = vsub.f32 1.0, %v413_v39  ;;  %vm434_vm9 = vmor %vm432_vm7, %vm433_vm4 }
 0x138   : > { %v429_v43 = vsub.f32 1.0, %v428_v40 }
 0x139   : > { %v415_v44 = vmul.f32 %v594_v37, %v414_v41 }
 0x13a   : > { %v430_v47 = vmul.f32 %v596_v38, %v429_v43 }
 0x13b   : > { %v416_v49 = vadd.f32 %v594_v37, %v415_v44 }
 0x13c   : > { %v431_v51 = vadd.f32 %v596_v38, %v430_v47 }
 0x13d   : > { %v420_v52 = vsel %vm419_vm6, %v594_v37, %v416_v49 }
 0x13e   : > { %v425_v54 = vsel %vm422_vm8, %v424_v50, %v420_v52  ;;  %v435_v55 = vsel %vm434_vm9, %v596_v38, %v431_v51 }
 0x13f   : > { %v442_v56 = vperm.slane %v425_v54, 0  ;;  %v448_v57 = vperm.slane %v425_v54, 1  ;;  %v440_v58 = vsel %vm437_vm10, %v439_v53, %v435_v55 }
 0x140   : > { %v443_v59 = vperm.slane %v440_v58, 0  ;;  %v449_v60 = vperm.slane %v440_v58, 1 }
 0x141   : > { %v444_v61 = vmul.f32 %v442_v56, %v667_v2  ;;  %v450_v62 = vmul.f32 %v448_v57, %v669_v3 }
 0x142   : > { %v445_v63 = vmul.f32 %v443_v59, %v671_v4  ;;  %v451_v0 = vmul.f32 %v449_v60, %v675_v6 }
 0x143   : > { %446 = vst [vmem:[%s306_s20] sm:$0xff] %v444_v61 }
 0x144   : > { %452 = vst [vmem:[%s311_s23] sm:$0xff] %v450_v62 }
 0x145   : > { %447 = vst [vmem:[%s306_s20 + $0x8] sm:$0xff] %v445_v63 }
 0x146   : > { %453 = vst [vmem:[%s311_s23 + $0x8] sm:$0xff] %v451_v0 }
 0x147 PF: > { %s18_s24 = sadd.s32 1, %s603_s24  }
 0x148   : > { %p15_p4 = scmp.ge.s32.totalorder %s18_s24, 4  }
 0x14a   :  { %17 = sbr.rel (!%p15_p4) target bundleno = 1 (0x1), region = 89 }

// kernel: ffmef_forward.56
= control target key start
LH: loop header
LB: loop body
LE: loop exit
PB: predicated region body
PF: predicated region fallthrough
CT: control target
= control target key end

     0   :  { %s445_s12 = smov 0   ;;  %s447_s13 = smov 0   ;;  %s484_s0 = inlined_call_operand.vmem [shape: bf16[4,16,256], index: 0, kind: input, shape index: {}]   ;;  %s485_s1 = inlined_call_operand.vmem [shape: bf16[8,16], index: 1, kind: input, shape index: {}]   ;;  %s486_s2 = inlined_call_operand.vmem [shape: f32[8,1], index: 2, kind: input, shape index: {}]   ;;  %s487_s3 = inlined_call_operand.vmem [shape: f32[4,8,256], index: 3, kind: output, shape index: {}]  }
   0x1   :  { %s449_s14 = smov 0  }
   0x2 LB: > { %s25_s15 = sadd.s32 1, %s418_s13  ;;  %p353_p0 = scmp.ge.s32.totalorder %s422_s14, 1  ;;  %s422_s14 = sphi %s449_s14, %s13_s14   ;;  %s418_s13 = sphi %s447_s13, %s489_s13   ;;  %s414_s12 = sphi %s445_s12, %s488_s12  }
   0x3   : > { %p27_p1 = scmp.ge.s32.totalorder %s25_s15, 4  ;;  %p158_p2 = scmp.lt.s32.totalorder %s422_s14, 5 }
   0x5   : > { %s491_s15 = smov (%p27_p1, %s25_s15), 0  ;;  %p159_p3 = pnand %p353_p0, %p158_p2 }
   0x6   : > { %p191_p4 = scmp.lt.s32.totalorder (!%p159_p3), %s414_s12, 3 }
   0x7   : > { %162 = sbr.rel (%p159_p3) target bundleno = 156 (0x9c), region = 32 }
   0xc   : > { %v214_v0 = vld [vmem:[%s486_s2] sm:$0xff]  ;;  %v424_v1 = vmov 0   ;;  %s493_s12 = smov (!%p191_p4, %s414_s12), 3  ;;  %vm230_vm0 = vcmask 130048  }
   0xd   : > { %399 = vset.pattern.permute.xlu0 %v424_v1  ;;  %s370_s18 = sshll.u32 %s493_s12, 4  ;;  %v211_v8 = vld [vmem:[%s485_s1] sm:$0xf] }
   0xe   : > { %217 = vperm.xlu0 %399, %v214_v0   ;;  %s198_s21 = scalar_lea.vmem %s484_s0, %s370_s18  ;;  %s208_s26 = scalar_lea.vmem %s487_s3, %s370_s18 }
   0xf   : > { %v360_v2 = vld [vmem:[%s198_s21] sm:$0xf]  ;;  %v373_v3 = vld [vmem:[%s198_s21 + $0x4] sm:$0xf0]  ;;  %v372_v4 = vld [vmem:[%s198_s21 + $0x4] sm:$0xf] }
  0x10   : > { %v361_v5 = vor.u32 %v373_v3, %v360_v2  ;;  %v362_v6 = vld [vmem:[%s198_s21 + $0x8] sm:$0xf0] }
  0x11   : > { %v365_v7 = vor.u32 %v372_v4, %v362_v6 }
  0x12   : > { %241 = vmatpush.bf16.msra.mxu0 %v361_v5 }
  0x13   : > { %254 = vmatpush.bf16.msra.mxu1 %v365_v7 }
  0x15   : > { %366 = vmatmul.msk.bf16.vlgmr.msra.gmra.mxu0 %vm230_vm0, %v211_v8 }
  0x16   : > { %367 = vmatmul.msk.bf16.vlgmr.msra.gmra.mxu1 %vm230_vm0, %v211_v8 }
  0x80   : > { %v218_v9 = vpop.permute.xlu0 %217 }
  0x92   : > { %v243_v10 = vpop.f32.mrf.mxu0 }
  0x93   : > { %v244_v11 = vadd.f32 %v243_v10, %v218_v9  ;;  %v256_v12 = vpop.f32.mrf.mxu1 }
  0x94   : > { %v257_v13 = vadd.f32 %v256_v12, %v218_v9 }
  0x95   : > { %260 = vst [vmem:[%s208_s26] sm:$0xff] %v244_v11 }
  0x96   : > { %261 = vst [vmem:[%s208_s26 + $0x8] sm:$0xff] %v257_v13 }
  0x9a   : > { %v245_v14 = vpop.f32.mrf.mxu0 }
  0x9b   : > { %v258_v15 = vpop.f32.mrf.mxu1 }
  0x9c PF: > { %s13_s14 = sadd.s32 1, %s422_s14   ;;  %s488_s12 = smov %s418_s13 }
  0x9d   : > { %p10_p5 = scmp.ge.s32.totalorder %s13_s14, 6   ;;  %s489_s13 = smov %s491_s15 }
  0x9f   :  { %12 = sbr.rel (!%p10_p5) target bundleno = 2 (0x2), region = 62 }

// kernel: ffmef_forward.75
= control target key start
LH: loop header
LB: loop body
LE: loop exit
PB: predicated region body
PF: predicated region fallthrough
CT: control target
= control target key end

     0   :  { %s525_s12 = smov 0   ;;  %s527_s13 = smov 0   ;;  %s587_s0 = inlined_call_operand.vmem [shape: bf16[4,72,256], index: 0, kind: input, shape index: {}]   ;;  %s588_s1 = inlined_call_operand.vmem [shape: bf16[8,72], index: 1, kind: input, shape index: {}]   ;;  %s589_s2 = inlined_call_operand.vmem [shape: f32[8,1], index: 2, kind: input, shape index: {}]   ;;  %s590_s3 = inlined_call_operand.vmem [shape: f32[4,8,256], index: 3, kind: output, shape index: {}]  }
   0x1   :  { %s529_s14 = smov 0  }
   0x2 LB: > { %s25_s15 = sadd.s32 1, %s498_s13  ;;  %p404_p0 = scmp.ge.s32.totalorder %s502_s14, 1  ;;  %s502_s14 = sphi %s529_s14, %s13_s14   ;;  %s498_s13 = sphi %s527_s13, %s592_s13   ;;  %s494_s12 = sphi %s525_s12, %s591_s12  }
   0x3   : > { %p27_p1 = scmp.ge.s32.totalorder %s25_s15, 4  ;;  %p158_p2 = scmp.lt.s32.totalorder %s502_s14, 5 }
   0x5   : > { %s594_s15 = smov (%p27_p1, %s25_s15), 0  ;;  %p159_p3 = pnand %p404_p0, %p158_p2 }
   0x6   : > { %p191_p4 = scmp.lt.s32.totalorder (!%p159_p3), %s494_s12, 3 }
   0x7   : > { %162 = sbr.rel (%p159_p3) target bundleno = 175 (0xaf), region = 32 }
   0xc   : > { %v504_v0 = vmov 0   ;;  %v221_v1 = vld [vmem:[%s589_s2] sm:$0xff]  ;;  %s596_s12 = smov (!%p191_p4, %s494_s12), 3  ;;  %vm276_vm0 = vcmask 1043456   ;;  %vm272_vm1 = vcmask 588800  }
   0xd   : > { %479 = vset.pattern.permute.xlu0 %v504_v0  ;;  %s453_s18 = smul.u32 72, %s596_s12  ;;  %v211_v33 = vld [vmem:[%s588_s1] sm:$0xf]  ;;  %s444_s24 = sshll.u32 %s596_s12, 4 }
   0xe   : > { %224 = vperm.xlu0 %479, %v221_v1   ;;  %s208_s27 = scalar_lea.vmem %s590_s3, %s444_s24 }
   0xf   : > { %s552_s21 = scalar_lea.vmem %s587_s0, %s453_s18 }
  0x10   : > { %v220_v2 = vld [vmem:[%s552_s21 + $0x40] sm:$0xff]  ;;  %v434_v5 = vld [vmem:[%s552_s21 + $0x30] sm:$0xf]  ;;  %v452_v8 = vld [vmem:[%s552_s21 + $0x34] sm:$0xf0] }
  0x11   : > { %v252_v3 = vunpack.c.l.b16 %v220_v2  ;;  %v253_v4 = vunpack.c.h.b16 %v220_v2  ;;  %v451_v9 = vld [vmem:[%s552_s21 + $0x34] sm:$0xf]  ;;  %v436_v10 = vld [vmem:[%s552_s21 + $0x38] sm:$0xf0]  ;;  %v435_v13 = vor.u32 %v452_v8, %v434_v5  ;;  %v426_v15 = vld [vmem:[%s552_s21 + $0x20] sm:$0xf] }
  0x12   : > { %v439_v14 = vor.u32 %v451_v9, %v436_v10  ;;  %v450_v16 = vld [vmem:[%s552_s21 + $0x24] sm:$0xf0]  ;;  %v449_v17 = vld [vmem:[%s552_s21 + $0x24] sm:$0xf]  ;;  %v428_v18 = vld [vmem:[%s552_s21 + $0x28] sm:$0xf0] }
  0x13   : > { %v262_v6 = vpack.c.b16 %v252_v3, %v252_v3  ;;  %v263_v7 = vpack.c.b16 %v253_v4, %v253_v4  ;;  %v427_v19 = vor.u32 %v450_v16, %v426_v15  ;;  %v431_v20 = vor.u32 %v449_v17, %v428_v18  ;;  %v418_v21 = vld [vmem:[%s552_s21 + $0x10] sm:$0xf]  ;;  %v448_v22 = vld [vmem:[%s552_s21 + $0x14] sm:$0xf0]  ;;  %v447_v23 = vld [vmem:[%s552_s21 + $0x14] sm:$0xf] }
  0x14   : > { %v420_v24 = vld [vmem:[%s552_s21 + $0x18] sm:$0xf0]  ;;  %v419_v25 = vor.u32 %v448_v22, %v418_v21  ;;  %v410_v27 = vld [vmem:[%s552_s21] sm:$0xf]  ;;  %v446_v28 = vld [vmem:[%s552_s21 + $0x4] sm:$0xf0] }
  0x15   : > { %v278_v11 = vsel %vm276_vm0, %v262_v6, 0  ;;  %v281_v12 = vsel %vm276_vm0, %v263_v7, 0  ;;  %v423_v26 = vor.u32 %v447_v23, %v420_v24  ;;  %v445_v29 = vld [vmem:[%s552_s21 + $0x4] sm:$0xf]  ;;  %v412_v30 = vld [vmem:[%s552_s21 + $0x8] sm:$0xf0]  ;;  %v411_v31 = vor.u32 %v446_v28, %v410_v27 }
  0x16   : > { %286 = vmatpush.bf16.msra.mxu0 %v278_v11  ;;  %299 = vmatpush.bf16.msra.mxu1 %v281_v12  ;;  %v415_v32 = vor.u32 %v445_v29, %v412_v30 }
  0x1a   : > { %287 = vmatpush.bf16.msra.mxu0 %v435_v13  ;;  %300 = vmatpush.bf16.msra.mxu1 %v439_v14 }
  0x1e   : > { %288 = vmatpush.bf16.msra.mxu0 %v427_v19  ;;  %301 = vmatpush.bf16.msra.mxu1 %v431_v20 }
  0x22   : > { %289 = vmatpush.bf16.msra.mxu0 %v419_v25  ;;  %302 = vmatpush.bf16.msra.mxu1 %v423_v26 }
  0x26   : > { %290 = vmatpush.bf16.msra.mxu0 %v411_v31  ;;  %303 = vmatpush.bf16.msra.mxu1 %v415_v32 }
  0x29   : > { %440 = vmatmul.msk.bf16.vlgmr.msra.gmra.mxu0 %vm272_vm1, %v211_v33  ;;  %441 = vmatmul.msk.bf16.vlgmr.msra.gmra.mxu1 %vm272_vm1, %v211_v33 }
  0x80   : > { %v225_v34 = vpop.permute.xlu0 %224 }
  0xa6   : > { %v292_v35 = vpop.f32.mrf.mxu0  ;;  %v305_v36 = vpop.f32.mrf.mxu1 }
  0xa7   : > { %v293_v37 = vadd.f32 %v292_v35, %v225_v34  ;;  %v306_v38 = vadd.f32 %v305_v36, %v225_v34 }
  0xa9   : > { %v309_v39 = vmax.f32 %v293_v37, 0.0  ;;  %v310_v40 = vmax.f32 %v306_v38, 0.0 }
  0xab   : > { %311 = vst [vmem:[%s208_s27] sm:$0xff] %v309_v39 }
  0xac   : > { %312 = vst [vmem:[%s208_s27 + $0x8] sm:$0xff] %v310_v40 }
  0xae   : > { %v294_v41 = vpop.f32.mrf.mxu0  ;;  %v307_v42 = vpop.f32.mrf.mxu1 }
  0xaf PF: > { %s13_s14 = sadd.s32 1, %s502_s14   ;;  %s591_s12 = smov %s498_s13 }
  0xb0   : > { %p10_p5 = scmp.ge.s32.totalorder %s13_s14, 6   ;;  %s592_s13 = smov %s594_s15 }
  0xb2   :  { %12 = sbr.rel (!%p10_p5) target bundleno = 2 (0x2), region = 62 }

// kernel: ffmef_forward.55
= control target key start
LH: loop header
LB: loop body
LE: loop exit
PB: predicated region body
PF: predicated region fallthrough
CT: control target
= control target key end

     0   :  { %s671_s18 = smov 0   ;;  %s748_s0 = inlined_call_operand.vmem [shape: bf16[4,144,256], index: 0, kind: input, shape index: {}]   ;;  %s749_s1 = inlined_call_operand.vmem [shape: bf16[8,144], index: 1, kind: input, shape index: {}]   ;;  %s750_s2 = inlined_call_operand.vmem [shape: f32[8,1], index: 2, kind: input, shape index: {}]   ;;  %s751_s3 = inlined_call_operand.vmem [shape: f32[8,1], index: 3, kind: input, shape index: {}]   ;;  %s752_s4 = inlined_call_operand.vmem [shape: f32[8,1], index: 4, kind: input, shape index: {}]   ;;  %s753_s5 = inlined_call_operand.vmem [shape: f32[4,8,256], index: 5, kind: output, shape index: {}]  }
   0x1 LB: > { %s510_s19 = sadd.s32 4294967295, %s637_s18   ;;  %p514_p0 = scmp.ge.s32.totalorder %s637_s18, 1  ;;  %s637_s18 = sphi %s671_s18, %s15_s18  }
   0x2   : > { %p187_p1 = scmp.lt.s32.totalorder %s637_s18, 5 }
   0x4   : > { %p188_p2 = pnand %p514_p0, %p187_p1 }
   0x5   : > { %p215_p3 = scmp.lt.s32.totalorder (!%p188_p2), %s510_s19, 3 }
   0x6   : > { %191 = sbr.rel (%p188_p2) target bundleno = 460 (0x1cc), region = 40 }
   0xb   : > { %s755_s19 = smov (!%p215_p3, %s510_s19), 3  ;;  %v698_v11 = vld [vmem:[%s749_s1] sm:$0xff]  ;;  %vm347_vm0 = vcmask 130048   ;;  %v639_v38 = vmov 0  }
   0xc   : > { %s613_s20 = smul.u32 144, %s755_s19  ;;  %v253_v17 = vunpack.c.h.b16 %v698_v11  ;;  %v245_v35 = vld [vmem:[%s750_s2] sm:$0xff]  ;;  %624 = vset.pattern.permute.xlu0 %v639_v38  ;;  %625 = vset.pattern.permute.xlu1 %v639_v38  ;;  %v252_v57 = vunpack.c.l.b16 %v698_v11  ;;  %v640_v11 = vmov 256.0   ;;  %s594_s7 = sshll.u32 %s755_s19, 4 }
   0xd   : > { %248 = vperm.xlu0 %624, %v245_v35   ;;  %626 = vset.pattern.permute.xlu2 %v639_v38  ;;  %627 = vrcp.f32 %v640_v11  ;;  %s224_s10 = scalar_lea.vmem %s753_s5, %s594_s7 }
   0xe   : > { %s685_s23 = scalar_lea.vmem %s748_s0, %s613_s20  ;;  %v255_v27 = vpack.c.b16 %v253_v17, %v253_v17  ;;  %v254_v60 = vpack.c.b16 %v252_v57, %v252_v57 }
   0xf   : > { %v576_v0 = vld [vmem:[%s685_s23 + $0x70] sm:$0xf]  ;;  %v610_v1 = vld [vmem:[%s685_s23 + $0x74] sm:$0xf0]  ;;  %v609_v2 = vld [vmem:[%s685_s23 + $0x74] sm:$0xf] }
  0x10   : > { %v577_v3 = vor.u32 %v610_v1, %v576_v0  ;;  %v578_v4 = vld [vmem:[%s685_s23 + $0x78] sm:$0xf0]  ;;  %v568_v5 = vld [vmem:[%s685_s23 + $0x60] sm:$0xf]  ;;  %v608_v6 = vld [vmem:[%s685_s23 + $0x64] sm:$0xf0] }
  0x11   : > { %v581_v7 = vor.u32 %v609_v2, %v578_v4  ;;  %v607_v8 = vld [vmem:[%s685_s23 + $0x64] sm:$0xf]  ;;  %v570_v9 = vld [vmem:[%s685_s23 + $0x68] sm:$0xf0]  ;;  %v569_v10 = vor.u32 %v608_v6, %v568_v5  ;;  %v560_v13 = vld [vmem:[%s685_s23 + $0x50] sm:$0xf] }
  0x12   : > { %351 = vmatpush.bf16.msra.mxu0 %v577_v3  ;;  %v573_v12 = vor.u32 %v607_v8, %v570_v9  ;;  %v606_v14 = vld [vmem:[%s685_s23 + $0x54] sm:$0xf0]  ;;  %v605_v15 = vld [vmem:[%s685_s23 + $0x54] sm:$0xf]  ;;  %v562_v16 = vld [vmem:[%s685_s23 + $0x58] sm:$0xf0] }
  0x13   : > { %377 = vmatpush.bf16.msra.mxu2 %v581_v7  ;;  %v561_v18 = vor.u32 %v606_v14, %v560_v13  ;;  %v552_v19 = vld [vmem:[%s685_s23 + $0x40] sm:$0xf]  ;;  %v565_v20 = vor.u32 %v605_v15, %v562_v16  ;;  %v604_v21 = vld [vmem:[%s685_s23 + $0x44] sm:$0xf0]  ;;  %v611_v22 = vld [vmem:[%s685_s23 + $0x84] sm:$0xf] }
  0x14   : > { %v586_v23 = vld [vmem:[%s685_s23 + $0x88] sm:$0xf0]  ;;  %v603_v24 = vld [vmem:[%s685_s23 + $0x44] sm:$0xf]  ;;  %v584_v28 = vld [vmem:[%s685_s23 + $0x80] sm:$0xf]  ;;  %v553_v29 = vor.u32 %v604_v21, %v552_v19 }
  0x15   : > { %v554_v25 = vld [vmem:[%s685_s23 + $0x48] sm:$0xf0]  ;;  %v589_v26 = vor.u32 %v611_v22, %v586_v23  ;;  %v612_v30 = vld [vmem:[%s685_s23 + $0x84] sm:$0xf0]  ;;  %v544_v32 = vld [vmem:[%s685_s23 + $0x30] sm:$0xf] }
  0x16   : > { %352 = vmatpush.bf16.msra.mxu0 %v569_v10  ;;  %v557_v31 = vor.u32 %v603_v24, %v554_v25  ;;  %v602_v33 = vld [vmem:[%s685_s23 + $0x34] sm:$0xf0]  ;;  %v585_v34 = vor.u32 %v612_v30, %v584_v28  ;;  %v601_v36 = vld [vmem:[%s685_s23 + $0x34] sm:$0xf]  ;;  %v546_v37 = vld [vmem:[%s685_s23 + $0x38] sm:$0xf0] }
  0x17   : > { %378 = vmatpush.bf16.msra.mxu2 %v573_v12  ;;  %397 = vmatpush.bf16.msra.mxu3 %v589_v26  ;;  %v545_v39 = vor.u32 %v602_v33, %v544_v32  ;;  %v549_v40 = vor.u32 %v601_v36, %v546_v37  ;;  %v536_v41 = vld [vmem:[%s685_s23 + $0x20] sm:$0xf]  ;;  %v600_v42 = vld [vmem:[%s685_s23 + $0x24] sm:$0xf0]  ;;  %v599_v43 = vld [vmem:[%s685_s23 + $0x24] sm:$0xf]  ;;  %v628_v12 = vpop.eup %627 }
  0x18   : > { %371 = vmatpush.bf16.msra.mxu1 %v585_v34  ;;  %v538_v44 = vld [vmem:[%s685_s23 + $0x28] sm:$0xf0]  ;;  %v537_v45 = vor.u32 %v600_v42, %v536_v41  ;;  %v528_v47 = vld [vmem:[%s685_s23 + $0x10] sm:$0xf]  ;;  %v598_v48 = vld [vmem:[%s685_s23 + $0x14] sm:$0xf0]  ;;  %vm411_vm1 = vweird.f32 %v628_v12 }
  0x19   : > { %v541_v46 = vor.u32 %v599_v43, %v538_v44  ;;  %v597_v49 = vld [vmem:[%s685_s23 + $0x14] sm:$0xf]  ;;  %v530_v50 = vld [vmem:[%s685_s23 + $0x18] sm:$0xf0]  ;;  %v529_v51 = vor.u32 %v598_v48, %v528_v47  ;;  %v520_v53 = vld [vmem:[%s685_s23] sm:$0xf] }
  0x1a   : > { %353 = vmatpush.bf16.msra.mxu0 %v561_v18  ;;  %591 = vmatmul.msk.bf16.vlgmr.msra.gmra.mxu3 %vm347_vm0, %v255_v27  ;;  %v533_v52 = vor.u32 %v597_v49, %v530_v50  ;;  %v596_v54 = vld [vmem:[%s685_s23 + $0x4] sm:$0xf0]  ;;  %v595_v55 = vld [vmem:[%s685_s23 + $0x4] sm:$0xf]  ;;  %v522_v56 = vld [vmem:[%s685_s23 + $0x8] sm:$0xf0] }
  0x1b   : > { %379 = vmatpush.bf16.msra.mxu2 %v565_v20  ;;  %590 = vmatmul.msk.bf16.vlgmr.msra.gmra.mxu1 %vm347_vm0, %v255_v27  ;;  %v521_v58 = vor.u32 %v596_v54, %v520_v53  ;;  %v525_v59 = vor.u32 %v595_v55, %v522_v56  ;;  %v407_v13 = vmul.f32 256.0, %v628_v12  ;;  %v443_v20 = vld [vmem:[%s752_s4] sm:$0xff] }
  0x1c   : > { %446 = vperm.xlu2 %626, %v443_v20   ;;  %v435_v26 = vld [vmem:[%s751_s3] sm:$0xff] }
  0x1d   : > { %v408_v14 = vsub.f32 1.0, %v407_v13 }
  0x1e   : > { %354 = vmatpush.bf16.msra.mxu0 %v553_v29 }
  0x1f   : > { %380 = vmatpush.bf16.msra.mxu2 %v557_v31  ;;  %v409_v15 = vmul.f32 %v628_v12, %v408_v14 }
  0x21   : > { %v410_v16 = vadd.f32 %v628_v12, %v409_v15 }
  0x22   : > { %355 = vmatpush.bf16.msra.mxu0 %v545_v39 }
  0x23   : > { %381 = vmatpush.bf16.msra.mxu2 %v549_v40  ;;  %v412_v17 = vsel %vm411_vm1, %v628_v12, %v410_v16 }
  0x26   : > { %356 = vmatpush.bf16.msra.mxu0 %v537_v45 }
  0x27   : > { %382 = vmatpush.bf16.msra.mxu2 %v541_v46 }
  0x2a   : > { %357 = vmatpush.bf16.msra.mxu0 %v529_v51 }
  0x2b   : > { %383 = vmatpush.bf16.msra.mxu2 %v533_v52 }
  0x2e   : > { %358 = vmatpush.bf16.msra.mxu0 %v521_v58 }
  0x2f   : > { %384 = vmatpush.bf16.msra.mxu2 %v525_v59 }
  0x31   : > { %359 = vmatmul.bf16.vlgmr.msra.gmra.mxu0 %v254_v60 }
  0x32   : > { %385 = vmatmul.bf16.vlgmr.msra.gmra.mxu2 %v254_v60 }
  0x76   : > { %v447_v40 = vpop.permute.xlu2 %446 }
  0x7f   : > { %v249_v2 = vpop.permute.xlu0 %248 }
  0x98   : > { %v373_v61 = vpop.f32.mrf.mxu1 }
  0x9d   : > { %v399_v62 = vpop.f32.mrf.mxu3 }
  0xa0   : > { %v375_v63 = vpop.f32.mrf.mxu1 }
  0xa5   : > { %v401_v0 = vpop.f32.mrf.mxu3 }
  0xae   : > { %v360_v1 = vpop.f32.mrf.mxu0 }
  0xaf   : > { %v361_v3 = vadd.f32 %v360_v1, %v249_v2 }
  0xb1   : > { %v374_v7 = vadd.f32 %v373_v61, %v361_v3 }
  0xb5   : > { %v386_v4 = vpop.f32.mrf.mxu2 }
  0xb6   : > { %v387_v5 = vadd.f32 %v386_v4, %v249_v2  ;;  %v362_v6 = vpop.f32.mrf.mxu0 }
  0xb8   : > { %v400_v8 = vadd.f32 %v399_v62, %v387_v5 }
  0xba   : > { %v403_v9 = vadd.f32 %v400_v8, %v374_v7 }
  0xbc   : > { %404 = vadd.xlane.f32.xlu0 %v403_v9 }
  0xbd   : > { %v388_v10 = vpop.f32.mrf.mxu2 }
 0x12f   : > { %v405_v18 = vpop.xlane.xlu0 %404 }
 0x130   : > { %v413_v19 = vmul.f32 %v412_v17, %v405_v18 }
 0x132   : > { %v414_v21 = vsub.f32 %v374_v7, %v413_v19  ;;  %v415_v22 = vsub.f32 %v400_v8, %v413_v19 }
 0x134   : > { %v416_v23 = vmul.f32 %v414_v21, %v414_v21  ;;  %v417_v24 = vmul.f32 %v415_v22, %v415_v22 }
 0x136   : > { %v418_v25 = vadd.f32 %v417_v24, %v416_v23 }
 0x138   : > { %419 = vadd.xlane.f32.xlu1 %v418_v25 }
 0x151   : > { %438 = vperm.xlu1 %625, %v435_v26  }
 0x1ab   : > { %v420_v27 = vpop.xlane.xlu1 %419 }
 0x1ac   : > { %v421_v28 = vmul.f32 %v420_v27, %v412_v17 }
 0x1ae   : > { %v422_v29 = vadd.f32 1e-05, %v421_v28 }
 0x1b0   : > { %629 = vrsqrt.f32 %v422_v29  ;;  %vm429_vm3 = vweird.f32 %v422_v29 }
 0x1b6   : > { %v630_v30 = vpop.eup %629 }
 0x1b7   : > { %v424_v31 = vmul.f32 %v630_v30, %v422_v29  ;;  %vm430_vm2 = vweird.f32 %v630_v30 }
 0x1b8   : > { %vm431_vm4 = vmor %vm429_vm3, %vm430_vm2 }
 0x1b9   : > { %v425_v32 = vmul.f32 %v630_v30, %v424_v31 }
 0x1bb   : > { %v426_v33 = vmul.f32 0.5, %v425_v32 }
 0x1bd   : > { %v427_v34 = vsub.f32 1.5, %v426_v33 }
 0x1bf   : > { %v428_v35 = vmul.f32 %v630_v30, %v427_v34 }
 0x1c1   : > { %v432_v36 = vsel %vm431_vm4, %v630_v30, %v428_v35 }
 0x1c2   : > { %v433_v37 = vmul.f32 %v432_v36, %v414_v21  ;;  %v434_v38 = vmul.f32 %v432_v36, %v415_v22 }
 0x1c3   : > { %v439_v39 = vpop.permute.xlu1 %438 }
 0x1c4   : > { %v441_v41 = vmul.f32 %v439_v39, %v433_v37  ;;  %v442_v42 = vmul.f32 %v439_v39, %v434_v38 }
 0x1c6   : > { %v449_v43 = vadd.f32 %v447_v40, %v441_v41  ;;  %v450_v44 = vadd.f32 %v447_v40, %v442_v42 }
 0x1c8   : > { %v451_v45 = vmax.f32 %v449_v43, 0.0  ;;  %v452_v46 = vmax.f32 %v450_v44, 0.0 }
 0x1ca   : > { %453 = vst [vmem:[%s224_s10] sm:$0xff] %v451_v45 }
 0x1cb   : > { %454 = vst [vmem:[%s224_s10 + $0x8] sm:$0xff] %v452_v46 }
 0x1cc PF: > { %s15_s18 = sadd.s32 1, %s637_s18  }
 0x1cd   : > { %p12_p4 = scmp.ge.s32.totalorder %s15_s18, 6  }
 0x1cf   :  { %14 = sbr.rel (!%p12_p4) target bundleno = 1 (0x1), region = 70 }

// kernel: ffmef_forward.73
= control target key start
LH: loop header
LB: loop body
LE: loop exit
PB: predicated region body
PF: predicated region fallthrough
CT: control target
= control target key end

     0   :  { %s451_s15 = smov 0   ;;  %s490_s0 = inlined_call_operand.vmem [shape: f32[4,9,256], index: 0, kind: input, shape index: {}]   ;;  %s491_s1 = inlined_call_operand.vmem [shape: f32[4,9,256], index: 1, kind: input, shape index: {}]   ;;  %s492_s2 = inlined_call_operand.vmem [shape: bf16[9,9], index: 2, kind: input, shape index: {}]   ;;  %s493_s3 = inlined_call_operand.vmem [shape: f32[9,1], index: 3, kind: input, shape index: {}]   ;;  %s494_s4 = inlined_call_operand.vmem [shape: f32[4,1,256], index: 4, kind: output, shape index: {}]  }
   0x1 LB: > { %s384_s16 = sadd.s32 4294967295, %s422_s15   ;;  %p388_p0 = scmp.ge.s32.totalorder %s422_s15, 1  ;;  %s422_s15 = sphi %s451_s15, %s14_s15  }
   0x2   : > { %p172_p1 = scmp.lt.s32.totalorder %s422_s15, 5 }
   0x4   : > { %p173_p2 = pnand %p388_p0, %p172_p1 }
   0x5   : > { %p202_p3 = scmp.lt.s32.totalorder (!%p173_p2), %s384_s16, 3 }
   0x6   : > { %176 = sbr.rel (%p173_p2) target bundleno = 180 (0xb4), region = 36 }
   0xb   : > { %vm246_vm0 = vcmask 1043456   ;;  %s496_s16 = smov (!%p202_p3, %s384_s16), 3  ;;  %v424_v0 = vmov 0   ;;  %v226_v1 = vld [vmem:[%s493_s3 + $0x8] sm:$0x1]  ;;  %vm247_vm1 = vcmask 1044480   ;;  %v314_v49 = vlaneseq }
   0xc   : > { %415 = vset.pattern.permute.xlu0 %v424_v0  ;;  %v425_v2 = vmov 65535   ;;  %s402_s19 = sshll.u32 %s496_s16, 5  ;;  %v396_v10 = vld [vmem:[%s492_s2] sm:$0xf]  ;;  %v404_v11 = vld [vmem:[%s492_s2] sm:$0x10] }
   0xd   : > { %v248_v3 = vsel %vm246_vm0, 4294967295, %v425_v2  ;;  %234 = vperm.xlu0 %415, %v226_v1   ;;  %s206_s22 = scalar_lea.vmem %s490_s0, %s402_s19  ;;  %v225_v13 = vld [vmem:[%s493_s3] sm:$0xff]  ;;  %v397_v16 = vor.u32 %v404_v11, %v396_v10  ;;  %vm242_vm2 = vcmask 72704   ;;  %s211_s5 = scalar_lea.vmem %s491_s1, %s402_s19  ;;  %vm292_vm3 = vcmask 1040384  }
   0xe   : > { %v217_v4 = vld [vmem:[%s206_s22] sm:$0xff]  ;;  %v219_v5 = vld [vmem:[%s206_s22 + $0x10] sm:$0x1]  ;;  %v249_v6 = vsel %vm247_vm1, %v248_v3, 0  ;;  %v218_v7 = vld [vmem:[%s206_s22 + $0x8] sm:$0xff]  ;;  %s393_s6 = sshll.u32 %s496_s16, 1 }
   0xf   : > { %v223_v8 = vpack.c.bf16 %v219_v5, %v217_v4  ;;  %v220_v9 = vld [vmem:[%s206_s22 + $0x18] sm:$0x1]  ;;  %v286_v23 = vld [vmem:[%s211_s5 + $0x10] sm:$0x1]  ;;  %v284_v24 = vld [vmem:[%s211_s5] sm:$0xff]  ;;  %s215_s9 = scalar_lea.vmem %s494_s4, %s393_s6  ;;  %vm316_vm4 = vcmp.lt.s32.totalorder %v314_v49, 256 }
  0x10   : > { %v224_v12 = vpack.c.bf16 %v220_v9, %v218_v7  ;;  %v287_v28 = vld [vmem:[%s211_s5 + $0x18] sm:$0x1]  ;;  %v285_v29 = vld [vmem:[%s211_s5 + $0x8] sm:$0xff] }
  0x11   : > { %v251_v14 = vand.u32 %v249_v6, %v223_v8 }
  0x12   : > { %v254_v15 = vand.u32 %v249_v6, %v224_v12 }
  0x13   : > { %263 = vmatpush.bf16.msra.mxu0 %v251_v14 }
  0x14   : > { %277 = vmatpush.bf16.msra.mxu1 %v254_v15 }
  0x15   : > { %229 = vperm.xlu0 %415, %v225_v13  }
  0x16   : > { %398 = vmatmul.msk.bf16.vlgmr.msra.gmra.mxu0 %vm242_vm2, %v397_v16 }
  0x17   : > { %399 = vmatmul.msk.bf16.vlgmr.msra.gmra.mxu1 %vm242_vm2, %v397_v16 }
  0x7f   : > { %v235_v17 = vpop.permute.xlu0 %234 }
  0x87   : > { %v230_v20 = vpop.permute.xlu0 %229 }
  0x93   : > { %v265_v18 = vpop.f32.mrf.mxu0 }
  0x94   : > { %v279_v19 = vpop.f32.mrf.mxu1  ;;  %v266_v21 = vadd.f32 %v265_v18, %v230_v20 }
  0x95   : > { %v280_v25 = vadd.f32 %v279_v19, %v230_v20 }
  0x96   : > { %v288_v32 = vmul.f32 %v284_v24, %v266_v21 }
  0x97   : > { %v289_v34 = vmul.f32 %v285_v29, %v280_v25 }
  0x9b   : > { %v267_v22 = vpop.f32.mrf.mxu0 }
  0x9c   : > { %v268_v26 = vadd.f32 %v267_v22, %v235_v17  ;;  %v281_v27 = vpop.f32.mrf.mxu1 }
  0x9d   : > { %v282_v30 = vadd.f32 %v281_v27, %v235_v17 }
  0x9e   : > { %v290_v31 = vmul.f32 %v286_v23, %v268_v26 }
  0x9f   : > { %v291_v33 = vmul.f32 %v287_v28, %v282_v30 }
  0xa0   : > { %v293_v35 = vsel %vm292_vm3, %v290_v31, 0.0 }
  0xa1   : > { %v294_v36 = vadd.f32 %v293_v35, %v288_v32  ;;  %v301_v37 = vsel %vm292_vm3, %v291_v33, 0.0 }
  0xa2   : > { %v302_v38 = vadd.f32 %v301_v37, %v289_v34 }
  0xa3   : > { %v295_v39 = vrot.slane %v294_v36, 4 }
  0xa4   : > { %v303_v40 = vrot.slane %v302_v38, 4 }
  0xa5   : > { %v296_v41 = vadd.f32 %v295_v39, %v294_v36 }
  0xa6   : > { %v304_v42 = vadd.f32 %v303_v40, %v302_v38 }
  0xa7   : > { %v297_v43 = vrot.slane %v296_v41, 2 }
  0xa8   : > { %v305_v44 = vrot.slane %v304_v42, 2 }
  0xa9   : > { %v298_v45 = vadd.f32 %v297_v43, %v296_v41 }
  0xaa   : > { %v306_v46 = vadd.f32 %v305_v44, %v304_v42 }
  0xab   : > { %v299_v47 = vrot.slane %v298_v45, 1 }
  0xac   : > { %v307_v48 = vrot.slane %v306_v46, 1 }
  0xad   : > { %v300_v51 = vadd.f32 %v299_v47, %v298_v45 }
  0xae   : > { %v308_v50 = vadd.f32 %v307_v48, %v306_v46 }
  0xb0   : > { %v311_v52 = vrot.slane %v308_v50, 7 }
  0xb2   : > { %v312_v53 = vsel %vm292_vm3, %v300_v51, %v311_v52 }
  0xb3   : > { %318 = vst.msk [vmem:[%s215_s9] sm:$0x3] %vm316_vm4, %v312_v53 }
  0xb4 PF: > { %s14_s15 = sadd.s32 1, %s422_s15  }
  0xb5   : > { %p11_p4 = scmp.ge.s32.totalorder %s14_s15, 6  }
  0xb7   :  { %13 = sbr.rel (!%p11_p4) target bundleno = 1 (0x1), region = 69 }

// kernel: ffmef_forward.72
= control target key start
LH: loop header
LB: loop body
LE: loop exit
PB: predicated region body
PF: predicated region fallthrough
CT: control target
= control target key end

     0   :  { %s548_s12 = smov 0   ;;  %s550_s13 = smov 0   ;;  %s616_s0 = inlined_call_operand.vmem [shape: bf16[4,72,256], index: 0, kind: input, shape index: {}]   ;;  %s617_s1 = inlined_call_operand.vmem [shape: bf16[9,72], index: 1, kind: input, shape index: {}]   ;;  %s618_s2 = inlined_call_operand.vmem [shape: f32[9,1], index: 2, kind: input, shape index: {}]   ;;  %s619_s3 = inlined_call_operand.vmem [shape: f32[4,9,256], index: 3, kind: output, shape index: {}]  }
   0x1   :  { %s552_s14 = smov 0  }
   0x2 LB: > { %s25_s15 = sadd.s32 1, %s521_s13  ;;  %p422_p0 = scmp.ge.s32.totalorder %s525_s14, 1  ;;  %s525_s14 = sphi %s552_s14, %s13_s14   ;;  %s521_s13 = sphi %s550_s13, %s621_s13   ;;  %s517_s12 = sphi %s548_s12, %s620_s12  }
   0x3   : > { %p27_p1 = scmp.ge.s32.totalorder %s25_s15, 4  ;;  %p158_p2 = scmp.lt.s32.totalorder %s525_s14, 5 }
   0x5   : > { %s623_s15 = smov (%p27_p1, %s25_s15), 0  ;;  %p159_p3 = pnand %p422_p0, %p158_p2 }
   0x6   : > { %p191_p4 = scmp.lt.s32.totalorder (!%p159_p3), %s517_s12, 3 }
   0x7   : > { %162 = sbr.rel (%p159_p3) target bundleno = 181 (0xb5), region = 32 }
   0xc   : > { %v222_v0 = vld [vmem:[%s618_s2] sm:$0xff]  ;;  %s625_s12 = smov (!%p191_p4, %s517_s12), 3  ;;  %v527_v1 = vmov 0   ;;  %v223_v5 = vld [vmem:[%s618_s2 + $0x8] sm:$0x1]  ;;  %vm288_vm0 = vcmask 1043456  }
   0xd   : > { %502 = vset.pattern.permute.xlu0 %v527_v1  ;;  %s476_s18 = smul.u32 72, %s625_s12  ;;  %v428_v34 = vld [vmem:[%s617_s1] sm:$0xf]  ;;  %v467_v35 = vld [vmem:[%s617_s1] sm:$0x10]  ;;  %vm284_vm1 = vcmask 588800  }
   0xe   : > { %226 = vperm.xlu0 %502, %v222_v0   ;;  %v429_v36 = vor.u32 %v467_v35, %v428_v34  ;;  %s466_s28 = sshll.u32 %s625_s12, 5 }
   0xf   : > { %s575_s21 = scalar_lea.vmem %s616_s0, %s476_s18  ;;  %s208_s4 = scalar_lea.vmem %s619_s3, %s466_s28 }
  0x10   : > { %v221_v2 = vld [vmem:[%s575_s21 + $0x40] sm:$0xff]  ;;  %v456_v6 = vld [vmem:[%s575_s21 + $0x30] sm:$0xf]  ;;  %v475_v9 = vld [vmem:[%s575_s21 + $0x34] sm:$0xf0] }
  0x11   : > { %v264_v3 = vunpack.c.l.b16 %v221_v2  ;;  %v265_v4 = vunpack.c.h.b16 %v221_v2  ;;  %v474_v10 = vld [vmem:[%s575_s21 + $0x34] sm:$0xf]  ;;  %v458_v11 = vld [vmem:[%s575_s21 + $0x38] sm:$0xf0]  ;;  %v457_v14 = vor.u32 %v475_v9, %v456_v6  ;;  %v448_v16 = vld [vmem:[%s575_s21 + $0x20] sm:$0xf] }
  0x12   : > { %v461_v15 = vor.u32 %v474_v10, %v458_v11  ;;  %v473_v17 = vld [vmem:[%s575_s21 + $0x24] sm:$0xf0]  ;;  %v472_v18 = vld [vmem:[%s575_s21 + $0x24] sm:$0xf]  ;;  %v450_v19 = vld [vmem:[%s575_s21 + $0x28] sm:$0xf0] }
  0x13   : > { %v274_v7 = vpack.c.b16 %v264_v3, %v264_v3  ;;  %v275_v8 = vpack.c.b16 %v265_v4, %v265_v4  ;;  %v449_v20 = vor.u32 %v473_v17, %v448_v16  ;;  %v453_v21 = vor.u32 %v472_v18, %v450_v19  ;;  %v440_v22 = vld [vmem:[%s575_s21 + $0x10] sm:$0xf]  ;;  %v471_v23 = vld [vmem:[%s575_s21 + $0x14] sm:$0xf0]  ;;  %v470_v24 = vld [vmem:[%s575_s21 + $0x14] sm:$0xf] }
  0x14   : > { %v442_v25 = vld [vmem:[%s575_s21 + $0x18] sm:$0xf0]  ;;  %v441_v26 = vor.u32 %v471_v23, %v440_v22  ;;  %v432_v28 = vld [vmem:[%s575_s21] sm:$0xf]  ;;  %v469_v29 = vld [vmem:[%s575_s21 + $0x4] sm:$0xf0] }
  0x15   : > { %v290_v12 = vsel %vm288_vm0, %v274_v7, 0  ;;  %v293_v13 = vsel %vm288_vm0, %v275_v8, 0  ;;  %v445_v27 = vor.u32 %v470_v24, %v442_v25  ;;  %v468_v30 = vld [vmem:[%s575_s21 + $0x4] sm:$0xf]  ;;  %v434_v31 = vld [vmem:[%s575_s21 + $0x8] sm:$0xf0]  ;;  %v433_v32 = vor.u32 %v469_v29, %v432_v28 }
  0x16   : > { %231 = vperm.xlu0 %502, %v223_v5   ;;  %298 = vmatpush.bf16.msra.mxu0 %v290_v12  ;;  %v437_v33 = vor.u32 %v468_v30, %v434_v31 }
  0x17   : > { %312 = vmatpush.bf16.msra.mxu1 %v293_v13 }
  0x1a   : > { %299 = vmatpush.bf16.msra.mxu0 %v457_v14 }
  0x1b   : > { %313 = vmatpush.bf16.msra.mxu1 %v461_v15 }
  0x1e   : > { %300 = vmatpush.bf16.msra.mxu0 %v449_v20 }
  0x1f   : > { %314 = vmatpush.bf16.msra.mxu1 %v453_v21 }
  0x22   : > { %301 = vmatpush.bf16.msra.mxu0 %v441_v26 }
  0x23   : > { %315 = vmatpush.bf16.msra.mxu1 %v445_v27 }
  0x26   : > { %302 = vmatpush.bf16.msra.mxu0 %v433_v32 }
  0x27   : > { %316 = vmatpush.bf16.msra.mxu1 %v437_v33 }
  0x29   : > { %462 = vmatmul.msk.bf16.vlgmr.msra.gmra.mxu0 %vm284_vm1, %v429_v36 }
  0x2a   : > { %463 = vmatmul.msk.bf16.vlgmr.msra.gmra.mxu1 %vm284_vm1, %v429_v36 }
  0x80   : > { %v227_v37 = vpop.permute.xlu0 %226 }
  0x88   : > { %v232_v44 = vpop.permute.xlu0 %231 }
  0xa6   : > { %v304_v38 = vpop.f32.mrf.mxu0 }
  0xa7   : > { %v318_v39 = vpop.f32.mrf.mxu1  ;;  %v305_v40 = vadd.f32 %v304_v38, %v227_v37 }
  0xa8   : > { %v319_v41 = vadd.f32 %v318_v39, %v227_v37 }
  0xa9   : > { %v323_v42 = vmax.f32 %v305_v40, 0.0 }
  0xaa   : > { %v324_v43 = vmax.f32 %v319_v41, 0.0 }
  0xab   : > { %327 = vst [vmem:[%s208_s4] sm:$0xff] %v323_v42 }
  0xac   : > { %328 = vst [vmem:[%s208_s4 + $0x8] sm:$0xff] %v324_v43 }
  0xae   : > { %v306_v45 = vpop.f32.mrf.mxu0 }
  0xaf   : > { %v320_v46 = vpop.f32.mrf.mxu1  ;;  %v307_v47 = vadd.f32 %v306_v45, %v232_v44 }
  0xb0   : > { %v321_v48 = vadd.f32 %v320_v46, %v232_v44 }
  0xb1   : > { %v325_v49 = vmax.f32 %v307_v47, 0.0 }
  0xb2   : > { %v326_v50 = vmax.f32 %v321_v48, 0.0 }
  0xb3   : > { %329 = vst [vmem:[%s208_s4 + $0x10] sm:$0x1] %v325_v49 }
  0xb4   : > { %330 = vst [vmem:[%s208_s4 + $0x18] sm:$0x1] %v326_v50 }
  0xb5 PF: > { %s13_s14 = sadd.s32 1, %s525_s14   ;;  %s620_s12 = smov %s521_s13 }
  0xb6   : > { %p10_p5 = scmp.ge.s32.totalorder %s13_s14, 6   ;;  %s621_s13 = smov %s623_s15 }
  0xb8   :  { %12 = sbr.rel (!%p10_p5) target bundleno = 2 (0x2), region = 62 }

// kernel: ffmef_forward.68
= control target key start
LH: loop header
LB: loop body
LE: loop exit
PB: predicated region body
PF: predicated region fallthrough
CT: control target
= control target key end

     0   :  { %s443_s14 = smov 0   ;;  %s445_s15 = smov 0   ;;  %s483_s0 = inlined_call_operand.vmem [shape: bf16[4,8,256], index: 0, kind: input, shape index: {}]   ;;  %s484_s1 = inlined_call_operand.vmem [shape: bf16[1,8], index: 1, kind: input, shape index: {}]   ;;  %s485_s2 = inlined_call_operand.<no memory space> [shape: f32[1,1], index: 2, kind: input, shape index: {}]   ;;  %s486_s3 = inlined_call_operand.vmem [shape: f32[4,1,256], index: 3, kind: output, shape index: {}]  }
   0x1   :  { %v8_v0 = vstv %s485_s2  ;;  %s447_s16 = smov 0  }
   0x2   :  { %9 = vst [vmem:[#allocation2] sm:$0x1] %v8_v0 }
   0x3 LB: > { %s27_s2 = sadd.s32 1, %s413_s15  ;;  %p360_p0 = scmp.ge.s32.totalorder %s417_s16, 1  ;;  %s417_s16 = sphi %s447_s16, %s15_s16   ;;  %s413_s15 = sphi %s445_s15, %s488_s15   ;;  %s409_s14 = sphi %s443_s14, %s487_s14  }
   0x4   : > { %p29_p1 = scmp.ge.s32.totalorder %s27_s2, 4  ;;  %p160_p2 = scmp.lt.s32.totalorder %s417_s16, 5 }
   0x6   : > { %s490_s2 = smov (%p29_p1, %s27_s2), 0  ;;  %p161_p3 = pnand %p360_p0, %p160_p2 }
   0x7   : > { %p192_p4 = scmp.lt.s32.totalorder (!%p161_p3), %s409_s14, 3 }
   0x8   : > { %164 = sbr.rel (%p161_p3) target bundleno = 159 (0x9f), region = 32 }
   0xd   : > { %v419_v1 = vmov 0   ;;  %v213_v2 = vld [vmem:[#allocation2] sm:$0x1]  ;;  %s492_s14 = smov (!%p192_p4, %s409_s14), 3  ;;  %vm229_vm0 = vcmask 1043456   ;;  %vm225_vm1 = vcmask 64512   ;;  %v270_v17 = vlaneseq }
   0xe   : > { %394 = vset.pattern.permute.xlu0 %v419_v1  ;;  %s368_s17 = sshll.u32 %s492_s14, 3  ;;  %v211_v10 = vld [vmem:[%s484_s1] sm:$0x1]  ;;  %s363_s23 = sshll.u32 %s492_s14, 1  ;;  %vm267_vm2 = vcmask 1040384  }
   0xf   : > { %216 = vperm.xlu0 %394, %v213_v2   ;;  %s199_s20 = scalar_lea.vmem %s483_s0, %s368_s17  ;;  %s208_s26 = scalar_lea.vmem %s486_s3, %s363_s23  ;;  %vm272_vm3 = vcmp.lt.s32.totalorder %v270_v17, 256 }
  0x10   : > { %v212_v3 = vld [vmem:[%s199_s20] sm:$0xff] }
  0x11   : > { %v221_v4 = vunpack.c.l.b16 %v212_v3  ;;  %v222_v5 = vunpack.c.h.b16 %v212_v3 }
  0x13   : > { %v223_v6 = vpack.c.b16 %v221_v4, %v221_v4  ;;  %v224_v7 = vpack.c.b16 %v222_v5, %v222_v5 }
  0x15   : > { %v231_v8 = vsel %vm229_vm0, %v223_v6, 0  ;;  %v234_v9 = vsel %vm229_vm0, %v224_v7, 0 }
  0x16   : > { %243 = vmatpush.bf16.msra.mxu0 %v231_v8  ;;  %256 = vmatpush.bf16.msra.mxu1 %v234_v9 }
  0x19   : > { %364 = vmatmul.msk.bf16.vlgmr.msra.gmra.mxu0 %vm225_vm1, %v211_v10  ;;  %365 = vmatmul.msk.bf16.vlgmr.msra.gmra.mxu1 %vm225_vm1, %v211_v10 }
  0x81   : > { %v217_v11 = vpop.permute.xlu0 %216 }
  0x82   : > { %v219_v12 = vperm.slane %v217_v11, 0 }
  0x96   : > { %v245_v13 = vpop.f32.mrf.mxu0  ;;  %v258_v14 = vpop.f32.mrf.mxu1 }
  0x97   : > { %v246_v15 = vadd.f32 %v245_v13, %v219_v12  ;;  %v259_v16 = vadd.f32 %v258_v14, %v219_v12 }
  0x99   : > { %v263_v18 = vmax.f32 %v259_v16, 0.0  ;;  %v262_v19 = vmax.f32 %v246_v15, 0.0 }
  0x9b   : > { %v266_v20 = vrot.slane %v263_v18, 7 }
  0x9d   : > { %v268_v21 = vsel %vm267_vm2, %v262_v19, %v266_v20 }
  0x9e   : > { %274 = vst.msk [vmem:[%s208_s26] sm:$0x3] %vm272_vm3, %v268_v21  ;;  %v247_v22 = vpop.f32.mrf.mxu0  ;;  %v260_v23 = vpop.f32.mrf.mxu1 }
  0x9f PF: > { %s15_s16 = sadd.s32 1, %s417_s16   ;;  %s487_s14 = smov %s413_s15 }
  0xa0   : > { %p12_p5 = scmp.ge.s32.totalorder %s15_s16, 6   ;;  %s488_s15 = smov %s490_s2 }
  0xa2   :  { %14 = sbr.rel (!%p12_p5) target bundleno = 3 (0x3), region = 62 }

// kernel: ffmef_forward.69
= control target key start
LH: loop header
LB: loop body
LE: loop exit
PB: predicated region body
PF: predicated region fallthrough
CT: control target
= control target key end

     0   :  { %s395_s19 = smov 0   ;;  %s420_s0 = inlined_call_operand.vmem [shape: f32[4,1,256], index: 0, kind: input, shape index: {}]   ;;  %s421_s1 = inlined_call_operand.vmem [shape: f32[4,1,256], index: 1, kind: input, shape index: {}]   ;;  %s422_s2 = inlined_call_operand.<no memory space> [shape: bf16[1,1], index: 2, kind: input, shape index: {}]   ;;  %s423_s4 = inlined_call_operand.vmem [shape: f32[4,1,256], index: 4, kind: output, shape index: {}]   ;;  %s424_s3 = inlined_call_operand.<no memory space> [shape: f32[1,1], index: 3, kind: input, shape index: {}]  }
   0x1   :  { %v9_v0 = vstv %s422_s2  ;;  %v11_v1 = vstv %s424_s3 }
   0x2   :  { %10 = vst [vmem:[#allocation2] sm:$0x1] %v9_v0 }
   0x3   :  { %12 = vst [vmem:[#allocation3] sm:$0x1] %v11_v1 }
   0x4 LB: > { %s331_s20 = sadd.s32 4294967295, %s359_s19   ;;  %p335_p0 = scmp.ge.s32.totalorder %s359_s19, 1  ;;  %s359_s19 = sphi %s395_s19, %s18_s19  }
   0x5   : > { %p174_p1 = scmp.lt.s32.totalorder %s359_s19, 5 }
   0x7   : > { %p175_p2 = pnand %p335_p0, %p174_p1 }
   0x8   : > { %p202_p3 = scmp.lt.s32.totalorder (!%p175_p2), %s331_s20, 3 }
   0x9   : > { %178 = sbr.rel (%p175_p2) target bundleno = 151 (0x97), region = 36 }
   0xe   : > { %v215_v2 = vld [vmem:[#allocation2] sm:$0x1]  ;;  %v361_v3 = vmov 0   ;;  %v233_v5 = vld [vmem:[#allocation3] sm:$0x1]  ;;  %s426_s20 = smov (!%p202_p3, %s331_s20), 3  ;;  %v261_v22 = vlaneseq }
   0xf   : > { %352 = vset.pattern.permute.xlu0 %v361_v3  ;;  %v216_v4 = vunpack.c.l.bf16 %v215_v2  ;;  %s403_s2 = sshll.u32 %s426_s20, 1  ;;  %v362_v6 = vmov 269488144   ;;  %v363_v8 = vmov 857870592   ;;  %vm254_vm0 = vcmask 1040384  }
  0x10   : > { %v223_v7 = vunpack.c.l.s4 %v362_v6  ;;  %v228_v9 = vunpack.c.l.s4 %v363_v8  ;;  %s205_s22 = scalar_lea.vmem %s420_s0, %s403_s2  ;;  %s209_s25 = scalar_lea.vmem %s421_s1, %s403_s2  ;;  %vm256_vm1 = vcmask 1042434   ;;  %vm258_vm2 = vcmask 1041408  }
  0x11   : > { %219 = vperm.xlu0 %352, %v216_v4   ;;  %v214_v13 = vld [vmem:[%s205_s22] sm:$0x3]  ;;  %s213_s28 = scalar_lea.vmem %s423_s4, %s403_s2  ;;  %vm263_vm3 = vcmp.lt.s32.totalorder %v261_v22, 256 }
  0x12   : > { %v224_v11 = vunpack.c.0.s8 %v223_v7  ;;  %v229_v12 = vunpack.c.0.s8 %v228_v9  ;;  %v241_v16 = vld [vmem:[%s209_s25] sm:$0x3] }
  0x14   : > { %v230_v15 = vperm.slane %v214_v13, %v229_v12  ;;  %v246_v20 = vperm.slane %v241_v16, %v229_v12 }
  0x19   : > { %236 = vperm.xlu0 %352, %v233_v5  }
  0x83   : > { %v220_v10 = vpop.permute.xlu0 %219 }
  0x84   : > { %v225_v14 = vperm.slane %v220_v10, %v224_v11 }
  0x86   : > { %v232_v18 = vmul.f32 %v230_v15, %v225_v14 }
  0x8b   : > { %v237_v17 = vpop.permute.xlu0 %236 }
  0x8c   : > { %v239_v19 = vperm.slane %v237_v17, 0 }
  0x8e   : > { %v240_v21 = vadd.f32 %v239_v19, %v232_v18 }
  0x90   : > { %v248_v23 = vmul.f32 %v246_v20, %v240_v21 }
  0x92   : > { %v251_v24 = vrot.slane %v248_v23, 1  ;;  %v252_v25 = vrot.slane %v248_v23, 2  ;;  %v253_v26 = vrot.slane %v248_v23, 3 }
  0x94   : > { %v255_v27 = vsel %vm254_vm0, %v248_v23, %v251_v24  ;;  %v257_v28 = vsel %vm256_vm1, %v252_v25, %v253_v26 }
  0x95   : > { %v259_v29 = vsel %vm258_vm2, %v255_v27, %v257_v28 }
  0x96   : > { %265 = vst.msk [vmem:[%s213_s28] sm:$0x3] %vm263_vm3, %v259_v29 }
  0x97 PF: > { %s18_s19 = sadd.s32 1, %s359_s19  }
  0x98   : > { %p15_p4 = scmp.ge.s32.totalorder %s18_s19, 6  }
  0x9a   :  { %17 = sbr.rel (!%p15_p4) target bundleno = 4 (0x4), region = 69 }

// kernel: ffmef_forward.76
= control target key start
LH: loop header
LB: loop body
LE: loop exit
PB: predicated region body
PF: predicated region fallthrough
CT: control target
= control target key end

     0   :  { %s828_s12 = smov 0   ;;  %s830_s13 = smov 0   ;;  %s968_s0 = inlined_call_operand.vmem [shape: bf16[4,200,256], index: 0, kind: input, shape index: {}]   ;;  %s969_s1 = inlined_call_operand.vmem [shape: bf16[25,200], index: 1, kind: input, shape index: {}]   ;;  %s970_s2 = inlined_call_operand.vmem [shape: f32[25,1], index: 2, kind: input, shape index: {}]   ;;  %s971_s3 = inlined_call_operand.vmem [shape: f32[4,25,256], index: 3, kind: output, shape index: {}]  }
   0x1   :  { %s832_s14 = smov 0  }
   0x2 LB: > { %s25_s15 = sadd.s32 1, %s801_s13  ;;  %p604_p0 = scmp.ge.s32.totalorder %s805_s14, 1  ;;  %s805_s14 = sphi %s832_s14, %s13_s14   ;;  %s801_s13 = sphi %s830_s13, %s973_s13   ;;  %s797_s12 = sphi %s828_s12, %s972_s12  }
   0x3   : > { %p27_p1 = scmp.ge.s32.totalorder %s25_s15, 4  ;;  %p158_p2 = scmp.lt.s32.totalorder %s805_s14, 5 }
   0x5   : > { %s975_s15 = smov (%p27_p1, %s25_s15), 0  ;;  %p159_p3 = pnand %p604_p0, %p158_p2 }
   0x6   : > { %p191_p4 = scmp.lt.s32.totalorder (!%p159_p3), %s797_s12, 3 }
   0x7   : > { %162 = sbr.rel (%p159_p3) target bundleno = 214 (0xd6), region = 32 }
   0xc   : > { %s977_s12 = smov (!%p191_p4, %s797_s12), 3  ;;  %vm414_vm0 = vcmask 1043456   ;;  %v240_v61 = vld [vmem:[%s970_s2] sm:$0xff]  ;;  %vm407_vm1 = vcmask 588800  }
   0xd   : > { %s755_s16 = smul.u32 200, %s977_s12  ;;  %s726_s21 = sshll.u32 %s977_s12, 6 }
   0xe   : > { %s949_s24 = scalar_lea.vmem %s971_s3, %s726_s21 }
   0xf   : > { %s852_s19 = scalar_lea.vmem %s968_s0, %s755_s16 }
  0x10   : > { %v682_v0 = vld [vmem:[%s852_s19 + $0x70] sm:$0xf]  ;;  %v746_v1 = vld [vmem:[%s852_s19 + $0x74] sm:$0xf0]  ;;  %v745_v2 = vld [vmem:[%s852_s19 + $0x74] sm:$0xf] }
  0x11   : > { %v683_v3 = vor.u32 %v746_v1, %v682_v0  ;;  %v684_v4 = vld [vmem:[%s852_s19 + $0x78] sm:$0xf0]  ;;  %v674_v5 = vld [vmem:[%s852_s19 + $0x60] sm:$0xf]  ;;  %v744_v6 = vld [vmem:[%s852_s19 + $0x64] sm:$0xf0] }
  0x12   : > { %v687_v7 = vor.u32 %v745_v2, %v684_v4  ;;  %v743_v8 = vld [vmem:[%s852_s19 + $0x64] sm:$0xf]  ;;  %v676_v9 = vld [vmem:[%s852_s19 + $0x68] sm:$0xf0]  ;;  %v675_v11 = vor.u32 %v744_v6, %v674_v5  ;;  %v666_v15 = vld [vmem:[%s852_s19 + $0x50] sm:$0xf] }
  0x13   : > { %v239_v10 = vld [vmem:[%s852_s19 + $0xc0] sm:$0xff]  ;;  %421 = vmatpush.bf16.msra.mxu0 %v683_v3  ;;  %v679_v14 = vor.u32 %v743_v8, %v676_v9  ;;  %v742_v16 = vld [vmem:[%s852_s19 + $0x54] sm:$0xf0]  ;;  %v741_v17 = vld [vmem:[%s852_s19 + $0x54] sm:$0xf]  ;;  %v807_v0 = vmov 0  }
  0x14   : > { %v356_v12 = vunpack.c.h.b16 %v239_v10  ;;  %v355_v13 = vunpack.c.l.b16 %v239_v10  ;;  %459 = vmatpush.bf16.msra.mxu2 %v687_v7  ;;  %v668_v19 = vld [vmem:[%s852_s19 + $0x58] sm:$0xf0]  ;;  %v753_v20 = vld [vmem:[%s852_s19 + $0xb4] sm:$0xf]  ;;  %v667_v24 = vor.u32 %v742_v16, %v666_v15  ;;  %v658_v25 = vld [vmem:[%s852_s19 + $0x40] sm:$0xf]  ;;  %781 = vset.pattern.permute.xlu0 %v807_v0 }
  0x15   : > { %v716_v21 = vld [vmem:[%s852_s19 + $0xb8] sm:$0xf0]  ;;  %v740_v26 = vld [vmem:[%s852_s19 + $0x44] sm:$0xf0]  ;;  %v671_v28 = vor.u32 %v741_v17, %v668_v19  ;;  %v739_v30 = vld [vmem:[%s852_s19 + $0x44] sm:$0xf]  ;;  %782 = vset.pattern.permute.xlu1 %v807_v0  ;;  %246 = vperm.xlu0 %781, %v240_v61  }
  0x16   : > { %v382_v18 = vpack.c.b16 %v356_v12, %v356_v12  ;;  %v381_v22 = vpack.c.b16 %v355_v13, %v355_v13  ;;  %v719_v29 = vor.u32 %v753_v20, %v716_v21  ;;  %v714_v31 = vld [vmem:[%s852_s19 + $0xb0] sm:$0xf]  ;;  %v754_v32 = vld [vmem:[%s852_s19 + $0xb4] sm:$0xf0]  ;;  %v660_v33 = vld [vmem:[%s852_s19 + $0x48] sm:$0xf0]  ;;  %v659_v38 = vor.u32 %v740_v26, %v658_v25 }
  0x17   : > { %422 = vmatpush.bf16.msra.mxu0 %v675_v11  ;;  %v751_v34 = vld [vmem:[%s852_s19 + $0xa4] sm:$0xf]  ;;  %v708_v35 = vld [vmem:[%s852_s19 + $0xa8] sm:$0xf0]  ;;  %v715_v36 = vor.u32 %v754_v32, %v714_v31  ;;  %v706_v37 = vld [vmem:[%s852_s19 + $0xa0] sm:$0xf]  ;;  %v663_v40 = vor.u32 %v739_v30, %v660_v33 }
  0x18   : > { %v419_v23 = vsel %vm414_vm0, %v382_v18, 0  ;;  %v416_v27 = vsel %vm414_vm0, %v381_v22, 0  ;;  %460 = vmatpush.bf16.msra.mxu2 %v679_v14  ;;  %v752_v39 = vld [vmem:[%s852_s19 + $0xa4] sm:$0xf0]  ;;  %v711_v41 = vor.u32 %v751_v34, %v708_v35  ;;  %v650_v42 = vld [vmem:[%s852_s19 + $0x30] sm:$0xf] }
  0x19   : > { %481 = vmatpush.bf16.msra.mxu3 %v419_v23  ;;  %443 = vmatpush.bf16.msra.mxu1 %v416_v27  ;;  %v738_v43 = vld [vmem:[%s852_s19 + $0x34] sm:$0xf0]  ;;  %v737_v44 = vld [vmem:[%s852_s19 + $0x34] sm:$0xf]  ;;  %v652_v45 = vld [vmem:[%s852_s19 + $0x38] sm:$0xf0]  ;;  %v707_v48 = vor.u32 %v752_v39, %v706_v37 }
  0x1a   : > { %v749_v46 = vld [vmem:[%s852_s19 + $0x94] sm:$0xf]  ;;  %v700_v47 = vld [vmem:[%s852_s19 + $0x98] sm:$0xf0]  ;;  %v698_v49 = vld [vmem:[%s852_s19 + $0x90] sm:$0xf]  ;;  %v651_v51 = vor.u32 %v738_v43, %v650_v42  ;;  %v655_v53 = vor.u32 %v737_v44, %v652_v45 }
  0x1b   : > { %423 = vmatpush.bf16.msra.mxu0 %v667_v24  ;;  %v750_v50 = vld [vmem:[%s852_s19 + $0x94] sm:$0xf0]  ;;  %v642_v52 = vld [vmem:[%s852_s19 + $0x20] sm:$0xf]  ;;  %v703_v54 = vor.u32 %v749_v46, %v700_v47  ;;  %v736_v55 = vld [vmem:[%s852_s19 + $0x24] sm:$0xf0] }
  0x1c   : > { %461 = vmatpush.bf16.msra.mxu2 %v671_v28  ;;  %v735_v56 = vld [vmem:[%s852_s19 + $0x24] sm:$0xf]  ;;  %v644_v57 = vld [vmem:[%s852_s19 + $0x28] sm:$0xf0]  ;;  %v699_v60 = vor.u32 %v750_v50, %v698_v49  ;;  %v690_v62 = vld [vmem:[%s852_s19 + $0x80] sm:$0xf]  ;;  %v643_v1 = vor.u32 %v736_v55, %v642_v52 }
  0x1d   : > { %482 = vmatpush.bf16.msra.mxu3 %v719_v29  ;;  %444 = vmatpush.bf16.msra.mxu1 %v715_v36  ;;  %v747_v58 = vld [vmem:[%s852_s19 + $0x84] sm:$0xf]  ;;  %v692_v59 = vld [vmem:[%s852_s19 + $0x88] sm:$0xf0]  ;;  %v748_v63 = vld [vmem:[%s852_s19 + $0x84] sm:$0xf0]  ;;  %v647_v4 = vor.u32 %v735_v56, %v644_v57 }
  0x1e   : > { %v727_v2 = vld [vmem:[%s969_s1 + $0x4] sm:$0xf]  ;;  %v242_v3 = vld [vmem:[%s970_s2 + $0x10] sm:$0xff]  ;;  %v695_v5 = vor.u32 %v747_v58, %v692_v59  ;;  %v734_v7 = vld [vmem:[%s852_s19 + $0x14] sm:$0xf0]  ;;  %v691_v11 = vor.u32 %v748_v63, %v690_v62 }
  0x1f   : > { %424 = vmatpush.bf16.msra.mxu0 %v659_v38  ;;  %v634_v6 = vld [vmem:[%s852_s19 + $0x10] sm:$0xf]  ;;  %v612_v8 = vld [vmem:[%s969_s1 + $0x8] sm:$0xf0]  ;;  %v733_v9 = vld [vmem:[%s852_s19 + $0x14] sm:$0xf]  ;;  %256 = vperm.xlu1 %782, %v242_v3  }
  0x20   : > { %462 = vmatpush.bf16.msra.mxu2 %v663_v40  ;;  %v636_v10 = vld [vmem:[%s852_s19 + $0x18] sm:$0xf0]  ;;  %v635_v12 = vor.u32 %v734_v7, %v634_v6  ;;  %v615_v13 = vor.u32 %v727_v2, %v612_v8  ;;  %v626_v15 = vld [vmem:[%s852_s19] sm:$0xf]  ;;  %v732_v16 = vld [vmem:[%s852_s19 + $0x4] sm:$0xf0] }
  0x21   : > { %483 = vmatpush.bf16.msra.mxu3 %v711_v41  ;;  %445 = vmatpush.bf16.msra.mxu1 %v707_v48  ;;  %v639_v14 = vor.u32 %v733_v9, %v636_v10  ;;  %v731_v17 = vld [vmem:[%s852_s19 + $0x4] sm:$0xf]  ;;  %v628_v18 = vld [vmem:[%s852_s19 + $0x8] sm:$0xf0]  ;;  %v243_v20 = vld [vmem:[%s970_s2 + $0x18] sm:$0x1]  ;;  %v627_v21 = vor.u32 %v732_v16, %v626_v15 }
  0x22   : > { %v241_v19 = vld [vmem:[%s970_s2 + $0x8] sm:$0xff]  ;;  %v610_v22 = vld [vmem:[%s969_s1] sm:$0xf]  ;;  %v631_v24 = vor.u32 %v731_v17, %v628_v18  ;;  %v729_v26 = vld [vmem:[%s969_s1 + $0x14] sm:$0xf] }
  0x23   : > { %425 = vmatpush.bf16.msra.mxu0 %v651_v51  ;;  %v728_v23 = vld [vmem:[%s969_s1 + $0x4] sm:$0xf0]  ;;  %251 = vperm.xlu0 %781, %v241_v19   ;;  %v620_v27 = vld [vmem:[%s969_s1 + $0x18] sm:$0x10]  ;;  %v618_v29 = vld [vmem:[%s969_s1 + $0x10] sm:$0xf] }
  0x24   : > { %463 = vmatpush.bf16.msra.mxu2 %v655_v53  ;;  %v611_v25 = vor.u32 %v728_v23, %v610_v22  ;;  %v623_v28 = vor.u32 %v729_v26, %v620_v27  ;;  %v730_v30 = vld [vmem:[%s969_s1 + $0x14] sm:$0x10] }
  0x25   : > { %484 = vmatpush.bf16.msra.mxu3 %v703_v54  ;;  %446 = vmatpush.bf16.msra.mxu1 %v699_v60  ;;  %v619_v31 = vor.u32 %v730_v30, %v618_v29 }
  0x27   : > { %426 = vmatpush.bf16.msra.mxu0 %v643_v1  ;;  %261 = vperm.xlu1 %782, %v243_v20  }
  0x28   : > { %464 = vmatpush.bf16.msra.mxu2 %v647_v4 }
  0x29   : > { %485 = vmatpush.bf16.msra.mxu3 %v695_v5  ;;  %447 = vmatpush.bf16.msra.mxu1 %v691_v11 }
  0x2b   : > { %427 = vmatpush.bf16.msra.mxu0 %v635_v12 }
  0x2c   : > { %722 = vmatmul.msk.bf16.vlgmr.msra.gmra.mxu3 %vm407_vm1, %v615_v13  ;;  %465 = vmatpush.bf16.msra.mxu2 %v639_v14 }
  0x2d   : > { %720 = vmatmul.msk.bf16.vlgmr.msra.gmra.mxu1 %vm407_vm1, %v615_v13 }
  0x2f   : > { %428 = vmatpush.bf16.msra.mxu0 %v627_v21 }
  0x30   : > { %466 = vmatpush.bf16.msra.mxu2 %v631_v24 }
  0x32   : > { %429 = vmatmul.bf16.vlgmr.msra.gmra.mxu0 %v611_v25 }
  0x33   : > { %467 = vmatmul.bf16.vlgmr.msra.gmra.mxu2 %v611_v25 }
  0x3c   : > { %723 = vmatmul.msk.bf16.gmra.mxu3 %vm407_vm1, %v623_v28 }
  0x3d   : > { %721 = vmatmul.msk.bf16.gmra.mxu1 %vm407_vm1, %v623_v28 }
  0x42   : > { %434 = vmatmul.bf16.gmra.mxu0 %v619_v31 }
  0x43   : > { %472 = vmatmul.bf16.gmra.mxu2 %v619_v31 }
  0x87   : > { %v247_v32 = vpop.permute.xlu0 %246 }
  0x91   : > { %v257_v50 = vpop.permute.xlu1 %256 }
  0x95   : > { %v252_v39 = vpop.permute.xlu0 %251 }
  0x99   : > { %v262_v62 = vpop.permute.xlu1 %261 }
  0xaa   : > { %v449_v33 = vpop.f32.mrf.mxu1 }
  0xaf   : > { %v430_v34 = vpop.f32.mrf.mxu0  ;;  %v487_v37 = vpop.f32.mrf.mxu3 }
  0xb0   : > { %v431_v35 = vadd.f32 %v430_v34, %v247_v32 }
  0xb2   : > { %v450_v36 = vadd.f32 %v449_v33, %v431_v35  ;;  %v451_v40 = vpop.f32.mrf.mxu1 }
  0xb4   : > { %v497_v38 = vmax.f32 %v450_v36, 0.0 }
  0xb6   : > { %505 = vst [vmem:[%s949_s24] sm:$0xff] %v497_v38  ;;  %v468_v41 = vpop.f32.mrf.mxu2 }
  0xb7   : > { %v469_v42 = vadd.f32 %v468_v41, %v247_v32  ;;  %v432_v43 = vpop.f32.mrf.mxu0  ;;  %v489_v49 = vpop.f32.mrf.mxu3 }
  0xb8   : > { %v433_v44 = vadd.f32 %v432_v43, %v252_v39 }
  0xb9   : > { %v488_v45 = vadd.f32 %v487_v37, %v469_v42 }
  0xba   : > { %v452_v46 = vadd.f32 %v451_v40, %v433_v44  ;;  %v454_v54 = vpop.f32.mrf.mxu1 }
  0xbb   : > { %v498_v47 = vmax.f32 %v488_v45, 0.0 }
  0xbc   : > { %v499_v48 = vmax.f32 %v452_v46, 0.0 }
  0xbd   : > { %506 = vst [vmem:[%s949_s24 + $0x8] sm:$0xff] %v498_v47 }
  0xbe   : > { %507 = vst [vmem:[%s949_s24 + $0x10] sm:$0xff] %v499_v48  ;;  %v470_v51 = vpop.f32.mrf.mxu2 }
  0xbf   : > { %v471_v52 = vadd.f32 %v470_v51, %v252_v39  ;;  %v435_v53 = vpop.f32.mrf.mxu0  ;;  %v492_v60 = vpop.f32.mrf.mxu3 }
  0xc0   : > { %v436_v55 = vadd.f32 %v435_v53, %v257_v50 }
  0xc1   : > { %v490_v56 = vadd.f32 %v489_v49, %v471_v52 }
  0xc2   : > { %v455_v57 = vadd.f32 %v454_v54, %v436_v55  ;;  %v456_v3 = vpop.f32.mrf.mxu1 }
  0xc3   : > { %v500_v58 = vmax.f32 %v490_v56, 0.0 }
  0xc4   : > { %v501_v59 = vmax.f32 %v455_v57, 0.0 }
  0xc5   : > { %508 = vst [vmem:[%s949_s24 + $0x18] sm:$0xff] %v500_v58 }
  0xc6   : > { %509 = vst [vmem:[%s949_s24 + $0x20] sm:$0xff] %v501_v59  ;;  %v473_v61 = vpop.f32.mrf.mxu2 }
  0xc7   : > { %v474_v63 = vadd.f32 %v473_v61, %v257_v50  ;;  %v437_v0 = vpop.f32.mrf.mxu0  ;;  %v494_v9 = vpop.f32.mrf.mxu3 }
  0xc8   : > { %v438_v1 = vadd.f32 %v437_v0, %v262_v62 }
  0xc9   : > { %v493_v2 = vadd.f32 %v492_v60, %v474_v63 }
  0xca   : > { %v457_v4 = vadd.f32 %v456_v3, %v438_v1 }
  0xcb   : > { %v502_v5 = vmax.f32 %v493_v2, 0.0 }
  0xcc   : > { %v503_v6 = vmax.f32 %v457_v4, 0.0 }
  0xcd   : > { %510 = vst [vmem:[%s949_s24 + $0x28] sm:$0xff] %v502_v5 }
  0xce   : > { %511 = vst [vmem:[%s949_s24 + $0x30] sm:$0x1] %v503_v6  ;;  %v475_v7 = vpop.f32.mrf.mxu2 }
  0xcf   : > { %v476_v8 = vadd.f32 %v475_v7, %v262_v62 }
  0xd1   : > { %v495_v10 = vadd.f32 %v494_v9, %v476_v8 }
  0xd3   : > { %v504_v11 = vmax.f32 %v495_v10, 0.0 }
  0xd5   : > { %512 = vst [vmem:[%s949_s24 + $0x38] sm:$0x1] %v504_v11 }
  0xd6 PF: > { %s13_s14 = sadd.s32 1, %s805_s14   ;;  %s972_s12 = smov %s801_s13 }
  0xd7   : > { %p10_p5 = scmp.ge.s32.totalorder %s13_s14, 6   ;;  %s973_s13 = smov %s975_s15 }
  0xd9   :  { %12 = sbr.rel (!%p10_p5) target bundleno = 2 (0x2), region = 62 }

// kernel: ffmef_forward.77
= control target key start
LH: loop header
LB: loop body
LE: loop exit
PB: predicated region body
PF: predicated region fallthrough
CT: control target
= control target key end

     0   :  { %s513_s15 = smov 0   ;;  %s565_s0 = inlined_call_operand.vmem [shape: f32[4,25,256], index: 0, kind: input, shape index: {}]   ;;  %s566_s1 = inlined_call_operand.vmem [shape: f32[4,25,256], index: 1, kind: input, shape index: {}]   ;;  %s567_s2 = inlined_call_operand.vmem [shape: bf16[25,25], index: 2, kind: input, shape index: {}]   ;;  %s568_s3 = inlined_call_operand.vmem [shape: f32[25,1], index: 3, kind: input, shape index: {}]   ;;  %s569_s4 = inlined_call_operand.vmem [shape: f32[4,1,256], index: 4, kind: output, shape index: {}]  }
   0x1 LB: > { %s434_s16 = sadd.s32 4294967295, %s484_s15   ;;  %p438_p0 = scmp.ge.s32.totalorder %s484_s15, 1  ;;  %s484_s15 = sphi %s513_s15, %s14_s15  }
   0x2   : > { %p172_p1 = scmp.lt.s32.totalorder %s484_s15, 5 }
   0x4   : > { %p173_p2 = pnand %p438_p0, %p172_p1 }
   0x5   : > { %p202_p3 = scmp.lt.s32.totalorder (!%p173_p2), %s434_s16, 3 }
   0x6   : > { %176 = sbr.rel (%p173_p2) target bundleno = 190 (0xbe), region = 36 }
   0xb   : > { %vm274_vm0 = vcmask 1043456   ;;  %s571_s16 = smov (!%p202_p3, %s434_s16), 3  ;;  %v486_v0 = vmov 0   ;;  %v233_v1 = vld [vmem:[%s568_s3] sm:$0xff]  ;;  %v235_v2 = vld [vmem:[%s568_s3 + $0x10] sm:$0xff]  ;;  %vm275_vm1 = vcmask 1044480  }
   0xc   : > { %476 = vset.pattern.permute.xlu0 %v486_v0  ;;  %477 = vset.pattern.permute.xlu1 %v486_v0  ;;  %v487_v3 = vmov 65535   ;;  %s458_s21 = sshll.u32 %s571_s16, 6  ;;  %v234_v18 = vld [vmem:[%s568_s3 + $0x8] sm:$0xff]  ;;  %v236_v19 = vld [vmem:[%s568_s3 + $0x18] sm:$0x1]  ;;  %v460_v24 = vld [vmem:[%s567_s2] sm:$0xff] }
   0xd   : > { %v276_v4 = vsel %vm274_vm0, 4294967295, %v487_v3  ;;  %239 = vperm.xlu0 %476, %v233_v1   ;;  %249 = vperm.xlu1 %477, %v235_v2   ;;  %s206_s24 = scalar_lea.vmem %s565_s0, %s458_s21  ;;  %v450_v21 = vld [vmem:[%s567_s2 + $0x8] sm:$0xf]  ;;  %v461_v22 = vld [vmem:[%s567_s2 + $0x8] sm:$0x10]  ;;  %vm267_vm2 = vcmask 203776   ;;  %s211_s11 = scalar_lea.vmem %s566_s1, %s458_s21 }
   0xe   : > { %v221_v5 = vld [vmem:[%s206_s24 + $0x20] sm:$0xff]  ;;  %v223_v6 = vld [vmem:[%s206_s24 + $0x30] sm:$0x1]  ;;  %v277_v7 = vsel %vm275_vm1, %v276_v4, 0  ;;  %v222_v8 = vld [vmem:[%s206_s24 + $0x28] sm:$0xff]  ;;  %v451_v25 = vor.u32 %v461_v22, %v450_v21  ;;  %vm340_vm3 = vcmask 1040384  }
   0xf   : > { %v231_v9 = vpack.c.bf16 %v223_v6, %v221_v5  ;;  %v224_v10 = vld [vmem:[%s206_s24 + $0x38] sm:$0x1]  ;;  %v217_v12 = vld [vmem:[%s206_s24] sm:$0xff]  ;;  %v219_v13 = vld [vmem:[%s206_s24 + $0x10] sm:$0xff]  ;;  %s443_s12 = sshll.u32 %s571_s16, 1 }
  0x10   : > { %v232_v11 = vpack.c.bf16 %v224_v10, %v222_v8  ;;  %v218_v15 = vld [vmem:[%s206_s24 + $0x8] sm:$0xff]  ;;  %v220_v16 = vld [vmem:[%s206_s24 + $0x18] sm:$0xff]  ;;  %v229_v20 = vpack.c.bf16 %v219_v13, %v217_v12  ;;  %v324_v35 = vld [vmem:[%s211_s11 + $0x10] sm:$0xff]  ;;  %s215_s17 = scalar_lea.vmem %s569_s4, %s443_s12 }
  0x11   : > { %v279_v14 = vand.u32 %v277_v7, %v231_v9  ;;  %v230_v23 = vpack.c.bf16 %v220_v16, %v218_v15  ;;  %v322_v36 = vld [vmem:[%s211_s11] sm:$0xff]  ;;  %v325_v40 = vld [vmem:[%s211_s11 + $0x18] sm:$0xff]  ;;  %v323_v41 = vld [vmem:[%s211_s11 + $0x8] sm:$0xff]  ;;  %v364_v16 = vlaneseq }
  0x12   : > { %v282_v17 = vand.u32 %v277_v7, %v232_v11  ;;  %v326_v48 = vld [vmem:[%s211_s11 + $0x20] sm:$0xff]  ;;  %v327_v51 = vld [vmem:[%s211_s11 + $0x28] sm:$0xff]  ;;  %v328_v54 = vld [vmem:[%s211_s11 + $0x30] sm:$0x1] }
  0x13   : > { %290 = vmatpush.bf16.msra.mxu0 %v279_v14  ;;  %462 = vmatpush.bf16.msra.mxu2 %v279_v14  ;;  %v329_v58 = vld [vmem:[%s211_s11 + $0x38] sm:$0x1]  ;;  %vm366_vm4 = vcmp.lt.s32.totalorder %v364_v16, 256 }
  0x14   : > { %309 = vmatpush.bf16.msra.mxu1 %v282_v17  ;;  %464 = vmatpush.bf16.msra.mxu3 %v282_v17 }
  0x15   : > { %244 = vperm.xlu0 %476, %v234_v18   ;;  %254 = vperm.xlu1 %477, %v236_v19  }
  0x17   : > { %291 = vmatpush.bf16.msra.mxu0 %v229_v20  ;;  %463 = vmatpush.bf16.msra.mxu2 %v229_v20 }
  0x18   : > { %310 = vmatpush.bf16.msra.mxu1 %v230_v23  ;;  %465 = vmatpush.bf16.msra.mxu3 %v230_v23 }
  0x1a   : > { %452 = vmatmul.msk.bf16.vlgmr.msra.gmra.mxu0 %vm267_vm2, %v460_v24  ;;  %453 = vmatmul.msk.bf16.vlgmr.msra.gmra.mxu2 %vm267_vm2, %v451_v25 }
  0x1b   : > { %454 = vmatmul.msk.bf16.vlgmr.msra.gmra.mxu1 %vm267_vm2, %v460_v24  ;;  %455 = vmatmul.msk.bf16.vlgmr.msra.gmra.mxu3 %vm267_vm2, %v451_v25 }
  0x7f   : > { %v240_v26 = vpop.permute.xlu0 %239  ;;  %v250_v29 = vpop.permute.xlu1 %249 }
  0x87   : > { %v245_v33 = vpop.permute.xlu0 %244  ;;  %v255_v50 = vpop.permute.xlu1 %254 }
  0x97   : > { %v293_v27 = vpop.f32.mrf.mxu0 }
  0x98   : > { %v312_v28 = vpop.f32.mrf.mxu1  ;;  %v294_v32 = vadd.f32 %v293_v27, %v240_v26 }
  0x99   : > { %v313_v37 = vadd.f32 %v312_v28, %v240_v26 }
  0x9a   : > { %v330_v44 = vmul.f32 %v322_v36, %v294_v32 }
  0x9b   : > { %v331_v47 = vmul.f32 %v323_v41, %v313_v37 }
  0x9d   : > { %v298_v30 = vpop.f32.mrf.mxu2 }
  0x9e   : > { %v317_v31 = vpop.f32.mrf.mxu3  ;;  %v299_v45 = vadd.f32 %v298_v30, %v250_v29 }
  0x9f   : > { %v295_v34 = vpop.f32.mrf.mxu0  ;;  %v318_v49 = vadd.f32 %v317_v31, %v250_v29 }
  0xa0   : > { %v296_v38 = vadd.f32 %v295_v34, %v245_v33  ;;  %v314_v39 = vpop.f32.mrf.mxu1  ;;  %v334_v59 = vmul.f32 %v326_v48, %v299_v45 }
  0xa1   : > { %v315_v42 = vadd.f32 %v314_v39, %v245_v33  ;;  %v335_v61 = vmul.f32 %v327_v51, %v318_v49 }
  0xa2   : > { %v332_v43 = vmul.f32 %v324_v35, %v296_v38 }
  0xa3   : > { %v333_v46 = vmul.f32 %v325_v40, %v315_v42 }
  0xa4   : > { %v338_v52 = vadd.f32 %v332_v43, %v330_v44 }
  0xa5   : > { %v300_v53 = vpop.f32.mrf.mxu2  ;;  %v349_v55 = vadd.f32 %v333_v46, %v331_v47 }
  0xa6   : > { %v301_v56 = vadd.f32 %v300_v53, %v255_v50  ;;  %v319_v57 = vpop.f32.mrf.mxu3  ;;  %v339_v63 = vadd.f32 %v338_v52, %v334_v59 }
  0xa7   : > { %v320_v60 = vadd.f32 %v319_v57, %v255_v50  ;;  %v350_v1 = vadd.f32 %v349_v55, %v335_v61 }
  0xa8   : > { %v336_v62 = vmul.f32 %v328_v54, %v301_v56 }
  0xa9   : > { %v337_v0 = vmul.f32 %v329_v58, %v320_v60 }
  0xaa   : > { %v341_v2 = vsel %vm340_vm3, %v336_v62, 0.0 }
  0xab   : > { %v342_v3 = vadd.f32 %v341_v2, %v339_v63  ;;  %v351_v4 = vsel %vm340_vm3, %v337_v0, 0.0 }
  0xac   : > { %v352_v5 = vadd.f32 %v351_v4, %v350_v1 }
  0xad   : > { %v343_v6 = vrot.slane %v342_v3, 4 }
  0xae   : > { %v353_v7 = vrot.slane %v352_v5, 4 }
  0xaf   : > { %v344_v8 = vadd.f32 %v343_v6, %v342_v3 }
  0xb0   : > { %v354_v9 = vadd.f32 %v353_v7, %v352_v5 }
  0xb1   : > { %v345_v10 = vrot.slane %v344_v8, 2 }
  0xb2   : > { %v355_v11 = vrot.slane %v354_v9, 2 }
  0xb3   : > { %v346_v12 = vadd.f32 %v345_v10, %v344_v8 }
  0xb4   : > { %v356_v13 = vadd.f32 %v355_v11, %v354_v9 }
  0xb5   : > { %v347_v14 = vrot.slane %v346_v12, 1 }
  0xb6   : > { %v357_v15 = vrot.slane %v356_v13, 1 }
  0xb7   : > { %v348_v18 = vadd.f32 %v347_v14, %v346_v12 }
  0xb8   : > { %v358_v17 = vadd.f32 %v357_v15, %v356_v13 }
  0xba   : > { %v361_v19 = vrot.slane %v358_v17, 7 }
  0xbc   : > { %v362_v20 = vsel %vm340_vm3, %v348_v18, %v361_v19 }
  0xbd   : > { %368 = vst.msk [vmem:[%s215_s17] sm:$0x3] %vm366_vm4, %v362_v20 }
  0xbe PF: > { %s14_s15 = sadd.s32 1, %s484_s15  }
  0xbf   : > { %p11_p4 = scmp.ge.s32.totalorder %s14_s15, 6  }
  0xc1   :  { %13 = sbr.rel (!%p11_p4) target bundleno = 1 (0x1), region = 69 }

</bundles_post_ra>
